<compile_context>
chip_gen: v7x
topology: tpu7x:2x2x1
jax: 0.10.0
libtpu: 0.0.40
codegen_flags: <defaults>
</compile_context>

<pallas_src>
import jax
import jax.numpy as jnp
from jax.experimental import pallas as pl
from jax.experimental.pallas import tpu as pltpu

# ------------------------- configuration (small) -------------------------
N = 2          # batch
NINC = 4       # input channels  (also guide-map channels: ninc_map == ninc)
NOUTC = 8      # output channels -> learned_shortcut = True
NHIDC_MAX = 32
NMIDC = min(NINC, NOUTC)                          # 4
NHIDC = NHIDC_MAX if NINC > NHIDC_MAX else NINC   # 4  (same for all SPADEs here)
HIN, WIN = 8, 8      # inp_t spatial
HG, WG = 16, 16      # guide_map spatial (SPADE resizes inp_t to this)


# ------------------------------ fused kernel ------------------------------
def _make_kernel(wg):
    """Build the fused SPADEResNetBlock kernel for static guide width `wg`."""
    # flattened-lane offset of conv tap (dy, dx); tap order k = (dy+1)*3 + (dx+1)
    offs = [dy * wg + dx for dy in (-1, 0, 1) for dx in (-1, 0, 1)]

    def kernel(x_ref, g_ref, m_ref,
               w_sh_ref, b_sh_ref,
               w_gb_s_ref, w_gb_0_ref, w_gb_1_ref,
               w_c0_ref, b_c0_ref,
               w_c1_ref, b_c1_ref,
               w_cs_ref, o_ref):
        f32 = jnp.float32
        P = x_ref.shape[-1]                          # N * Hg * Wg (lane axis)
        mm = lambda a, b: jnp.dot(a, b, preferred_element_type=f32)
        lrelu = lambda v: jnp.maximum(v, 0.2 * v)    # mul+max, no cmp/select

        def conv3x3(img, w_ref):
            # 3x3 "same" conv as 9 per-tap matmuls accumulated in f32.
            # Taps = lane rolls (XLU) * 0/1 border masks (VPU): no im2col
            # operand materialized, no dead one-hot rows fed to the MXU.
            acc = mm(w_ref[4], img)                  # center tap: no roll/mask
            for k in range(9):
                if k == 4:
                    continue
                tap = pltpu.roll(img, (-offs[k]) % P, axis=1) * m_ref[k]
                acc = acc + mm(w_ref[k], tap)
            return acc

        x = x_ref[...]                               # (Cin, P) already at guide res
        g = g_ref[...]                               # (Cg,  P)
        nh8 = w_sh_ref.shape[1] // 3                 # 8-row-aligned hidden chunk

        # All three SPADE shared convs in one accumulation chain (+bias, ReLU);
        # each SPADE's chunk is zero-padded to 8 rows so the splits below stay
        # sublane-aligned.
        feat = jnp.maximum(conv3x3(g, w_sh_ref) + b_sh_ref[...], 0.0)   # (3*nh8, P)
        feat_s = feat[0:nh8]
        feat_0 = feat[nh8:2 * nh8]
        feat_1 = feat[2 * nh8:3 * nh8]

        def spade(x_in, feat_i, w_gb_ref):
            # gamma & beta convs merged along Cout; affine fused.
            c = x_in.shape[0]
            gb = conv3x3(feat_i, w_gb_ref)           # (2c, P) = [gamma; beta]
            return x_in * gb[0:c] + gb[c:2 * c]

        # shortcut branch: conv_s(norm_s(x, g))  (1x1, no bias, no activation)
        sc = mm(w_cs_ref[...], spade(x, feat_s, w_gb_s_ref))            # (Cout, P)

        # main branch: conv_1(lrelu(norm_1(conv_0(lrelu(norm_0(x,g))), g)))
        h = lrelu(spade(x, feat_0, w_gb_0_ref))
        h = conv3x3(h, w_c0_ref) + b_c0_ref[...]                        # (Cmid, P)
        h = lrelu(spade(h, feat_1, w_gb_1_ref))
        h = conv3x3(h, w_c1_ref) + b_c1_ref[...]                        # (Cout, P)

        o_ref[...] = h + sc                          # fused residual add

    return kernel


# --------------------- one-time weight / mask preparation ---------------------
def prepare_params(p):
    """One-time weight preparation, hoisted out of the forward path."""
    f32 = jnp.float32

    def taps(w):
        # (Cout, Cin, 3, 3) -> (9, Cout, Cin), tap k = ky*3 + kx
        co, ci = w.shape[0], w.shape[1]
        return jnp.transpose(w, (2, 3, 0, 1)).reshape(9, co, ci).astype(f32)

    def pad_rows(a, rows):      # zero-pad the Cout (sublane) axis
        return jnp.pad(a, ((0, 0), (0, rows - a.shape[1]), (0, 0)))

    def pad_cols(a, cols):      # zero-pad the Cin (contraction) axis
        return jnp.pad(a, ((0, 0), (0, 0), (0, cols - a.shape[2])))

    def col(b, rows=None):
        v = jnp.asarray(b, f32).reshape(-1, 1)
        if rows is not None:
            v = jnp.pad(v, ((0, rows - v.shape[0]), (0, 0)))
        return v

    nhid = p["norm_0"]["w_shared"].shape[0]
    nh8 = 8 * ((nhid + 7) // 8)   # pad each SPADE's hidden chunk to an 8-row multiple

    w_sh = jnp.concatenate(
        [pad_rows(taps(p[k]["w_shared"]), nh8)
         for k in ("norm_s", "norm_0", "norm_1")], axis=1)          # (9, 3*nh8, Cg)
    b_sh = jnp.concatenate(
        [col(p[k]["b_shared"], nh8)
         for k in ("norm_s", "norm_0", "norm_1")], axis=0)          # (3*nh8, 1)

    def gb(sp):   # merge gamma & beta along Cout; pad K to the padded feat rows
        w = jnp.concatenate([taps(sp["w_gamma"]), taps(sp["w_beta"])], axis=1)
        return pad_cols(w, nh8)                                      # (9, 2c, nh8)

    return dict(
        w_sh=w_sh, b_sh=b_sh,
        w_gb_s=gb(p["norm_s"]), w_gb_0=gb(p["norm_0"]), w_gb_1=gb(p["norm_1"]),
        w_c0=taps(p["conv_0_w"]), b_c0=col(p["conv_0_b"]),
        w_c1=taps(p["conv_1_w"]), b_c1=col(p["conv_1_b"]),
        w_cs=p["conv_s_w"].reshape(p["conv_s_w"].shape[0], -1).astype(f32),
    )


def _make_tap_masks(n, h, w):
    """(9, 1, n*h*w) f32 masks: 1 where conv tap (dy,dx) reads an in-bounds pixel."""
    total = n * h * w
    pix = jnp.arange(total, dtype=jnp.int32) % (h * w)
    y, x = pix // w, pix % w
    ms = []
    for dy in (-1, 0, 1):
        for dx in (-1, 0, 1):
            ok = (y + dy >= 0) & (y + dy < h) & (x + dx >= 0) & (x + dx < w)
            ms.append(ok.astype(jnp.float32))
    return jnp.stack(ms, axis=0).reshape(9, 1, total)


# ------------------------------ forward wrapper ------------------------------
@jax.jit
def spade_resnet_block(inp_nchw, guide_nchw, prep):
    """Forward of SPADEResNetBlock; returns NCHW like the PyTorch module."""
    n, cin, hin, win = inp_nchw.shape
    _, cg, hg, wg = guide_nchw.shape
    P = n * hg * wg
    noutc = prep["w_c1"].shape[1]
    f32 = jnp.float32

    # Nearest resize (PyTorch 'nearest': src = floor(dst*in/out)) is pure data
    # movement, so it is folded into the wrapper-side layout plumbing that also
    # moves batch onto the lane axis: (N,C,H,W) -> (C, N*Hg*Wg).
    ridx = (jnp.arange(hg) * hin) // hg
    cidx = (jnp.arange(wg) * win) // wg
    x_up = inp_nchw[:, :, ridx[:, None], cidx[None, :]]              # (N,Cin,Hg,Wg)
    x = jnp.transpose(x_up, (1, 0, 2, 3)).reshape(cin, P).astype(f32)
    g = jnp.transpose(guide_nchw, (1, 0, 2, 3)).reshape(cg, P).astype(f32)
    masks = _make_tap_masks(n, hg, wg)

    weights = [prep["w_sh"], prep["b_sh"],
               prep["w_gb_s"], prep["w_gb_0"], prep["w_gb_1"],
               prep["w_c0"], prep["b_c0"], prep["w_c1"], prep["b_c1"],
               prep["w_cs"]]

    def whole(arr):
        nd = arr.ndim
        return pl.BlockSpec(arr.shape, lambda i, _nd=nd: (0,) * _nd)

    # Advisory cost hint (the kernel is microsecond-scale; keep XLA honest).
    macs = P * (prep["w_sh"].shape[0] * prep["w_sh"].shape[1] * prep["w_sh"].shape[2]
                + sum(prep[k].shape[0] * prep[k].shape[1] * prep[k].shape[2]
                      for k in ("w_gb_s", "w_gb_0", "w_gb_1"))
                + prep["w_c0"].shape[0] * prep["w_c0"].shape[1] * prep["w_c0"].shape[2]
                + prep["w_c1"].shape[0] * prep["w_c1"].shape[1] * prep["w_c1"].shape[2]
                + prep["w_cs"].shape[0] * prep["w_cs"].shape[1])
    bytes_acc = (sum(int(a.size) * 4 for a in [x, g, masks] + weights)
                 + noutc * P * 4)
    cost = pl.CostEstimate(flops=2 * int(macs), transcendentals=0,
                           bytes_accessed=int(bytes_acc))

    out = pl.pallas_call(
        _make_kernel(wg),
        out_shape=jax.ShapeDtypeStruct((noutc, P), f32),
        grid=(1,),
        in_specs=[whole(x), whole(g), whole(masks)] + [whole(a) for a in weights],
        out_specs=pl.BlockSpec((noutc, P), lambda i: (0, 0)),
        compiler_params=pltpu.CompilerParams(dimension_semantics=("arbitrary",)),
        cost_estimate=cost,
    )(x, g, masks, *weights)

    return jnp.transpose(out.reshape(noutc, n, hg, wg), (1, 0, 2, 3))


# -------------------------- pure-JAX reference --------------------------
def _conv2d_ref(x, w, b, pad):
    out = jax.lax.conv_general_dilated(
        x, w, (1, 1), ((pad, pad), (pad, pad)),
        dimension_numbers=("NCHW", "OIHW", "NCHW"),
        precision=jax.lax.Precision.HIGHEST)
    if b is not None:
        out = out + b[None, :, None, None]
    return out


def _nearest_resize_nchw(x, oh, ow):
    n, c, h, w = x.shape
    if (h, w) == (oh, ow):
        return x
    ridx = (jnp.arange(oh) * h) // oh
    cidx = (jnp.arange(ow) * w) // ow
    return x[:, :, ridx[:, None], cidx[None, :]]


def _spade_ref(x, guide, p):
    x = _nearest_resize_nchw(x, guide.shape[2], guide.shape[3])
    feat = jax.nn.relu(_conv2d_ref(guide, p["w_shared"], p["b_shared"], 1))
    gamma = _conv2d_ref(feat, p["w_gamma"], None, 1)
    beta = _conv2d_ref(feat, p["w_beta"], None, 1)
    return x * gamma + beta


def _block_ref(x, guide, params):
    lrelu = lambda t: jnp.maximum(t, 0.2 * t)
    s = _conv2d_ref(_spade_ref(x, guide, params["norm_s"]),
                    params["conv_s_w"], None, 0)
    h = _conv2d_ref(lrelu(_spade_ref(x, guide, params["norm_0"])),
                    params["conv_0_w"], params["conv_0_b"], 1)
    h = _conv2d_ref(lrelu(_spade_ref(h, guide, params["norm_1"])),
                    params["conv_1_w"], params["conv_1_b"], 1)
    return h + s


# ------------------------------ parameters ------------------------------
def init_params(key):
    keys = iter(jax.random.split(key, 32))

    def rnd(shape, scale=0.1):
        return (scale * jax.random.normal(next(keys), shape)).astype(jnp.float32)

    def spade_p(ninc, ninc_map, nhidc):
        return dict(
            w_shared=rnd((nhidc, ninc_map, 3, 3)), b_shared=rnd((nhidc,)),
            w_gamma=rnd((ninc, nhidc, 3, 3)),
            w_beta=rnd((ninc, nhidc, 3, 3)),
        )

    return dict(
        norm_s=spade_p(NINC, NINC, NHIDC),
        norm_0=spade_p(NINC, NINC, NHIDC),
        norm_1=spade_p(NMIDC, NINC, NHIDC),
        conv_s_w=rnd((NOUTC, NINC, 1, 1)),
        conv_0_w=rnd((NMIDC, NINC, 3, 3)), conv_0_b=rnd((NMIDC,)),
        conv_1_w=rnd((NOUTC, NMIDC, 3, 3)), conv_1_b=rnd((NOUTC,)),
    )


# ---------------------------------- main ----------------------------------
if __name__ == "__main__":
    key = jax.random.PRNGKey(0)
    k_inp, k_guide, k_par = jax.random.split(key, 3)
    inp_t = jax.random.normal(k_inp, (N, NINC, HIN, WIN), jnp.float32)
    guide_map = jax.random.normal(k_guide, (N, NINC, HG, WG), jnp.float32)
    params = init_params(k_par)
    prep = prepare_params(params)   # one-time weight prep (hoisted out of forward)

    out = spade_resnet_block(inp_t, guide_map, prep)
    out = jax.block_until_ready(out)

    ref = _block_ref(inp_t, guide_map, params)
    assert out.shape == (N, NOUTC, HG, WG), out.shape
    err = float(jnp.max(jnp.abs(out - ref)))
    # Tightened from 3e-2; typical f32 MXU error here is ~1e-5, head-room is
    # kept for generations whose f32 dots decompose into bf16 passes.
    assert err < 2e-2, f"max abs err vs reference: {err}"
    print("KERNEL_OK")
</pallas_src>

<mosaic_0001>
module attributes {stable_mosaic.version = 11 : i64} {
  func.func @kernel(%arg0: i32, %arg1: memref<4x512xf32, #tpu.memory_space<vmem>>, %arg2: memref<4x512xf32, #tpu.memory_space<vmem>>, %arg3: memref<9x1x512xf32, #tpu.memory_space<vmem>>, %arg4: memref<9x24x4xf32, #tpu.memory_space<vmem>>, %arg5: memref<24x1xf32, #tpu.memory_space<vmem>>, %arg6: memref<9x8x8xf32, #tpu.memory_space<vmem>>, %arg7: memref<9x8x8xf32, #tpu.memory_space<vmem>>, %arg8: memref<9x8x8xf32, #tpu.memory_space<vmem>>, %arg9: memref<9x4x4xf32, #tpu.memory_space<vmem>>, %arg10: memref<4x1xf32, #tpu.memory_space<vmem>>, %arg11: memref<9x8x4xf32, #tpu.memory_space<vmem>>, %arg12: memref<8x1xf32, #tpu.memory_space<vmem>>, %arg13: memref<8x4xf32, #tpu.memory_space<vmem>>, %arg14: memref<8x512xf32, #tpu.memory_space<vmem>>) attributes {dimension_semantics = [#tpu.dimension_semantics<arbitrary>], iteration_bounds = array<i64: 1>, scalar_prefetch = 0 : i64, scratch_operands = 0 : i64, tpu.core_type = #tpu.core_type<tc>, window_params = [{pipeline_mode = #tpu.pipeline_mode<synchronous>, transform_indices = @transform_0, window_bounds = array<i64: 4, 512>}, {pipeline_mode = #tpu.pipeline_mode<synchronous>, transform_indices = @transform_1, window_bounds = array<i64: 4, 512>}, {pipeline_mode = #tpu.pipeline_mode<synchronous>, transform_indices = @transform_2, window_bounds = array<i64: 9, 1, 512>}, {pipeline_mode = #tpu.pipeline_mode<synchronous>, transform_indices = @transform_3, window_bounds = array<i64: 9, 24, 4>}, {pipeline_mode = #tpu.pipeline_mode<synchronous>, transform_indices = @transform_4, window_bounds = array<i64: 24, 1>}, {pipeline_mode = #tpu.pipeline_mode<synchronous>, transform_indices = @transform_5, window_bounds = array<i64: 9, 8, 8>}, {pipeline_mode = #tpu.pipeline_mode<synchronous>, transform_indices = @transform_6, window_bounds = array<i64: 9, 8, 8>}, {pipeline_mode = #tpu.pipeline_mode<synchronous>, transform_indices = @transform_7, window_bounds = array<i64: 9, 8, 8>}, {pipeline_mode = #tpu.pipeline_mode<synchronous>, transform_indices = @transform_8, window_bounds = array<i64: 9, 4, 4>}, {pipeline_mode = #tpu.pipeline_mode<synchronous>, transform_indices = @transform_9, window_bounds = array<i64: 4, 1>}, {pipeline_mode = #tpu.pipeline_mode<synchronous>, transform_indices = @transform_10, window_bounds = array<i64: 9, 8, 4>}, {pipeline_mode = #tpu.pipeline_mode<synchronous>, transform_indices = @transform_11, window_bounds = array<i64: 8, 1>}, {pipeline_mode = #tpu.pipeline_mode<synchronous>, transform_indices = @transform_12, window_bounds = array<i64: 8, 4>}, {pipeline_mode = #tpu.pipeline_mode<synchronous>, transform_indices = @transform_13, window_bounds = array<i64: 8, 512>}]} {
    %c0 = arith.constant 0 : index
    %c0_0 = arith.constant 0 : index
    %0 = vector.load %arg1[%c0, %c0_0] : memref<4x512xf32, #tpu.memory_space<vmem>>, vector<4x512xf32>
    %c0_1 = arith.constant 0 : index
    %c0_2 = arith.constant 0 : index
    %1 = vector.load %arg2[%c0_1, %c0_2] : memref<4x512xf32, #tpu.memory_space<vmem>>, vector<4x512xf32>
    %c4 = arith.constant 4 : index
    %c0_3 = arith.constant 0 : index
    %c0_4 = arith.constant 0 : index
    %2 = vector.load %arg4[%c4, %c0_3, %c0_4] : memref<9x24x4xf32, #tpu.memory_space<vmem>>, vector<1x24x4xf32>
    %3 = vector.shape_cast %2 : vector<1x24x4xf32> to vector<24x4xf32>
    %cst = arith.constant dense<0.000000e+00> : vector<24x512xf32>
    %4 = tpu.matmul %3, %1, %cst {dimension_numbers = #tpu.dot_dimension_numbers<[1], [0], [0], [1], [0, 0, 1, 1], [], []>} : vector<24x4xf32>, vector<4x512xf32>, vector<24x512xf32> -> vector<24x512xf32>
    %c17_i32 = arith.constant 17 : i32
    %5 = tpu.dynamic_rotate %1 by %c17_i32 dim 1 : vector<4x512xf32>, i32 -> vector<4x512xf32>
    %c0_5 = arith.constant 0 : index
    %c0_6 = arith.constant 0 : index
    %c0_7 = arith.constant 0 : index
    %6 = vector.load %arg3[%c0_5, %c0_6, %c0_7] : memref<9x1x512xf32, #tpu.memory_space<vmem>>, vector<1x1x512xf32>
    %7 = vector.shape_cast %6 : vector<1x1x512xf32> to vector<1x512xf32>
    %8 = vector.broadcast %7 : vector<1x512xf32> to vector<4x512xf32>
    %9 = arith.mulf %5, %8 : vector<4x512xf32>
    %c0_8 = arith.constant 0 : index
    %c0_9 = arith.constant 0 : index
    %c0_10 = arith.constant 0 : index
    %10 = vector.load %arg4[%c0_8, %c0_9, %c0_10] : memref<9x24x4xf32, #tpu.memory_space<vmem>>, vector<1x24x4xf32>
    %11 = vector.shape_cast %10 : vector<1x24x4xf32> to vector<24x4xf32>
    %cst_11 = arith.constant dense<0.000000e+00> : vector<24x512xf32>
    %12 = tpu.matmul %11, %9, %cst_11 {dimension_numbers = #tpu.dot_dimension_numbers<[1], [0], [0], [1], [0, 0, 1, 1], [], []>} : vector<24x4xf32>, vector<4x512xf32>, vector<24x512xf32> -> vector<24x512xf32>
    %13 = arith.addf %4, %12 : vector<24x512xf32>
    %c16_i32 = arith.constant 16 : i32
    %14 = tpu.dynamic_rotate %1 by %c16_i32 dim 1 : vector<4x512xf32>, i32 -> vector<4x512xf32>
    %c1 = arith.constant 1 : index
    %c0_12 = arith.constant 0 : index
    %c0_13 = arith.constant 0 : index
    %15 = vector.load %arg3[%c1, %c0_12, %c0_13] : memref<9x1x512xf32, #tpu.memory_space<vmem>>, vector<1x1x512xf32>
    %16 = vector.shape_cast %15 : vector<1x1x512xf32> to vector<1x512xf32>
    %17 = vector.broadcast %16 : vector<1x512xf32> to vector<4x512xf32>
    %18 = arith.mulf %14, %17 : vector<4x512xf32>
    %c1_14 = arith.constant 1 : index
    %c0_15 = arith.constant 0 : index
    %c0_16 = arith.constant 0 : index
    %19 = vector.load %arg4[%c1_14, %c0_15, %c0_16] : memref<9x24x4xf32, #tpu.memory_space<vmem>>, vector<1x24x4xf32>
    %20 = vector.shape_cast %19 : vector<1x24x4xf32> to vector<24x4xf32>
    %cst_17 = arith.constant dense<0.000000e+00> : vector<24x512xf32>
    %21 = tpu.matmul %20, %18, %cst_17 {dimension_numbers = #tpu.dot_dimension_numbers<[1], [0], [0], [1], [0, 0, 1, 1], [], []>} : vector<24x4xf32>, vector<4x512xf32>, vector<24x512xf32> -> vector<24x512xf32>
    %22 = arith.addf %13, %21 : vector<24x512xf32>
    %c15_i32 = arith.constant 15 : i32
    %23 = tpu.dynamic_rotate %1 by %c15_i32 dim 1 : vector<4x512xf32>, i32 -> vector<4x512xf32>
    %c2 = arith.constant 2 : index
    %c0_18 = arith.constant 0 : index
    %c0_19 = arith.constant 0 : index
    %24 = vector.load %arg3[%c2, %c0_18, %c0_19] : memref<9x1x512xf32, #tpu.memory_space<vmem>>, vector<1x1x512xf32>
    %25 = vector.shape_cast %24 : vector<1x1x512xf32> to vector<1x512xf32>
    %26 = vector.broadcast %25 : vector<1x512xf32> to vector<4x512xf32>
    %27 = arith.mulf %23, %26 : vector<4x512xf32>
    %c2_20 = arith.constant 2 : index
    %c0_21 = arith.constant 0 : index
    %c0_22 = arith.constant 0 : index
    %28 = vector.load %arg4[%c2_20, %c0_21, %c0_22] : memref<9x24x4xf32, #tpu.memory_space<vmem>>, vector<1x24x4xf32>
    %29 = vector.shape_cast %28 : vector<1x24x4xf32> to vector<24x4xf32>
    %cst_23 = arith.constant dense<0.000000e+00> : vector<24x512xf32>
    %30 = tpu.matmul %29, %27, %cst_23 {dimension_numbers = #tpu.dot_dimension_numbers<[1], [0], [0], [1], [0, 0, 1, 1], [], []>} : vector<24x4xf32>, vector<4x512xf32>, vector<24x512xf32> -> vector<24x512xf32>
    %31 = arith.addf %22, %30 : vector<24x512xf32>
    %c1_i32 = arith.constant 1 : i32
    %32 = tpu.dynamic_rotate %1 by %c1_i32 dim 1 : vector<4x512xf32>, i32 -> vector<4x512xf32>
    %c3 = arith.constant 3 : index
    %c0_24 = arith.constant 0 : index
    %c0_25 = arith.constant 0 : index
    %33 = vector.load %arg3[%c3, %c0_24, %c0_25] : memref<9x1x512xf32, #tpu.memory_space<vmem>>, vector<1x1x512xf32>
    %34 = vector.shape_cast %33 : vector<1x1x512xf32> to vector<1x512xf32>
    %35 = vector.broadcast %34 : vector<1x512xf32> to vector<4x512xf32>
    %36 = arith.mulf %32, %35 : vector<4x512xf32>
    %c3_26 = arith.constant 3 : index
    %c0_27 = arith.constant 0 : index
    %c0_28 = arith.constant 0 : index
    %37 = vector.load %arg4[%c3_26, %c0_27, %c0_28] : memref<9x24x4xf32, #tpu.memory_space<vmem>>, vector<1x24x4xf32>
    %38 = vector.shape_cast %37 : vector<1x24x4xf32> to vector<24x4xf32>
    %cst_29 = arith.constant dense<0.000000e+00> : vector<24x512xf32>
    %39 = tpu.matmul %38, %36, %cst_29 {dimension_numbers = #tpu.dot_dimension_numbers<[1], [0], [0], [1], [0, 0, 1, 1], [], []>} : vector<24x4xf32>, vector<4x512xf32>, vector<24x512xf32> -> vector<24x512xf32>
    %40 = arith.addf %31, %39 : vector<24x512xf32>
    %c511_i32 = arith.constant 511 : i32
    %41 = tpu.dynamic_rotate %1 by %c511_i32 dim 1 : vector<4x512xf32>, i32 -> vector<4x512xf32>
    %c5 = arith.constant 5 : index
    %c0_30 = arith.constant 0 : index
    %c0_31 = arith.constant 0 : index
    %42 = vector.load %arg3[%c5, %c0_30, %c0_31] : memref<9x1x512xf32, #tpu.memory_space<vmem>>, vector<1x1x512xf32>
    %43 = vector.shape_cast %42 : vector<1x1x512xf32> to vector<1x512xf32>
    %44 = vector.broadcast %43 : vector<1x512xf32> to vector<4x512xf32>
    %45 = arith.mulf %41, %44 : vector<4x512xf32>
    %c5_32 = arith.constant 5 : index
    %c0_33 = arith.constant 0 : index
    %c0_34 = arith.constant 0 : index
    %46 = vector.load %arg4[%c5_32, %c0_33, %c0_34] : memref<9x24x4xf32, #tpu.memory_space<vmem>>, vector<1x24x4xf32>
    %47 = vector.shape_cast %46 : vector<1x24x4xf32> to vector<24x4xf32>
    %cst_35 = arith.constant dense<0.000000e+00> : vector<24x512xf32>
    %48 = tpu.matmul %47, %45, %cst_35 {dimension_numbers = #tpu.dot_dimension_numbers<[1], [0], [0], [1], [0, 0, 1, 1], [], []>} : vector<24x4xf32>, vector<4x512xf32>, vector<24x512xf32> -> vector<24x512xf32>
    %49 = arith.addf %40, %48 : vector<24x512xf32>
    %c497_i32 = arith.constant 497 : i32
    %50 = tpu.dynamic_rotate %1 by %c497_i32 dim 1 : vector<4x512xf32>, i32 -> vector<4x512xf32>
    %c6 = arith.constant 6 : index
    %c0_36 = arith.constant 0 : index
    %c0_37 = arith.constant 0 : index
    %51 = vector.load %arg3[%c6, %c0_36, %c0_37] : memref<9x1x512xf32, #tpu.memory_space<vmem>>, vector<1x1x512xf32>
    %52 = vector.shape_cast %51 : vector<1x1x512xf32> to vector<1x512xf32>
    %53 = vector.broadcast %52 : vector<1x512xf32> to vector<4x512xf32>
    %54 = arith.mulf %50, %53 : vector<4x512xf32>
    %c6_38 = arith.constant 6 : index
    %c0_39 = arith.constant 0 : index
    %c0_40 = arith.constant 0 : index
    %55 = vector.load %arg4[%c6_38, %c0_39, %c0_40] : memref<9x24x4xf32, #tpu.memory_space<vmem>>, vector<1x24x4xf32>
    %56 = vector.shape_cast %55 : vector<1x24x4xf32> to vector<24x4xf32>
    %cst_41 = arith.constant dense<0.000000e+00> : vector<24x512xf32>
    %57 = tpu.matmul %56, %54, %cst_41 {dimension_numbers = #tpu.dot_dimension_numbers<[1], [0], [0], [1], [0, 0, 1, 1], [], []>} : vector<24x4xf32>, vector<4x512xf32>, vector<24x512xf32> -> vector<24x512xf32>
    %58 = arith.addf %49, %57 : vector<24x512xf32>
    %c496_i32 = arith.constant 496 : i32
    %59 = tpu.dynamic_rotate %1 by %c496_i32 dim 1 : vector<4x512xf32>, i32 -> vector<4x512xf32>
    %c7 = arith.constant 7 : index
    %c0_42 = arith.constant 0 : index
    %c0_43 = arith.constant 0 : index
    %60 = vector.load %arg3[%c7, %c0_42, %c0_43] : memref<9x1x512xf32, #tpu.memory_space<vmem>>, vector<1x1x512xf32>
    %61 = vector.shape_cast %60 : vector<1x1x512xf32> to vector<1x512xf32>
    %62 = vector.broadcast %61 : vector<1x512xf32> to vector<4x512xf32>
    %63 = arith.mulf %59, %62 : vector<4x512xf32>
    %c7_44 = arith.constant 7 : index
    %c0_45 = arith.constant 0 : index
    %c0_46 = arith.constant 0 : index
    %64 = vector.load %arg4[%c7_44, %c0_45, %c0_46] : memref<9x24x4xf32, #tpu.memory_space<vmem>>, vector<1x24x4xf32>
    %65 = vector.shape_cast %64 : vector<1x24x4xf32> to vector<24x4xf32>
    %cst_47 = arith.constant dense<0.000000e+00> : vector<24x512xf32>
    %66 = tpu.matmul %65, %63, %cst_47 {dimension_numbers = #tpu.dot_dimension_numbers<[1], [0], [0], [1], [0, 0, 1, 1], [], []>} : vector<24x4xf32>, vector<4x512xf32>, vector<24x512xf32> -> vector<24x512xf32>
    %67 = arith.addf %58, %66 : vector<24x512xf32>
    %c495_i32 = arith.constant 495 : i32
    %68 = tpu.dynamic_rotate %1 by %c495_i32 dim 1 : vector<4x512xf32>, i32 -> vector<4x512xf32>
    %c8 = arith.constant 8 : index
    %c0_48 = arith.constant 0 : index
    %c0_49 = arith.constant 0 : index
    %69 = vector.load %arg3[%c8, %c0_48, %c0_49] : memref<9x1x512xf32, #tpu.memory_space<vmem>>, vector<1x1x512xf32>
    %70 = vector.shape_cast %69 : vector<1x1x512xf32> to vector<1x512xf32>
    %71 = vector.broadcast %70 : vector<1x512xf32> to vector<4x512xf32>
    %72 = arith.mulf %68, %71 : vector<4x512xf32>
    %c8_50 = arith.constant 8 : index
    %c0_51 = arith.constant 0 : index
    %c0_52 = arith.constant 0 : index
    %73 = vector.load %arg4[%c8_50, %c0_51, %c0_52] : memref<9x24x4xf32, #tpu.memory_space<vmem>>, vector<1x24x4xf32>
    %74 = vector.shape_cast %73 : vector<1x24x4xf32> to vector<24x4xf32>
    %cst_53 = arith.constant dense<0.000000e+00> : vector<24x512xf32>
    %75 = tpu.matmul %74, %72, %cst_53 {dimension_numbers = #tpu.dot_dimension_numbers<[1], [0], [0], [1], [0, 0, 1, 1], [], []>} : vector<24x4xf32>, vector<4x512xf32>, vector<24x512xf32> -> vector<24x512xf32>
    %76 = arith.addf %67, %75 : vector<24x512xf32>
    %c0_54 = arith.constant 0 : index
    %c0_55 = arith.constant 0 : index
    %77 = vector.load %arg5[%c0_54, %c0_55] : memref<24x1xf32, #tpu.memory_space<vmem>>, vector<24x1xf32>
    %78 = vector.broadcast %77 : vector<24x1xf32> to vector<24x512xf32>
    %79 = arith.addf %76, %78 : vector<24x512xf32>
    %cst_56 = arith.constant 0.000000e+00 : f32
    %80 = vector.broadcast %cst_56 : f32 to vector<24x512xf32>
    %81 = arith.maximumf %79, %80 : vector<24x512xf32>
    %82 = vector.extract_strided_slice %81 {offsets = [0, 0], sizes = [8, 512], strides = [1, 1]} : vector<24x512xf32> to vector<8x512xf32>
    %83 = vector.extract_strided_slice %81 {offsets = [8, 0], sizes = [8, 512], strides = [1, 1]} : vector<24x512xf32> to vector<8x512xf32>
    %84 = vector.extract_strided_slice %81 {offsets = [16, 0], sizes = [8, 512], strides = [1, 1]} : vector<24x512xf32> to vector<8x512xf32>
    %c0_57 = arith.constant 0 : index
    %c0_58 = arith.constant 0 : index
    %85 = vector.load %arg13[%c0_57, %c0_58] : memref<8x4xf32, #tpu.memory_space<vmem>>, vector<8x4xf32>
    %c4_59 = arith.constant 4 : index
    %c0_60 = arith.constant 0 : index
    %c0_61 = arith.constant 0 : index
    %86 = vector.load %arg6[%c4_59, %c0_60, %c0_61] : memref<9x8x8xf32, #tpu.memory_space<vmem>>, vector<1x8x8xf32>
    %87 = vector.shape_cast %86 : vector<1x8x8xf32> to vector<8x8xf32>
    %cst_62 = arith.constant dense<0.000000e+00> : vector<8x512xf32>
    %88 = tpu.matmul %87, %82, %cst_62 {dimension_numbers = #tpu.dot_dimension_numbers<[1], [0], [0], [1], [0, 0, 1, 1], [], []>} : vector<8x8xf32>, vector<8x512xf32>, vector<8x512xf32> -> vector<8x512xf32>
    %c17_i32_63 = arith.constant 17 : i32
    %89 = tpu.dynamic_rotate %82 by %c17_i32_63 dim 1 : vector<8x512xf32>, i32 -> vector<8x512xf32>
    %c0_64 = arith.constant 0 : index
    %c0_65 = arith.constant 0 : index
    %c0_66 = arith.constant 0 : index
    %90 = vector.load %arg3[%c0_64, %c0_65, %c0_66] : memref<9x1x512xf32, #tpu.memory_space<vmem>>, vector<1x1x512xf32>
    %91 = vector.shape_cast %90 : vector<1x1x512xf32> to vector<1x512xf32>
    %92 = vector.broadcast %91 : vector<1x512xf32> to vector<8x512xf32>
    %93 = arith.mulf %89, %92 : vector<8x512xf32>
    %c0_67 = arith.constant 0 : index
    %c0_68 = arith.constant 0 : index
    %c0_69 = arith.constant 0 : index
    %94 = vector.load %arg6[%c0_67, %c0_68, %c0_69] : memref<9x8x8xf32, #tpu.memory_space<vmem>>, vector<1x8x8xf32>
    %95 = vector.shape_cast %94 : vector<1x8x8xf32> to vector<8x8xf32>
    %cst_70 = arith.constant dense<0.000000e+00> : vector<8x512xf32>
    %96 = tpu.matmul %95, %93, %cst_70 {dimension_numbers = #tpu.dot_dimension_numbers<[1], [0], [0], [1], [0, 0, 1, 1], [], []>} : vector<8x8xf32>, vector<8x512xf32>, vector<8x512xf32> -> vector<8x512xf32>
    %97 = arith.addf %88, %96 : vector<8x512xf32>
    %c16_i32_71 = arith.constant 16 : i32
    %98 = tpu.dynamic_rotate %82 by %c16_i32_71 dim 1 : vector<8x512xf32>, i32 -> vector<8x512xf32>
    %c1_72 = arith.constant 1 : index
    %c0_73 = arith.constant 0 : index
    %c0_74 = arith.constant 0 : index
    %99 = vector.load %arg3[%c1_72, %c0_73, %c0_74] : memref<9x1x512xf32, #tpu.memory_space<vmem>>, vector<1x1x512xf32>
    %100 = vector.shape_cast %99 : vector<1x1x512xf32> to vector<1x512xf32>
    %101 = vector.broadcast %100 : vector<1x512xf32> to vector<8x512xf32>
    %102 = arith.mulf %98, %101 : vector<8x512xf32>
    %c1_75 = arith.constant 1 : index
    %c0_76 = arith.constant 0 : index
    %c0_77 = arith.constant 0 : index
    %103 = vector.load %arg6[%c1_75, %c0_76, %c0_77] : memref<9x8x8xf32, #tpu.memory_space<vmem>>, vector<1x8x8xf32>
    %104 = vector.shape_cast %103 : vector<1x8x8xf32> to vector<8x8xf32>
    %cst_78 = arith.constant dense<0.000000e+00> : vector<8x512xf32>
    %105 = tpu.matmul %104, %102, %cst_78 {dimension_numbers = #tpu.dot_dimension_numbers<[1], [0], [0], [1], [0, 0, 1, 1], [], []>} : vector<8x8xf32>, vector<8x512xf32>, vector<8x512xf32> -> vector<8x512xf32>
    %106 = arith.addf %97, %105 : vector<8x512xf32>
    %c15_i32_79 = arith.constant 15 : i32
    %107 = tpu.dynamic_rotate %82 by %c15_i32_79 dim 1 : vector<8x512xf32>, i32 -> vector<8x512xf32>
    %c2_80 = arith.constant 2 : index
    %c0_81 = arith.constant 0 : index
    %c0_82 = arith.constant 0 : index
    %108 = vector.load %arg3[%c2_80, %c0_81, %c0_82] : memref<9x1x512xf32, #tpu.memory_space<vmem>>, vector<1x1x512xf32>
    %109 = vector.shape_cast %108 : vector<1x1x512xf32> to vector<1x512xf32>
    %110 = vector.broadcast %109 : vector<1x512xf32> to vector<8x512xf32>
    %111 = arith.mulf %107, %110 : vector<8x512xf32>
    %c2_83 = arith.constant 2 : index
    %c0_84 = arith.constant 0 : index
    %c0_85 = arith.constant 0 : index
    %112 = vector.load %arg6[%c2_83, %c0_84, %c0_85] : memref<9x8x8xf32, #tpu.memory_space<vmem>>, vector<1x8x8xf32>
    %113 = vector.shape_cast %112 : vector<1x8x8xf32> to vector<8x8xf32>
    %cst_86 = arith.constant dense<0.000000e+00> : vector<8x512xf32>
    %114 = tpu.matmul %113, %111, %cst_86 {dimension_numbers = #tpu.dot_dimension_numbers<[1], [0], [0], [1], [0, 0, 1, 1], [], []>} : vector<8x8xf32>, vector<8x512xf32>, vector<8x512xf32> -> vector<8x512xf32>
    %115 = arith.addf %106, %114 : vector<8x512xf32>
    %c1_i32_87 = arith.constant 1 : i32
    %116 = tpu.dynamic_rotate %82 by %c1_i32_87 dim 1 : vector<8x512xf32>, i32 -> vector<8x512xf32>
    %c3_88 = arith.constant 3 : index
    %c0_89 = arith.constant 0 : index
    %c0_90 = arith.constant 0 : index
    %117 = vector.load %arg3[%c3_88, %c0_89, %c0_90] : memref<9x1x512xf32, #tpu.memory_space<vmem>>, vector<1x1x512xf32>
    %118 = vector.shape_cast %117 : vector<1x1x512xf32> to vector<1x512xf32>
    %119 = vector.broadcast %118 : vector<1x512xf32> to vector<8x512xf32>
    %120 = arith.mulf %116, %119 : vector<8x512xf32>
    %c3_91 = arith.constant 3 : index
    %c0_92 = arith.constant 0 : index
    %c0_93 = arith.constant 0 : index
    %121 = vector.load %arg6[%c3_91, %c0_92, %c0_93] : memref<9x8x8xf32, #tpu.memory_space<vmem>>, vector<1x8x8xf32>
    %122 = vector.shape_cast %121 : vector<1x8x8xf32> to vector<8x8xf32>
    %cst_94 = arith.constant dense<0.000000e+00> : vector<8x512xf32>
    %123 = tpu.matmul %122, %120, %cst_94 {dimension_numbers = #tpu.dot_dimension_numbers<[1], [0], [0], [1], [0, 0, 1, 1], [], []>} : vector<8x8xf32>, vector<8x512xf32>, vector<8x512xf32> -> vector<8x512xf32>
    %124 = arith.addf %115, %123 : vector<8x512xf32>
    %c511_i32_95 = arith.constant 511 : i32
    %125 = tpu.dynamic_rotate %82 by %c511_i32_95 dim 1 : vector<8x512xf32>, i32 -> vector<8x512xf32>
    %c5_96 = arith.constant 5 : index
    %c0_97 = arith.constant 0 : index
    %c0_98 = arith.constant 0 : index
    %126 = vector.load %arg3[%c5_96, %c0_97, %c0_98] : memref<9x1x512xf32, #tpu.memory_space<vmem>>, vector<1x1x512xf32>
    %127 = vector.shape_cast %126 : vector<1x1x512xf32> to vector<1x512xf32>
    %128 = vector.broadcast %127 : vector<1x512xf32> to vector<8x512xf32>
    %129 = arith.mulf %125, %128 : vector<8x512xf32>
    %c5_99 = arith.constant 5 : index
    %c0_100 = arith.constant 0 : index
    %c0_101 = arith.constant 0 : index
    %130 = vector.load %arg6[%c5_99, %c0_100, %c0_101] : memref<9x8x8xf32, #tpu.memory_space<vmem>>, vector<1x8x8xf32>
    %131 = vector.shape_cast %130 : vector<1x8x8xf32> to vector<8x8xf32>
    %cst_102 = arith.constant dense<0.000000e+00> : vector<8x512xf32>
    %132 = tpu.matmul %131, %129, %cst_102 {dimension_numbers = #tpu.dot_dimension_numbers<[1], [0], [0], [1], [0, 0, 1, 1], [], []>} : vector<8x8xf32>, vector<8x512xf32>, vector<8x512xf32> -> vector<8x512xf32>
    %133 = arith.addf %124, %132 : vector<8x512xf32>
    %c497_i32_103 = arith.constant 497 : i32
    %134 = tpu.dynamic_rotate %82 by %c497_i32_103 dim 1 : vector<8x512xf32>, i32 -> vector<8x512xf32>
    %c6_104 = arith.constant 6 : index
    %c0_105 = arith.constant 0 : index
    %c0_106 = arith.constant 0 : index
    %135 = vector.load %arg3[%c6_104, %c0_105, %c0_106] : memref<9x1x512xf32, #tpu.memory_space<vmem>>, vector<1x1x512xf32>
    %136 = vector.shape_cast %135 : vector<1x1x512xf32> to vector<1x512xf32>
    %137 = vector.broadcast %136 : vector<1x512xf32> to vector<8x512xf32>
    %138 = arith.mulf %134, %137 : vector<8x512xf32>
    %c6_107 = arith.constant 6 : index
    %c0_108 = arith.constant 0 : index
    %c0_109 = arith.constant 0 : index
    %139 = vector.load %arg6[%c6_107, %c0_108, %c0_109] : memref<9x8x8xf32, #tpu.memory_space<vmem>>, vector<1x8x8xf32>
    %140 = vector.shape_cast %139 : vector<1x8x8xf32> to vector<8x8xf32>
    %cst_110 = arith.constant dense<0.000000e+00> : vector<8x512xf32>
    %141 = tpu.matmul %140, %138, %cst_110 {dimension_numbers = #tpu.dot_dimension_numbers<[1], [0], [0], [1], [0, 0, 1, 1], [], []>} : vector<8x8xf32>, vector<8x512xf32>, vector<8x512xf32> -> vector<8x512xf32>
    %142 = arith.addf %133, %141 : vector<8x512xf32>
    %c496_i32_111 = arith.constant 496 : i32
    %143 = tpu.dynamic_rotate %82 by %c496_i32_111 dim 1 : vector<8x512xf32>, i32 -> vector<8x512xf32>
    %c7_112 = arith.constant 7 : index
    %c0_113 = arith.constant 0 : index
    %c0_114 = arith.constant 0 : index
    %144 = vector.load %arg3[%c7_112, %c0_113, %c0_114] : memref<9x1x512xf32, #tpu.memory_space<vmem>>, vector<1x1x512xf32>
    %145 = vector.shape_cast %144 : vector<1x1x512xf32> to vector<1x512xf32>
    %146 = vector.broadcast %145 : vector<1x512xf32> to vector<8x512xf32>
    %147 = arith.mulf %143, %146 : vector<8x512xf32>
    %c7_115 = arith.constant 7 : index
    %c0_116 = arith.constant 0 : index
    %c0_117 = arith.constant 0 : index
    %148 = vector.load %arg6[%c7_115, %c0_116, %c0_117] : memref<9x8x8xf32, #tpu.memory_space<vmem>>, vector<1x8x8xf32>
    %149 = vector.shape_cast %148 : vector<1x8x8xf32> to vector<8x8xf32>
    %cst_118 = arith.constant dense<0.000000e+00> : vector<8x512xf32>
    %150 = tpu.matmul %149, %147, %cst_118 {dimension_numbers = #tpu.dot_dimension_numbers<[1], [0], [0], [1], [0, 0, 1, 1], [], []>} : vector<8x8xf32>, vector<8x512xf32>, vector<8x512xf32> -> vector<8x512xf32>
    %151 = arith.addf %142, %150 : vector<8x512xf32>
    %c495_i32_119 = arith.constant 495 : i32
    %152 = tpu.dynamic_rotate %82 by %c495_i32_119 dim 1 : vector<8x512xf32>, i32 -> vector<8x512xf32>
    %c8_120 = arith.constant 8 : index
    %c0_121 = arith.constant 0 : index
    %c0_122 = arith.constant 0 : index
    %153 = vector.load %arg3[%c8_120, %c0_121, %c0_122] : memref<9x1x512xf32, #tpu.memory_space<vmem>>, vector<1x1x512xf32>
    %154 = vector.shape_cast %153 : vector<1x1x512xf32> to vector<1x512xf32>
    %155 = vector.broadcast %154 : vector<1x512xf32> to vector<8x512xf32>
    %156 = arith.mulf %152, %155 : vector<8x512xf32>
    %c8_123 = arith.constant 8 : index
    %c0_124 = arith.constant 0 : index
    %c0_125 = arith.constant 0 : index
    %157 = vector.load %arg6[%c8_123, %c0_124, %c0_125] : memref<9x8x8xf32, #tpu.memory_space<vmem>>, vector<1x8x8xf32>
    %158 = vector.shape_cast %157 : vector<1x8x8xf32> to vector<8x8xf32>
    %cst_126 = arith.constant dense<0.000000e+00> : vector<8x512xf32>
    %159 = tpu.matmul %158, %156, %cst_126 {dimension_numbers = #tpu.dot_dimension_numbers<[1], [0], [0], [1], [0, 0, 1, 1], [], []>} : vector<8x8xf32>, vector<8x512xf32>, vector<8x512xf32> -> vector<8x512xf32>
    %160 = arith.addf %151, %159 : vector<8x512xf32>
    %161 = vector.extract_strided_slice %160 {offsets = [0, 0], sizes = [4, 512], strides = [1, 1]} : vector<8x512xf32> to vector<4x512xf32>
    %162 = arith.mulf %0, %161 : vector<4x512xf32>
    %163 = vector.extract_strided_slice %160 {offsets = [4, 0], sizes = [4, 512], strides = [1, 1]} : vector<8x512xf32> to vector<4x512xf32>
    %164 = arith.addf %162, %163 : vector<4x512xf32>
    %cst_127 = arith.constant dense<0.000000e+00> : vector<8x512xf32>
    %165 = tpu.matmul %85, %164, %cst_127 {dimension_numbers = #tpu.dot_dimension_numbers<[1], [0], [0], [1], [0, 0, 1, 1], [], []>} : vector<8x4xf32>, vector<4x512xf32>, vector<8x512xf32> -> vector<8x512xf32>
    %c4_128 = arith.constant 4 : index
    %c0_129 = arith.constant 0 : index
    %c0_130 = arith.constant 0 : index
    %166 = vector.load %arg7[%c4_128, %c0_129, %c0_130] : memref<9x8x8xf32, #tpu.memory_space<vmem>>, vector<1x8x8xf32>
    %167 = vector.shape_cast %166 : vector<1x8x8xf32> to vector<8x8xf32>
    %cst_131 = arith.constant dense<0.000000e+00> : vector<8x512xf32>
    %168 = tpu.matmul %167, %83, %cst_131 {dimension_numbers = #tpu.dot_dimension_numbers<[1], [0], [0], [1], [0, 0, 1, 1], [], []>} : vector<8x8xf32>, vector<8x512xf32>, vector<8x512xf32> -> vector<8x512xf32>
    %c17_i32_132 = arith.constant 17 : i32
    %169 = tpu.dynamic_rotate %83 by %c17_i32_132 dim 1 : vector<8x512xf32>, i32 -> vector<8x512xf32>
    %c0_133 = arith.constant 0 : index
    %c0_134 = arith.constant 0 : index
    %c0_135 = arith.constant 0 : index
    %170 = vector.load %arg3[%c0_133, %c0_134, %c0_135] : memref<9x1x512xf32, #tpu.memory_space<vmem>>, vector<1x1x512xf32>
    %171 = vector.shape_cast %170 : vector<1x1x512xf32> to vector<1x512xf32>
    %172 = vector.broadcast %171 : vector<1x512xf32> to vector<8x512xf32>
    %173 = arith.mulf %169, %172 : vector<8x512xf32>
    %c0_136 = arith.constant 0 : index
    %c0_137 = arith.constant 0 : index
    %c0_138 = arith.constant 0 : index
    %174 = vector.load %arg7[%c0_136, %c0_137, %c0_138] : memref<9x8x8xf32, #tpu.memory_space<vmem>>, vector<1x8x8xf32>
    %175 = vector.shape_cast %174 : vector<1x8x8xf32> to vector<8x8xf32>
    %cst_139 = arith.constant dense<0.000000e+00> : vector<8x512xf32>
    %176 = tpu.matmul %175, %173, %cst_139 {dimension_numbers = #tpu.dot_dimension_numbers<[1], [0], [0], [1], [0, 0, 1, 1], [], []>} : vector<8x8xf32>, vector<8x512xf32>, vector<8x512xf32> -> vector<8x512xf32>
    %177 = arith.addf %168, %176 : vector<8x512xf32>
    %c16_i32_140 = arith.constant 16 : i32
    %178 = tpu.dynamic_rotate %83 by %c16_i32_140 dim 1 : vector<8x512xf32>, i32 -> vector<8x512xf32>
    %c1_141 = arith.constant 1 : index
    %c0_142 = arith.constant 0 : index
    %c0_143 = arith.constant 0 : index
    %179 = vector.load %arg3[%c1_141, %c0_142, %c0_143] : memref<9x1x512xf32, #tpu.memory_space<vmem>>, vector<1x1x512xf32>
    %180 = vector.shape_cast %179 : vector<1x1x512xf32> to vector<1x512xf32>
    %181 = vector.broadcast %180 : vector<1x512xf32> to vector<8x512xf32>
    %182 = arith.mulf %178, %181 : vector<8x512xf32>
    %c1_144 = arith.constant 1 : index
    %c0_145 = arith.constant 0 : index
    %c0_146 = arith.constant 0 : index
    %183 = vector.load %arg7[%c1_144, %c0_145, %c0_146] : memref<9x8x8xf32, #tpu.memory_space<vmem>>, vector<1x8x8xf32>
    %184 = vector.shape_cast %183 : vector<1x8x8xf32> to vector<8x8xf32>
    %cst_147 = arith.constant dense<0.000000e+00> : vector<8x512xf32>
    %185 = tpu.matmul %184, %182, %cst_147 {dimension_numbers = #tpu.dot_dimension_numbers<[1], [0], [0], [1], [0, 0, 1, 1], [], []>} : vector<8x8xf32>, vector<8x512xf32>, vector<8x512xf32> -> vector<8x512xf32>
    %186 = arith.addf %177, %185 : vector<8x512xf32>
    %c15_i32_148 = arith.constant 15 : i32
    %187 = tpu.dynamic_rotate %83 by %c15_i32_148 dim 1 : vector<8x512xf32>, i32 -> vector<8x512xf32>
    %c2_149 = arith.constant 2 : index
    %c0_150 = arith.constant 0 : index
    %c0_151 = arith.constant 0 : index
    %188 = vector.load %arg3[%c2_149, %c0_150, %c0_151] : memref<9x1x512xf32, #tpu.memory_space<vmem>>, vector<1x1x512xf32>
    %189 = vector.shape_cast %188 : vector<1x1x512xf32> to vector<1x512xf32>
    %190 = vector.broadcast %189 : vector<1x512xf32> to vector<8x512xf32>
    %191 = arith.mulf %187, %190 : vector<8x512xf32>
    %c2_152 = arith.constant 2 : index
    %c0_153 = arith.constant 0 : index
    %c0_154 = arith.constant 0 : index
    %192 = vector.load %arg7[%c2_152, %c0_153, %c0_154] : memref<9x8x8xf32, #tpu.memory_space<vmem>>, vector<1x8x8xf32>
    %193 = vector.shape_cast %192 : vector<1x8x8xf32> to vector<8x8xf32>
    %cst_155 = arith.constant dense<0.000000e+00> : vector<8x512xf32>
    %194 = tpu.matmul %193, %191, %cst_155 {dimension_numbers = #tpu.dot_dimension_numbers<[1], [0], [0], [1], [0, 0, 1, 1], [], []>} : vector<8x8xf32>, vector<8x512xf32>, vector<8x512xf32> -> vector<8x512xf32>
    %195 = arith.addf %186, %194 : vector<8x512xf32>
    %c1_i32_156 = arith.constant 1 : i32
    %196 = tpu.dynamic_rotate %83 by %c1_i32_156 dim 1 : vector<8x512xf32>, i32 -> vector<8x512xf32>
    %c3_157 = arith.constant 3 : index
    %c0_158 = arith.constant 0 : index
    %c0_159 = arith.constant 0 : index
    %197 = vector.load %arg3[%c3_157, %c0_158, %c0_159] : memref<9x1x512xf32, #tpu.memory_space<vmem>>, vector<1x1x512xf32>
    %198 = vector.shape_cast %197 : vector<1x1x512xf32> to vector<1x512xf32>
    %199 = vector.broadcast %198 : vector<1x512xf32> to vector<8x512xf32>
    %200 = arith.mulf %196, %199 : vector<8x512xf32>
    %c3_160 = arith.constant 3 : index
    %c0_161 = arith.constant 0 : index
    %c0_162 = arith.constant 0 : index
    %201 = vector.load %arg7[%c3_160, %c0_161, %c0_162] : memref<9x8x8xf32, #tpu.memory_space<vmem>>, vector<1x8x8xf32>
    %202 = vector.shape_cast %201 : vector<1x8x8xf32> to vector<8x8xf32>
    %cst_163 = arith.constant dense<0.000000e+00> : vector<8x512xf32>
    %203 = tpu.matmul %202, %200, %cst_163 {dimension_numbers = #tpu.dot_dimension_numbers<[1], [0], [0], [1], [0, 0, 1, 1], [], []>} : vector<8x8xf32>, vector<8x512xf32>, vector<8x512xf32> -> vector<8x512xf32>
    %204 = arith.addf %195, %203 : vector<8x512xf32>
    %c511_i32_164 = arith.constant 511 : i32
    %205 = tpu.dynamic_rotate %83 by %c511_i32_164 dim 1 : vector<8x512xf32>, i32 -> vector<8x512xf32>
    %c5_165 = arith.constant 5 : index
    %c0_166 = arith.constant 0 : index
    %c0_167 = arith.constant 0 : index
    %206 = vector.load %arg3[%c5_165, %c0_166, %c0_167] : memref<9x1x512xf32, #tpu.memory_space<vmem>>, vector<1x1x512xf32>
    %207 = vector.shape_cast %206 : vector<1x1x512xf32> to vector<1x512xf32>
    %208 = vector.broadcast %207 : vector<1x512xf32> to vector<8x512xf32>
    %209 = arith.mulf %205, %208 : vector<8x512xf32>
    %c5_168 = arith.constant 5 : index
    %c0_169 = arith.constant 0 : index
    %c0_170 = arith.constant 0 : index
    %210 = vector.load %arg7[%c5_168, %c0_169, %c0_170] : memref<9x8x8xf32, #tpu.memory_space<vmem>>, vector<1x8x8xf32>
    %211 = vector.shape_cast %210 : vector<1x8x8xf32> to vector<8x8xf32>
    %cst_171 = arith.constant dense<0.000000e+00> : vector<8x512xf32>
    %212 = tpu.matmul %211, %209, %cst_171 {dimension_numbers = #tpu.dot_dimension_numbers<[1], [0], [0], [1], [0, 0, 1, 1], [], []>} : vector<8x8xf32>, vector<8x512xf32>, vector<8x512xf32> -> vector<8x512xf32>
    %213 = arith.addf %204, %212 : vector<8x512xf32>
    %c497_i32_172 = arith.constant 497 : i32
    %214 = tpu.dynamic_rotate %83 by %c497_i32_172 dim 1 : vector<8x512xf32>, i32 -> vector<8x512xf32>
    %c6_173 = arith.constant 6 : index
    %c0_174 = arith.constant 0 : index
    %c0_175 = arith.constant 0 : index
    %215 = vector.load %arg3[%c6_173, %c0_174, %c0_175] : memref<9x1x512xf32, #tpu.memory_space<vmem>>, vector<1x1x512xf32>
    %216 = vector.shape_cast %215 : vector<1x1x512xf32> to vector<1x512xf32>
    %217 = vector.broadcast %216 : vector<1x512xf32> to vector<8x512xf32>
    %218 = arith.mulf %214, %217 : vector<8x512xf32>
    %c6_176 = arith.constant 6 : index
    %c0_177 = arith.constant 0 : index
    %c0_178 = arith.constant 0 : index
    %219 = vector.load %arg7[%c6_176, %c0_177, %c0_178] : memref<9x8x8xf32, #tpu.memory_space<vmem>>, vector<1x8x8xf32>
    %220 = vector.shape_cast %219 : vector<1x8x8xf32> to vector<8x8xf32>
    %cst_179 = arith.constant dense<0.000000e+00> : vector<8x512xf32>
    %221 = tpu.matmul %220, %218, %cst_179 {dimension_numbers = #tpu.dot_dimension_numbers<[1], [0], [0], [1], [0, 0, 1, 1], [], []>} : vector<8x8xf32>, vector<8x512xf32>, vector<8x512xf32> -> vector<8x512xf32>
    %222 = arith.addf %213, %221 : vector<8x512xf32>
    %c496_i32_180 = arith.constant 496 : i32
    %223 = tpu.dynamic_rotate %83 by %c496_i32_180 dim 1 : vector<8x512xf32>, i32 -> vector<8x512xf32>
    %c7_181 = arith.constant 7 : index
    %c0_182 = arith.constant 0 : index
    %c0_183 = arith.constant 0 : index
    %224 = vector.load %arg3[%c7_181, %c0_182, %c0_183] : memref<9x1x512xf32, #tpu.memory_space<vmem>>, vector<1x1x512xf32>
    %225 = vector.shape_cast %224 : vector<1x1x512xf32> to vector<1x512xf32>
    %226 = vector.broadcast %225 : vector<1x512xf32> to vector<8x512xf32>
    %227 = arith.mulf %223, %226 : vector<8x512xf32>
    %c7_184 = arith.constant 7 : index
    %c0_185 = arith.constant 0 : index
    %c0_186 = arith.constant 0 : index
    %228 = vector.load %arg7[%c7_184, %c0_185, %c0_186] : memref<9x8x8xf32, #tpu.memory_space<vmem>>, vector<1x8x8xf32>
    %229 = vector.shape_cast %228 : vector<1x8x8xf32> to vector<8x8xf32>
    %cst_187 = arith.constant dense<0.000000e+00> : vector<8x512xf32>
    %230 = tpu.matmul %229, %227, %cst_187 {dimension_numbers = #tpu.dot_dimension_numbers<[1], [0], [0], [1], [0, 0, 1, 1], [], []>} : vector<8x8xf32>, vector<8x512xf32>, vector<8x512xf32> -> vector<8x512xf32>
    %231 = arith.addf %222, %230 : vector<8x512xf32>
    %c495_i32_188 = arith.constant 495 : i32
    %232 = tpu.dynamic_rotate %83 by %c495_i32_188 dim 1 : vector<8x512xf32>, i32 -> vector<8x512xf32>
    %c8_189 = arith.constant 8 : index
    %c0_190 = arith.constant 0 : index
    %c0_191 = arith.constant 0 : index
    %233 = vector.load %arg3[%c8_189, %c0_190, %c0_191] : memref<9x1x512xf32, #tpu.memory_space<vmem>>, vector<1x1x512xf32>
    %234 = vector.shape_cast %233 : vector<1x1x512xf32> to vector<1x512xf32>
    %235 = vector.broadcast %234 : vector<1x512xf32> to vector<8x512xf32>
    %236 = arith.mulf %232, %235 : vector<8x512xf32>
    %c8_192 = arith.constant 8 : index
    %c0_193 = arith.constant 0 : index
    %c0_194 = arith.constant 0 : index
    %237 = vector.load %arg7[%c8_192, %c0_193, %c0_194] : memref<9x8x8xf32, #tpu.memory_space<vmem>>, vector<1x8x8xf32>
    %238 = vector.shape_cast %237 : vector<1x8x8xf32> to vector<8x8xf32>
    %cst_195 = arith.constant dense<0.000000e+00> : vector<8x512xf32>
    %239 = tpu.matmul %238, %236, %cst_195 {dimension_numbers = #tpu.dot_dimension_numbers<[1], [0], [0], [1], [0, 0, 1, 1], [], []>} : vector<8x8xf32>, vector<8x512xf32>, vector<8x512xf32> -> vector<8x512xf32>
    %240 = arith.addf %231, %239 : vector<8x512xf32>
    %241 = vector.extract_strided_slice %240 {offsets = [0, 0], sizes = [4, 512], strides = [1, 1]} : vector<8x512xf32> to vector<4x512xf32>
    %242 = arith.mulf %0, %241 : vector<4x512xf32>
    %243 = vector.extract_strided_slice %240 {offsets = [4, 0], sizes = [4, 512], strides = [1, 1]} : vector<8x512xf32> to vector<4x512xf32>
    %244 = arith.addf %242, %243 : vector<4x512xf32>
    %cst_196 = arith.constant 2.000000e-01 : f32
    %245 = vector.broadcast %cst_196 : f32 to vector<4x512xf32>
    %246 = arith.mulf %245, %244 : vector<4x512xf32>
    %247 = arith.maximumf %244, %246 : vector<4x512xf32>
    %c4_197 = arith.constant 4 : index
    %c0_198 = arith.constant 0 : index
    %c0_199 = arith.constant 0 : index
    %248 = vector.load %arg9[%c4_197, %c0_198, %c0_199] : memref<9x4x4xf32, #tpu.memory_space<vmem>>, vector<1x4x4xf32>
    %249 = vector.shape_cast %248 : vector<1x4x4xf32> to vector<4x4xf32>
    %cst_200 = arith.constant dense<0.000000e+00> : vector<4x512xf32>
    %250 = tpu.matmul %249, %247, %cst_200 {dimension_numbers = #tpu.dot_dimension_numbers<[1], [0], [0], [1], [0, 0, 1, 1], [], []>} : vector<4x4xf32>, vector<4x512xf32>, vector<4x512xf32> -> vector<4x512xf32>
    %c17_i32_201 = arith.constant 17 : i32
    %251 = tpu.dynamic_rotate %247 by %c17_i32_201 dim 1 : vector<4x512xf32>, i32 -> vector<4x512xf32>
    %c0_202 = arith.constant 0 : index
    %c0_203 = arith.constant 0 : index
    %c0_204 = arith.constant 0 : index
    %252 = vector.load %arg3[%c0_202, %c0_203, %c0_204] : memref<9x1x512xf32, #tpu.memory_space<vmem>>, vector<1x1x512xf32>
    %253 = vector.shape_cast %252 : vector<1x1x512xf32> to vector<1x512xf32>
    %254 = vector.broadcast %253 : vector<1x512xf32> to vector<4x512xf32>
    %255 = arith.mulf %251, %254 : vector<4x512xf32>
    %c0_205 = arith.constant 0 : index
    %c0_206 = arith.constant 0 : index
    %c0_207 = arith.constant 0 : index
    %256 = vector.load %arg9[%c0_205, %c0_206, %c0_207] : memref<9x4x4xf32, #tpu.memory_space<vmem>>, vector<1x4x4xf32>
    %257 = vector.shape_cast %256 : vector<1x4x4xf32> to vector<4x4xf32>
    %cst_208 = arith.constant dense<0.000000e+00> : vector<4x512xf32>
    %258 = tpu.matmul %257, %255, %cst_208 {dimension_numbers = #tpu.dot_dimension_numbers<[1], [0], [0], [1], [0, 0, 1, 1], [], []>} : vector<4x4xf32>, vector<4x512xf32>, vector<4x512xf32> -> vector<4x512xf32>
    %259 = arith.addf %250, %258 : vector<4x512xf32>
    %c16_i32_209 = arith.constant 16 : i32
    %260 = tpu.dynamic_rotate %247 by %c16_i32_209 dim 1 : vector<4x512xf32>, i32 -> vector<4x512xf32>
    %c1_210 = arith.constant 1 : index
    %c0_211 = arith.constant 0 : index
    %c0_212 = arith.constant 0 : index
    %261 = vector.load %arg3[%c1_210, %c0_211, %c0_212] : memref<9x1x512xf32, #tpu.memory_space<vmem>>, vector<1x1x512xf32>
    %262 = vector.shape_cast %261 : vector<1x1x512xf32> to vector<1x512xf32>
    %263 = vector.broadcast %262 : vector<1x512xf32> to vector<4x512xf32>
    %264 = arith.mulf %260, %263 : vector<4x512xf32>
    %c1_213 = arith.constant 1 : index
    %c0_214 = arith.constant 0 : index
    %c0_215 = arith.constant 0 : index
    %265 = vector.load %arg9[%c1_213, %c0_214, %c0_215] : memref<9x4x4xf32, #tpu.memory_space<vmem>>, vector<1x4x4xf32>
    %266 = vector.shape_cast %265 : vector<1x4x4xf32> to vector<4x4xf32>
    %cst_216 = arith.constant dense<0.000000e+00> : vector<4x512xf32>
    %267 = tpu.matmul %266, %264, %cst_216 {dimension_numbers = #tpu.dot_dimension_numbers<[1], [0], [0], [1], [0, 0, 1, 1], [], []>} : vector<4x4xf32>, vector<4x512xf32>, vector<4x512xf32> -> vector<4x512xf32>
    %268 = arith.addf %259, %267 : vector<4x512xf32>
    %c15_i32_217 = arith.constant 15 : i32
    %269 = tpu.dynamic_rotate %247 by %c15_i32_217 dim 1 : vector<4x512xf32>, i32 -> vector<4x512xf32>
    %c2_218 = arith.constant 2 : index
    %c0_219 = arith.constant 0 : index
    %c0_220 = arith.constant 0 : index
    %270 = vector.load %arg3[%c2_218, %c0_219, %c0_220] : memref<9x1x512xf32, #tpu.memory_space<vmem>>, vector<1x1x512xf32>
    %271 = vector.shape_cast %270 : vector<1x1x512xf32> to vector<1x512xf32>
    %272 = vector.broadcast %271 : vector<1x512xf32> to vector<4x512xf32>
    %273 = arith.mulf %269, %272 : vector<4x512xf32>
    %c2_221 = arith.constant 2 : index
    %c0_222 = arith.constant 0 : index
    %c0_223 = arith.constant 0 : index
    %274 = vector.load %arg9[%c2_221, %c0_222, %c0_223] : memref<9x4x4xf32, #tpu.memory_space<vmem>>, vector<1x4x4xf32>
    %275 = vector.shape_cast %274 : vector<1x4x4xf32> to vector<4x4xf32>
    %cst_224 = arith.constant dense<0.000000e+00> : vector<4x512xf32>
    %276 = tpu.matmul %275, %273, %cst_224 {dimension_numbers = #tpu.dot_dimension_numbers<[1], [0], [0], [1], [0, 0, 1, 1], [], []>} : vector<4x4xf32>, vector<4x512xf32>, vector<4x512xf32> -> vector<4x512xf32>
    %277 = arith.addf %268, %276 : vector<4x512xf32>
    %c1_i32_225 = arith.constant 1 : i32
    %278 = tpu.dynamic_rotate %247 by %c1_i32_225 dim 1 : vector<4x512xf32>, i32 -> vector<4x512xf32>
    %c3_226 = arith.constant 3 : index
    %c0_227 = arith.constant 0 : index
    %c0_228 = arith.constant 0 : index
    %279 = vector.load %arg3[%c3_226, %c0_227, %c0_228] : memref<9x1x512xf32, #tpu.memory_space<vmem>>, vector<1x1x512xf32>
    %280 = vector.shape_cast %279 : vector<1x1x512xf32> to vector<1x512xf32>
    %281 = vector.broadcast %280 : vector<1x512xf32> to vector<4x512xf32>
    %282 = arith.mulf %278, %281 : vector<4x512xf32>
    %c3_229 = arith.constant 3 : index
    %c0_230 = arith.constant 0 : index
    %c0_231 = arith.constant 0 : index
    %283 = vector.load %arg9[%c3_229, %c0_230, %c0_231] : memref<9x4x4xf32, #tpu.memory_space<vmem>>, vector<1x4x4xf32>
    %284 = vector.shape_cast %283 : vector<1x4x4xf32> to vector<4x4xf32>
    %cst_232 = arith.constant dense<0.000000e+00> : vector<4x512xf32>
    %285 = tpu.matmul %284, %282, %cst_232 {dimension_numbers = #tpu.dot_dimension_numbers<[1], [0], [0], [1], [0, 0, 1, 1], [], []>} : vector<4x4xf32>, vector<4x512xf32>, vector<4x512xf32> -> vector<4x512xf32>
    %286 = arith.addf %277, %285 : vector<4x512xf32>
    %c511_i32_233 = arith.constant 511 : i32
    %287 = tpu.dynamic_rotate %247 by %c511_i32_233 dim 1 : vector<4x512xf32>, i32 -> vector<4x512xf32>
    %c5_234 = arith.constant 5 : index
    %c0_235 = arith.constant 0 : index
    %c0_236 = arith.constant 0 : index
    %288 = vector.load %arg3[%c5_234, %c0_235, %c0_236] : memref<9x1x512xf32, #tpu.memory_space<vmem>>, vector<1x1x512xf32>
    %289 = vector.shape_cast %288 : vector<1x1x512xf32> to vector<1x512xf32>
    %290 = vector.broadcast %289 : vector<1x512xf32> to vector<4x512xf32>
    %291 = arith.mulf %287, %290 : vector<4x512xf32>
    %c5_237 = arith.constant 5 : index
    %c0_238 = arith.constant 0 : index
    %c0_239 = arith.constant 0 : index
    %292 = vector.load %arg9[%c5_237, %c0_238, %c0_239] : memref<9x4x4xf32, #tpu.memory_space<vmem>>, vector<1x4x4xf32>
    %293 = vector.shape_cast %292 : vector<1x4x4xf32> to vector<4x4xf32>
    %cst_240 = arith.constant dense<0.000000e+00> : vector<4x512xf32>
    %294 = tpu.matmul %293, %291, %cst_240 {dimension_numbers = #tpu.dot_dimension_numbers<[1], [0], [0], [1], [0, 0, 1, 1], [], []>} : vector<4x4xf32>, vector<4x512xf32>, vector<4x512xf32> -> vector<4x512xf32>
    %295 = arith.addf %286, %294 : vector<4x512xf32>
    %c497_i32_241 = arith.constant 497 : i32
    %296 = tpu.dynamic_rotate %247 by %c497_i32_241 dim 1 : vector<4x512xf32>, i32 -> vector<4x512xf32>
    %c6_242 = arith.constant 6 : index
    %c0_243 = arith.constant 0 : index
    %c0_244 = arith.constant 0 : index
    %297 = vector.load %arg3[%c6_242, %c0_243, %c0_244] : memref<9x1x512xf32, #tpu.memory_space<vmem>>, vector<1x1x512xf32>
    %298 = vector.shape_cast %297 : vector<1x1x512xf32> to vector<1x512xf32>
    %299 = vector.broadcast %298 : vector<1x512xf32> to vector<4x512xf32>
    %300 = arith.mulf %296, %299 : vector<4x512xf32>
    %c6_245 = arith.constant 6 : index
    %c0_246 = arith.constant 0 : index
    %c0_247 = arith.constant 0 : index
    %301 = vector.load %arg9[%c6_245, %c0_246, %c0_247] : memref<9x4x4xf32, #tpu.memory_space<vmem>>, vector<1x4x4xf32>
    %302 = vector.shape_cast %301 : vector<1x4x4xf32> to vector<4x4xf32>
    %cst_248 = arith.constant dense<0.000000e+00> : vector<4x512xf32>
    %303 = tpu.matmul %302, %300, %cst_248 {dimension_numbers = #tpu.dot_dimension_numbers<[1], [0], [0], [1], [0, 0, 1, 1], [], []>} : vector<4x4xf32>, vector<4x512xf32>, vector<4x512xf32> -> vector<4x512xf32>
    %304 = arith.addf %295, %303 : vector<4x512xf32>
    %c496_i32_249 = arith.constant 496 : i32
    %305 = tpu.dynamic_rotate %247 by %c496_i32_249 dim 1 : vector<4x512xf32>, i32 -> vector<4x512xf32>
    %c7_250 = arith.constant 7 : index
    %c0_251 = arith.constant 0 : index
    %c0_252 = arith.constant 0 : index
    %306 = vector.load %arg3[%c7_250, %c0_251, %c0_252] : memref<9x1x512xf32, #tpu.memory_space<vmem>>, vector<1x1x512xf32>
    %307 = vector.shape_cast %306 : vector<1x1x512xf32> to vector<1x512xf32>
    %308 = vector.broadcast %307 : vector<1x512xf32> to vector<4x512xf32>
    %309 = arith.mulf %305, %308 : vector<4x512xf32>
    %c7_253 = arith.constant 7 : index
    %c0_254 = arith.constant 0 : index
    %c0_255 = arith.constant 0 : index
    %310 = vector.load %arg9[%c7_253, %c0_254, %c0_255] : memref<9x4x4xf32, #tpu.memory_space<vmem>>, vector<1x4x4xf32>
    %311 = vector.shape_cast %310 : vector<1x4x4xf32> to vector<4x4xf32>
    %cst_256 = arith.constant dense<0.000000e+00> : vector<4x512xf32>
    %312 = tpu.matmul %311, %309, %cst_256 {dimension_numbers = #tpu.dot_dimension_numbers<[1], [0], [0], [1], [0, 0, 1, 1], [], []>} : vector<4x4xf32>, vector<4x512xf32>, vector<4x512xf32> -> vector<4x512xf32>
    %313 = arith.addf %304, %312 : vector<4x512xf32>
    %c495_i32_257 = arith.constant 495 : i32
    %314 = tpu.dynamic_rotate %247 by %c495_i32_257 dim 1 : vector<4x512xf32>, i32 -> vector<4x512xf32>
    %c8_258 = arith.constant 8 : index
    %c0_259 = arith.constant 0 : index
    %c0_260 = arith.constant 0 : index
    %315 = vector.load %arg3[%c8_258, %c0_259, %c0_260] : memref<9x1x512xf32, #tpu.memory_space<vmem>>, vector<1x1x512xf32>
    %316 = vector.shape_cast %315 : vector<1x1x512xf32> to vector<1x512xf32>
    %317 = vector.broadcast %316 : vector<1x512xf32> to vector<4x512xf32>
    %318 = arith.mulf %314, %317 : vector<4x512xf32>
    %c8_261 = arith.constant 8 : index
    %c0_262 = arith.constant 0 : index
    %c0_263 = arith.constant 0 : index
    %319 = vector.load %arg9[%c8_261, %c0_262, %c0_263] : memref<9x4x4xf32, #tpu.memory_space<vmem>>, vector<1x4x4xf32>
    %320 = vector.shape_cast %319 : vector<1x4x4xf32> to vector<4x4xf32>
    %cst_264 = arith.constant dense<0.000000e+00> : vector<4x512xf32>
    %321 = tpu.matmul %320, %318, %cst_264 {dimension_numbers = #tpu.dot_dimension_numbers<[1], [0], [0], [1], [0, 0, 1, 1], [], []>} : vector<4x4xf32>, vector<4x512xf32>, vector<4x512xf32> -> vector<4x512xf32>
    %322 = arith.addf %313, %321 : vector<4x512xf32>
    %c0_265 = arith.constant 0 : index
    %c0_266 = arith.constant 0 : index
    %323 = vector.load %arg10[%c0_265, %c0_266] : memref<4x1xf32, #tpu.memory_space<vmem>>, vector<4x1xf32>
    %324 = vector.broadcast %323 : vector<4x1xf32> to vector<4x512xf32>
    %325 = arith.addf %322, %324 : vector<4x512xf32>
    %c4_267 = arith.constant 4 : index
    %c0_268 = arith.constant 0 : index
    %c0_269 = arith.constant 0 : index
    %326 = vector.load %arg8[%c4_267, %c0_268, %c0_269] : memref<9x8x8xf32, #tpu.memory_space<vmem>>, vector<1x8x8xf32>
    %327 = vector.shape_cast %326 : vector<1x8x8xf32> to vector<8x8xf32>
    %cst_270 = arith.constant dense<0.000000e+00> : vector<8x512xf32>
    %328 = tpu.matmul %327, %84, %cst_270 {dimension_numbers = #tpu.dot_dimension_numbers<[1], [0], [0], [1], [0, 0, 1, 1], [], []>} : vector<8x8xf32>, vector<8x512xf32>, vector<8x512xf32> -> vector<8x512xf32>
    %c17_i32_271 = arith.constant 17 : i32
    %329 = tpu.dynamic_rotate %84 by %c17_i32_271 dim 1 : vector<8x512xf32>, i32 -> vector<8x512xf32>
    %c0_272 = arith.constant 0 : index
    %c0_273 = arith.constant 0 : index
    %c0_274 = arith.constant 0 : index
    %330 = vector.load %arg3[%c0_272, %c0_273, %c0_274] : memref<9x1x512xf32, #tpu.memory_space<vmem>>, vector<1x1x512xf32>
    %331 = vector.shape_cast %330 : vector<1x1x512xf32> to vector<1x512xf32>
    %332 = vector.broadcast %331 : vector<1x512xf32> to vector<8x512xf32>
    %333 = arith.mulf %329, %332 : vector<8x512xf32>
    %c0_275 = arith.constant 0 : index
    %c0_276 = arith.constant 0 : index
    %c0_277 = arith.constant 0 : index
    %334 = vector.load %arg8[%c0_275, %c0_276, %c0_277] : memref<9x8x8xf32, #tpu.memory_space<vmem>>, vector<1x8x8xf32>
    %335 = vector.shape_cast %334 : vector<1x8x8xf32> to vector<8x8xf32>
    %cst_278 = arith.constant dense<0.000000e+00> : vector<8x512xf32>
    %336 = tpu.matmul %335, %333, %cst_278 {dimension_numbers = #tpu.dot_dimension_numbers<[1], [0], [0], [1], [0, 0, 1, 1], [], []>} : vector<8x8xf32>, vector<8x512xf32>, vector<8x512xf32> -> vector<8x512xf32>
    %337 = arith.addf %328, %336 : vector<8x512xf32>
    %c16_i32_279 = arith.constant 16 : i32
    %338 = tpu.dynamic_rotate %84 by %c16_i32_279 dim 1 : vector<8x512xf32>, i32 -> vector<8x512xf32>
    %c1_280 = arith.constant 1 : index
    %c0_281 = arith.constant 0 : index
    %c0_282 = arith.constant 0 : index
    %339 = vector.load %arg3[%c1_280, %c0_281, %c0_282] : memref<9x1x512xf32, #tpu.memory_space<vmem>>, vector<1x1x512xf32>
    %340 = vector.shape_cast %339 : vector<1x1x512xf32> to vector<1x512xf32>
    %341 = vector.broadcast %340 : vector<1x512xf32> to vector<8x512xf32>
    %342 = arith.mulf %338, %341 : vector<8x512xf32>
    %c1_283 = arith.constant 1 : index
    %c0_284 = arith.constant 0 : index
    %c0_285 = arith.constant 0 : index
    %343 = vector.load %arg8[%c1_283, %c0_284, %c0_285] : memref<9x8x8xf32, #tpu.memory_space<vmem>>, vector<1x8x8xf32>
    %344 = vector.shape_cast %343 : vector<1x8x8xf32> to vector<8x8xf32>
    %cst_286 = arith.constant dense<0.000000e+00> : vector<8x512xf32>
    %345 = tpu.matmul %344, %342, %cst_286 {dimension_numbers = #tpu.dot_dimension_numbers<[1], [0], [0], [1], [0, 0, 1, 1], [], []>} : vector<8x8xf32>, vector<8x512xf32>, vector<8x512xf32> -> vector<8x512xf32>
    %346 = arith.addf %337, %345 : vector<8x512xf32>
    %c15_i32_287 = arith.constant 15 : i32
    %347 = tpu.dynamic_rotate %84 by %c15_i32_287 dim 1 : vector<8x512xf32>, i32 -> vector<8x512xf32>
    %c2_288 = arith.constant 2 : index
    %c0_289 = arith.constant 0 : index
    %c0_290 = arith.constant 0 : index
    %348 = vector.load %arg3[%c2_288, %c0_289, %c0_290] : memref<9x1x512xf32, #tpu.memory_space<vmem>>, vector<1x1x512xf32>
    %349 = vector.shape_cast %348 : vector<1x1x512xf32> to vector<1x512xf32>
    %350 = vector.broadcast %349 : vector<1x512xf32> to vector<8x512xf32>
    %351 = arith.mulf %347, %350 : vector<8x512xf32>
    %c2_291 = arith.constant 2 : index
    %c0_292 = arith.constant 0 : index
    %c0_293 = arith.constant 0 : index
    %352 = vector.load %arg8[%c2_291, %c0_292, %c0_293] : memref<9x8x8xf32, #tpu.memory_space<vmem>>, vector<1x8x8xf32>
    %353 = vector.shape_cast %352 : vector<1x8x8xf32> to vector<8x8xf32>
    %cst_294 = arith.constant dense<0.000000e+00> : vector<8x512xf32>
    %354 = tpu.matmul %353, %351, %cst_294 {dimension_numbers = #tpu.dot_dimension_numbers<[1], [0], [0], [1], [0, 0, 1, 1], [], []>} : vector<8x8xf32>, vector<8x512xf32>, vector<8x512xf32> -> vector<8x512xf32>
    %355 = arith.addf %346, %354 : vector<8x512xf32>
    %c1_i32_295 = arith.constant 1 : i32
    %356 = tpu.dynamic_rotate %84 by %c1_i32_295 dim 1 : vector<8x512xf32>, i32 -> vector<8x512xf32>
    %c3_296 = arith.constant 3 : index
    %c0_297 = arith.constant 0 : index
    %c0_298 = arith.constant 0 : index
    %357 = vector.load %arg3[%c3_296, %c0_297, %c0_298] : memref<9x1x512xf32, #tpu.memory_space<vmem>>, vector<1x1x512xf32>
    %358 = vector.shape_cast %357 : vector<1x1x512xf32> to vector<1x512xf32>
    %359 = vector.broadcast %358 : vector<1x512xf32> to vector<8x512xf32>
    %360 = arith.mulf %356, %359 : vector<8x512xf32>
    %c3_299 = arith.constant 3 : index
    %c0_300 = arith.constant 0 : index
    %c0_301 = arith.constant 0 : index
    %361 = vector.load %arg8[%c3_299, %c0_300, %c0_301] : memref<9x8x8xf32, #tpu.memory_space<vmem>>, vector<1x8x8xf32>
    %362 = vector.shape_cast %361 : vector<1x8x8xf32> to vector<8x8xf32>
    %cst_302 = arith.constant dense<0.000000e+00> : vector<8x512xf32>
    %363 = tpu.matmul %362, %360, %cst_302 {dimension_numbers = #tpu.dot_dimension_numbers<[1], [0], [0], [1], [0, 0, 1, 1], [], []>} : vector<8x8xf32>, vector<8x512xf32>, vector<8x512xf32> -> vector<8x512xf32>
    %364 = arith.addf %355, %363 : vector<8x512xf32>
    %c511_i32_303 = arith.constant 511 : i32
    %365 = tpu.dynamic_rotate %84 by %c511_i32_303 dim 1 : vector<8x512xf32>, i32 -> vector<8x512xf32>
    %c5_304 = arith.constant 5 : index
    %c0_305 = arith.constant 0 : index
    %c0_306 = arith.constant 0 : index
    %366 = vector.load %arg3[%c5_304, %c0_305, %c0_306] : memref<9x1x512xf32, #tpu.memory_space<vmem>>, vector<1x1x512xf32>
    %367 = vector.shape_cast %366 : vector<1x1x512xf32> to vector<1x512xf32>
    %368 = vector.broadcast %367 : vector<1x512xf32> to vector<8x512xf32>
    %369 = arith.mulf %365, %368 : vector<8x512xf32>
    %c5_307 = arith.constant 5 : index
    %c0_308 = arith.constant 0 : index
    %c0_309 = arith.constant 0 : index
    %370 = vector.load %arg8[%c5_307, %c0_308, %c0_309] : memref<9x8x8xf32, #tpu.memory_space<vmem>>, vector<1x8x8xf32>
    %371 = vector.shape_cast %370 : vector<1x8x8xf32> to vector<8x8xf32>
    %cst_310 = arith.constant dense<0.000000e+00> : vector<8x512xf32>
    %372 = tpu.matmul %371, %369, %cst_310 {dimension_numbers = #tpu.dot_dimension_numbers<[1], [0], [0], [1], [0, 0, 1, 1], [], []>} : vector<8x8xf32>, vector<8x512xf32>, vector<8x512xf32> -> vector<8x512xf32>
    %373 = arith.addf %364, %372 : vector<8x512xf32>
    %c497_i32_311 = arith.constant 497 : i32
    %374 = tpu.dynamic_rotate %84 by %c497_i32_311 dim 1 : vector<8x512xf32>, i32 -> vector<8x512xf32>
    %c6_312 = arith.constant 6 : index
    %c0_313 = arith.constant 0 : index
    %c0_314 = arith.constant 0 : index
    %375 = vector.load %arg3[%c6_312, %c0_313, %c0_314] : memref<9x1x512xf32, #tpu.memory_space<vmem>>, vector<1x1x512xf32>
    %376 = vector.shape_cast %375 : vector<1x1x512xf32> to vector<1x512xf32>
    %377 = vector.broadcast %376 : vector<1x512xf32> to vector<8x512xf32>
    %378 = arith.mulf %374, %377 : vector<8x512xf32>
    %c6_315 = arith.constant 6 : index
    %c0_316 = arith.constant 0 : index
    %c0_317 = arith.constant 0 : index
    %379 = vector.load %arg8[%c6_315, %c0_316, %c0_317] : memref<9x8x8xf32, #tpu.memory_space<vmem>>, vector<1x8x8xf32>
    %380 = vector.shape_cast %379 : vector<1x8x8xf32> to vector<8x8xf32>
    %cst_318 = arith.constant dense<0.000000e+00> : vector<8x512xf32>
    %381 = tpu.matmul %380, %378, %cst_318 {dimension_numbers = #tpu.dot_dimension_numbers<[1], [0], [0], [1], [0, 0, 1, 1], [], []>} : vector<8x8xf32>, vector<8x512xf32>, vector<8x512xf32> -> vector<8x512xf32>
    %382 = arith.addf %373, %381 : vector<8x512xf32>
    %c496_i32_319 = arith.constant 496 : i32
    %383 = tpu.dynamic_rotate %84 by %c496_i32_319 dim 1 : vector<8x512xf32>, i32 -> vector<8x512xf32>
    %c7_320 = arith.constant 7 : index
    %c0_321 = arith.constant 0 : index
    %c0_322 = arith.constant 0 : index
    %384 = vector.load %arg3[%c7_320, %c0_321, %c0_322] : memref<9x1x512xf32, #tpu.memory_space<vmem>>, vector<1x1x512xf32>
    %385 = vector.shape_cast %384 : vector<1x1x512xf32> to vector<1x512xf32>
    %386 = vector.broadcast %385 : vector<1x512xf32> to vector<8x512xf32>
    %387 = arith.mulf %383, %386 : vector<8x512xf32>
    %c7_323 = arith.constant 7 : index
    %c0_324 = arith.constant 0 : index
    %c0_325 = arith.constant 0 : index
    %388 = vector.load %arg8[%c7_323, %c0_324, %c0_325] : memref<9x8x8xf32, #tpu.memory_space<vmem>>, vector<1x8x8xf32>
    %389 = vector.shape_cast %388 : vector<1x8x8xf32> to vector<8x8xf32>
    %cst_326 = arith.constant dense<0.000000e+00> : vector<8x512xf32>
    %390 = tpu.matmul %389, %387, %cst_326 {dimension_numbers = #tpu.dot_dimension_numbers<[1], [0], [0], [1], [0, 0, 1, 1], [], []>} : vector<8x8xf32>, vector<8x512xf32>, vector<8x512xf32> -> vector<8x512xf32>
    %391 = arith.addf %382, %390 : vector<8x512xf32>
    %c495_i32_327 = arith.constant 495 : i32
    %392 = tpu.dynamic_rotate %84 by %c495_i32_327 dim 1 : vector<8x512xf32>, i32 -> vector<8x512xf32>
    %c8_328 = arith.constant 8 : index
    %c0_329 = arith.constant 0 : index
    %c0_330 = arith.constant 0 : index
    %393 = vector.load %arg3[%c8_328, %c0_329, %c0_330] : memref<9x1x512xf32, #tpu.memory_space<vmem>>, vector<1x1x512xf32>
    %394 = vector.shape_cast %393 : vector<1x1x512xf32> to vector<1x512xf32>
    %395 = vector.broadcast %394 : vector<1x512xf32> to vector<8x512xf32>
    %396 = arith.mulf %392, %395 : vector<8x512xf32>
    %c8_331 = arith.constant 8 : index
    %c0_332 = arith.constant 0 : index
    %c0_333 = arith.constant 0 : index
    %397 = vector.load %arg8[%c8_331, %c0_332, %c0_333] : memref<9x8x8xf32, #tpu.memory_space<vmem>>, vector<1x8x8xf32>
    %398 = vector.shape_cast %397 : vector<1x8x8xf32> to vector<8x8xf32>
    %cst_334 = arith.constant dense<0.000000e+00> : vector<8x512xf32>
    %399 = tpu.matmul %398, %396, %cst_334 {dimension_numbers = #tpu.dot_dimension_numbers<[1], [0], [0], [1], [0, 0, 1, 1], [], []>} : vector<8x8xf32>, vector<8x512xf32>, vector<8x512xf32> -> vector<8x512xf32>
    %400 = arith.addf %391, %399 : vector<8x512xf32>
    %401 = vector.extract_strided_slice %400 {offsets = [0, 0], sizes = [4, 512], strides = [1, 1]} : vector<8x512xf32> to vector<4x512xf32>
    %402 = arith.mulf %325, %401 : vector<4x512xf32>
    %403 = vector.extract_strided_slice %400 {offsets = [4, 0], sizes = [4, 512], strides = [1, 1]} : vector<8x512xf32> to vector<4x512xf32>
    %404 = arith.addf %402, %403 : vector<4x512xf32>
    %cst_335 = arith.constant 2.000000e-01 : f32
    %405 = vector.broadcast %cst_335 : f32 to vector<4x512xf32>
    %406 = arith.mulf %405, %404 : vector<4x512xf32>
    %407 = arith.maximumf %404, %406 : vector<4x512xf32>
    %c4_336 = arith.constant 4 : index
    %c0_337 = arith.constant 0 : index
    %c0_338 = arith.constant 0 : index
    %408 = vector.load %arg11[%c4_336, %c0_337, %c0_338] : memref<9x8x4xf32, #tpu.memory_space<vmem>>, vector<1x8x4xf32>
    %409 = vector.shape_cast %408 : vector<1x8x4xf32> to vector<8x4xf32>
    %cst_339 = arith.constant dense<0.000000e+00> : vector<8x512xf32>
    %410 = tpu.matmul %409, %407, %cst_339 {dimension_numbers = #tpu.dot_dimension_numbers<[1], [0], [0], [1], [0, 0, 1, 1], [], []>} : vector<8x4xf32>, vector<4x512xf32>, vector<8x512xf32> -> vector<8x512xf32>
    %c17_i32_340 = arith.constant 17 : i32
    %411 = tpu.dynamic_rotate %407 by %c17_i32_340 dim 1 : vector<4x512xf32>, i32 -> vector<4x512xf32>
    %c0_341 = arith.constant 0 : index
    %c0_342 = arith.constant 0 : index
    %c0_343 = arith.constant 0 : index
    %412 = vector.load %arg3[%c0_341, %c0_342, %c0_343] : memref<9x1x512xf32, #tpu.memory_space<vmem>>, vector<1x1x512xf32>
    %413 = vector.shape_cast %412 : vector<1x1x512xf32> to vector<1x512xf32>
    %414 = vector.broadcast %413 : vector<1x512xf32> to vector<4x512xf32>
    %415 = arith.mulf %411, %414 : vector<4x512xf32>
    %c0_344 = arith.constant 0 : index
    %c0_345 = arith.constant 0 : index
    %c0_346 = arith.constant 0 : index
    %416 = vector.load %arg11[%c0_344, %c0_345, %c0_346] : memref<9x8x4xf32, #tpu.memory_space<vmem>>, vector<1x8x4xf32>
    %417 = vector.shape_cast %416 : vector<1x8x4xf32> to vector<8x4xf32>
    %cst_347 = arith.constant dense<0.000000e+00> : vector<8x512xf32>
    %418 = tpu.matmul %417, %415, %cst_347 {dimension_numbers = #tpu.dot_dimension_numbers<[1], [0], [0], [1], [0, 0, 1, 1], [], []>} : vector<8x4xf32>, vector<4x512xf32>, vector<8x512xf32> -> vector<8x512xf32>
    %419 = arith.addf %410, %418 : vector<8x512xf32>
    %c16_i32_348 = arith.constant 16 : i32
    %420 = tpu.dynamic_rotate %407 by %c16_i32_348 dim 1 : vector<4x512xf32>, i32 -> vector<4x512xf32>
    %c1_349 = arith.constant 1 : index
    %c0_350 = arith.constant 0 : index
    %c0_351 = arith.constant 0 : index
    %421 = vector.load %arg3[%c1_349, %c0_350, %c0_351] : memref<9x1x512xf32, #tpu.memory_space<vmem>>, vector<1x1x512xf32>
    %422 = vector.shape_cast %421 : vector<1x1x512xf32> to vector<1x512xf32>
    %423 = vector.broadcast %422 : vector<1x512xf32> to vector<4x512xf32>
    %424 = arith.mulf %420, %423 : vector<4x512xf32>
    %c1_352 = arith.constant 1 : index
    %c0_353 = arith.constant 0 : index
    %c0_354 = arith.constant 0 : index
    %425 = vector.load %arg11[%c1_352, %c0_353, %c0_354] : memref<9x8x4xf32, #tpu.memory_space<vmem>>, vector<1x8x4xf32>
    %426 = vector.shape_cast %425 : vector<1x8x4xf32> to vector<8x4xf32>
    %cst_355 = arith.constant dense<0.000000e+00> : vector<8x512xf32>
    %427 = tpu.matmul %426, %424, %cst_355 {dimension_numbers = #tpu.dot_dimension_numbers<[1], [0], [0], [1], [0, 0, 1, 1], [], []>} : vector<8x4xf32>, vector<4x512xf32>, vector<8x512xf32> -> vector<8x512xf32>
    %428 = arith.addf %419, %427 : vector<8x512xf32>
    %c15_i32_356 = arith.constant 15 : i32
    %429 = tpu.dynamic_rotate %407 by %c15_i32_356 dim 1 : vector<4x512xf32>, i32 -> vector<4x512xf32>
    %c2_357 = arith.constant 2 : index
    %c0_358 = arith.constant 0 : index
    %c0_359 = arith.constant 0 : index
    %430 = vector.load %arg3[%c2_357, %c0_358, %c0_359] : memref<9x1x512xf32, #tpu.memory_space<vmem>>, vector<1x1x512xf32>
    %431 = vector.shape_cast %430 : vector<1x1x512xf32> to vector<1x512xf32>
    %432 = vector.broadcast %431 : vector<1x512xf32> to vector<4x512xf32>
    %433 = arith.mulf %429, %432 : vector<4x512xf32>
    %c2_360 = arith.constant 2 : index
    %c0_361 = arith.constant 0 : index
    %c0_362 = arith.constant 0 : index
    %434 = vector.load %arg11[%c2_360, %c0_361, %c0_362] : memref<9x8x4xf32, #tpu.memory_space<vmem>>, vector<1x8x4xf32>
    %435 = vector.shape_cast %434 : vector<1x8x4xf32> to vector<8x4xf32>
    %cst_363 = arith.constant dense<0.000000e+00> : vector<8x512xf32>
    %436 = tpu.matmul %435, %433, %cst_363 {dimension_numbers = #tpu.dot_dimension_numbers<[1], [0], [0], [1], [0, 0, 1, 1], [], []>} : vector<8x4xf32>, vector<4x512xf32>, vector<8x512xf32> -> vector<8x512xf32>
    %437 = arith.addf %428, %436 : vector<8x512xf32>
    %c1_i32_364 = arith.constant 1 : i32
    %438 = tpu.dynamic_rotate %407 by %c1_i32_364 dim 1 : vector<4x512xf32>, i32 -> vector<4x512xf32>
    %c3_365 = arith.constant 3 : index
    %c0_366 = arith.constant 0 : index
    %c0_367 = arith.constant 0 : index
    %439 = vector.load %arg3[%c3_365, %c0_366, %c0_367] : memref<9x1x512xf32, #tpu.memory_space<vmem>>, vector<1x1x512xf32>
    %440 = vector.shape_cast %439 : vector<1x1x512xf32> to vector<1x512xf32>
    %441 = vector.broadcast %440 : vector<1x512xf32> to vector<4x512xf32>
    %442 = arith.mulf %438, %441 : vector<4x512xf32>
    %c3_368 = arith.constant 3 : index
    %c0_369 = arith.constant 0 : index
    %c0_370 = arith.constant 0 : index
    %443 = vector.load %arg11[%c3_368, %c0_369, %c0_370] : memref<9x8x4xf32, #tpu.memory_space<vmem>>, vector<1x8x4xf32>
    %444 = vector.shape_cast %443 : vector<1x8x4xf32> to vector<8x4xf32>
    %cst_371 = arith.constant dense<0.000000e+00> : vector<8x512xf32>
    %445 = tpu.matmul %444, %442, %cst_371 {dimension_numbers = #tpu.dot_dimension_numbers<[1], [0], [0], [1], [0, 0, 1, 1], [], []>} : vector<8x4xf32>, vector<4x512xf32>, vector<8x512xf32> -> vector<8x512xf32>
    %446 = arith.addf %437, %445 : vector<8x512xf32>
    %c511_i32_372 = arith.constant 511 : i32
    %447 = tpu.dynamic_rotate %407 by %c511_i32_372 dim 1 : vector<4x512xf32>, i32 -> vector<4x512xf32>
    %c5_373 = arith.constant 5 : index
    %c0_374 = arith.constant 0 : index
    %c0_375 = arith.constant 0 : index
    %448 = vector.load %arg3[%c5_373, %c0_374, %c0_375] : memref<9x1x512xf32, #tpu.memory_space<vmem>>, vector<1x1x512xf32>
    %449 = vector.shape_cast %448 : vector<1x1x512xf32> to vector<1x512xf32>
    %450 = vector.broadcast %449 : vector<1x512xf32> to vector<4x512xf32>
    %451 = arith.mulf %447, %450 : vector<4x512xf32>
    %c5_376 = arith.constant 5 : index
    %c0_377 = arith.constant 0 : index
    %c0_378 = arith.constant 0 : index
    %452 = vector.load %arg11[%c5_376, %c0_377, %c0_378] : memref<9x8x4xf32, #tpu.memory_space<vmem>>, vector<1x8x4xf32>
    %453 = vector.shape_cast %452 : vector<1x8x4xf32> to vector<8x4xf32>
    %cst_379 = arith.constant dense<0.000000e+00> : vector<8x512xf32>
    %454 = tpu.matmul %453, %451, %cst_379 {dimension_numbers = #tpu.dot_dimension_numbers<[1], [0], [0], [1], [0, 0, 1, 1], [], []>} : vector<8x4xf32>, vector<4x512xf32>, vector<8x512xf32> -> vector<8x512xf32>
    %455 = arith.addf %446, %454 : vector<8x512xf32>
    %c497_i32_380 = arith.constant 497 : i32
    %456 = tpu.dynamic_rotate %407 by %c497_i32_380 dim 1 : vector<4x512xf32>, i32 -> vector<4x512xf32>
    %c6_381 = arith.constant 6 : index
    %c0_382 = arith.constant 0 : index
    %c0_383 = arith.constant 0 : index
    %457 = vector.load %arg3[%c6_381, %c0_382, %c0_383] : memref<9x1x512xf32, #tpu.memory_space<vmem>>, vector<1x1x512xf32>
    %458 = vector.shape_cast %457 : vector<1x1x512xf32> to vector<1x512xf32>
    %459 = vector.broadcast %458 : vector<1x512xf32> to vector<4x512xf32>
    %460 = arith.mulf %456, %459 : vector<4x512xf32>
    %c6_384 = arith.constant 6 : index
    %c0_385 = arith.constant 0 : index
    %c0_386 = arith.constant 0 : index
    %461 = vector.load %arg11[%c6_384, %c0_385, %c0_386] : memref<9x8x4xf32, #tpu.memory_space<vmem>>, vector<1x8x4xf32>
    %462 = vector.shape_cast %461 : vector<1x8x4xf32> to vector<8x4xf32>
    %cst_387 = arith.constant dense<0.000000e+00> : vector<8x512xf32>
    %463 = tpu.matmul %462, %460, %cst_387 {dimension_numbers = #tpu.dot_dimension_numbers<[1], [0], [0], [1], [0, 0, 1, 1], [], []>} : vector<8x4xf32>, vector<4x512xf32>, vector<8x512xf32> -> vector<8x512xf32>
    %464 = arith.addf %455, %463 : vector<8x512xf32>
    %c496_i32_388 = arith.constant 496 : i32
    %465 = tpu.dynamic_rotate %407 by %c496_i32_388 dim 1 : vector<4x512xf32>, i32 -> vector<4x512xf32>
    %c7_389 = arith.constant 7 : index
    %c0_390 = arith.constant 0 : index
    %c0_391 = arith.constant 0 : index
    %466 = vector.load %arg3[%c7_389, %c0_390, %c0_391] : memref<9x1x512xf32, #tpu.memory_space<vmem>>, vector<1x1x512xf32>
    %467 = vector.shape_cast %466 : vector<1x1x512xf32> to vector<1x512xf32>
    %468 = vector.broadcast %467 : vector<1x512xf32> to vector<4x512xf32>
    %469 = arith.mulf %465, %468 : vector<4x512xf32>
    %c7_392 = arith.constant 7 : index
    %c0_393 = arith.constant 0 : index
    %c0_394 = arith.constant 0 : index
    %470 = vector.load %arg11[%c7_392, %c0_393, %c0_394] : memref<9x8x4xf32, #tpu.memory_space<vmem>>, vector<1x8x4xf32>
    %471 = vector.shape_cast %470 : vector<1x8x4xf32> to vector<8x4xf32>
    %cst_395 = arith.constant dense<0.000000e+00> : vector<8x512xf32>
    %472 = tpu.matmul %471, %469, %cst_395 {dimension_numbers = #tpu.dot_dimension_numbers<[1], [0], [0], [1], [0, 0, 1, 1], [], []>} : vector<8x4xf32>, vector<4x512xf32>, vector<8x512xf32> -> vector<8x512xf32>
    %473 = arith.addf %464, %472 : vector<8x512xf32>
    %c495_i32_396 = arith.constant 495 : i32
    %474 = tpu.dynamic_rotate %407 by %c495_i32_396 dim 1 : vector<4x512xf32>, i32 -> vector<4x512xf32>
    %c8_397 = arith.constant 8 : index
    %c0_398 = arith.constant 0 : index
    %c0_399 = arith.constant 0 : index
    %475 = vector.load %arg3[%c8_397, %c0_398, %c0_399] : memref<9x1x512xf32, #tpu.memory_space<vmem>>, vector<1x1x512xf32>
    %476 = vector.shape_cast %475 : vector<1x1x512xf32> to vector<1x512xf32>
    %477 = vector.broadcast %476 : vector<1x512xf32> to vector<4x512xf32>
    %478 = arith.mulf %474, %477 : vector<4x512xf32>
    %c8_400 = arith.constant 8 : index
    %c0_401 = arith.constant 0 : index
    %c0_402 = arith.constant 0 : index
    %479 = vector.load %arg11[%c8_400, %c0_401, %c0_402] : memref<9x8x4xf32, #tpu.memory_space<vmem>>, vector<1x8x4xf32>
    %480 = vector.shape_cast %479 : vector<1x8x4xf32> to vector<8x4xf32>
    %cst_403 = arith.constant dense<0.000000e+00> : vector<8x512xf32>
    %481 = tpu.matmul %480, %478, %cst_403 {dimension_numbers = #tpu.dot_dimension_numbers<[1], [0], [0], [1], [0, 0, 1, 1], [], []>} : vector<8x4xf32>, vector<4x512xf32>, vector<8x512xf32> -> vector<8x512xf32>
    %482 = arith.addf %473, %481 : vector<8x512xf32>
    %c0_404 = arith.constant 0 : index
    %c0_405 = arith.constant 0 : index
    %483 = vector.load %arg12[%c0_404, %c0_405] : memref<8x1xf32, #tpu.memory_space<vmem>>, vector<8x1xf32>
    %484 = vector.broadcast %483 : vector<8x1xf32> to vector<8x512xf32>
    %485 = arith.addf %482, %484 : vector<8x512xf32>
    %486 = arith.addf %485, %165 : vector<8x512xf32>
    %c0_406 = arith.constant 0 : index
    %c0_407 = arith.constant 0 : index
    %487 = vector.load %arg14[%c0_406, %c0_407] : memref<8x512xf32, #tpu.memory_space<vmem>>, vector<8x512xf32>
    tpu.vector_store %arg14[%c0_406, %c0_407], %486 {strides = array<i32>} : memref<8x512xf32, #tpu.memory_space<vmem>>, vector<8x512xf32>,
    return
  }
  func.func @transform_0(%arg0: i32) -> (i32, i32) {
    %c0_i32 = arith.constant 0 : i32
    %c0_i32_0 = arith.constant 0 : i32
    %c0_i32_1 = arith.constant 0 : i32
    return %c0_i32, %c0_i32_0 : i32, i32
  }
  func.func @transform_1(%arg0: i32) -> (i32, i32) {
    %c0_i32 = arith.constant 0 : i32
    %c0_i32_0 = arith.constant 0 : i32
    %c0_i32_1 = arith.constant 0 : i32
    return %c0_i32, %c0_i32_0 : i32, i32
  }
  func.func @transform_2(%arg0: i32) -> (i32, i32, i32) {
    %c0_i32 = arith.constant 0 : i32
    %c0_i32_0 = arith.constant 0 : i32
    %c0_i32_1 = arith.constant 0 : i32
    %c0_i32_2 = arith.constant 0 : i32
    return %c0_i32, %c0_i32_0, %c0_i32_1 : i32, i32, i32
  }
  func.func @transform_3(%arg0: i32) -> (i32, i32, i32) {
    %c0_i32 = arith.constant 0 : i32
    %c0_i32_0 = arith.constant 0 : i32
    %c0_i32_1 = arith.constant 0 : i32
    %c0_i32_2 = arith.constant 0 : i32
    return %c0_i32, %c0_i32_0, %c0_i32_1 : i32, i32, i32
  }
  func.func @transform_4(%arg0: i32) -> (i32, i32) {
    %c0_i32 = arith.constant 0 : i32
    %c0_i32_0 = arith.constant 0 : i32
    %c0_i32_1 = arith.constant 0 : i32
    return %c0_i32, %c0_i32_0 : i32, i32
  }
  func.func @transform_5(%arg0: i32) -> (i32, i32, i32) {
    %c0_i32 = arith.constant 0 : i32
    %c0_i32_0 = arith.constant 0 : i32
    %c0_i32_1 = arith.constant 0 : i32
    %c0_i32_2 = arith.constant 0 : i32
    return %c0_i32, %c0_i32_0, %c0_i32_1 : i32, i32, i32
  }
  func.func @transform_6(%arg0: i32) -> (i32, i32, i32) {
    %c0_i32 = arith.constant 0 : i32
    %c0_i32_0 = arith.constant 0 : i32
    %c0_i32_1 = arith.constant 0 : i32
    %c0_i32_2 = arith.constant 0 : i32
    return %c0_i32, %c0_i32_0, %c0_i32_1 : i32, i32, i32
  }
  func.func @transform_7(%arg0: i32) -> (i32, i32, i32) {
    %c0_i32 = arith.constant 0 : i32
    %c0_i32_0 = arith.constant 0 : i32
    %c0_i32_1 = arith.constant 0 : i32
    %c0_i32_2 = arith.constant 0 : i32
    return %c0_i32, %c0_i32_0, %c0_i32_1 : i32, i32, i32
  }
  func.func @transform_8(%arg0: i32) -> (i32, i32, i32) {
    %c0_i32 = arith.constant 0 : i32
    %c0_i32_0 = arith.constant 0 : i32
    %c0_i32_1 = arith.constant 0 : i32
    %c0_i32_2 = arith.constant 0 : i32
    return %c0_i32, %c0_i32_0, %c0_i32_1 : i32, i32, i32
  }
  func.func @transform_9(%arg0: i32) -> (i32, i32) {
    %c0_i32 = arith.constant 0 : i32
    %c0_i32_0 = arith.constant 0 : i32
    %c0_i32_1 = arith.constant 0 : i32
    return %c0_i32, %c0_i32_0 : i32, i32
  }
  func.func @transform_10(%arg0: i32) -> (i32, i32, i32) {
    %c0_i32 = arith.constant 0 : i32
    %c0_i32_0 = arith.constant 0 : i32
    %c0_i32_1 = arith.constant 0 : i32
    %c0_i32_2 = arith.constant 0 : i32
    return %c0_i32, %c0_i32_0, %c0_i32_1 : i32, i32, i32
  }
  func.func @transform_11(%arg0: i32) -> (i32, i32) {
    %c0_i32 = arith.constant 0 : i32
    %c0_i32_0 = arith.constant 0 : i32
    %c0_i32_1 = arith.constant 0 : i32
    return %c0_i32, %c0_i32_0 : i32, i32
  }
  func.func @transform_12(%arg0: i32) -> (i32, i32) {
    %c0_i32 = arith.constant 0 : i32
    %c0_i32_0 = arith.constant 0 : i32
    %c0_i32_1 = arith.constant 0 : i32
    return %c0_i32, %c0_i32_0 : i32, i32
  }
  func.func @transform_13(%arg0: i32) -> (i32, i32) {
    %c0_i32 = arith.constant 0 : i32
    %c0_i32_0 = arith.constant 0 : i32
    %c0_i32_1 = arith.constant 0 : i32
    return %c0_i32, %c0_i32_0 : i32, i32
  }
}

</mosaic_0001>

<bundles_post_ra>
// kernel: spade_resnet_block.1
= control target key start
LH: loop header
LB: loop body
LE: loop exit
PB: predicated region body
PF: predicated region fallthrough
CT: control target
= control target key end

     0   :  { %v12680_v2 = vmov 0.0   ;;  %s10688_s29 = smov 17   ;;  %s10690_s30 = smov 15   ;;  %v10696_v5 = vmov 0   ;;  %v66_v7 = vlaneseq  ;;  %vm112_vm1 = vcmask 1043456   ;;  %s12666_s1 = inlined_call_operand.vmem [shape: f32[4,512], index: 1, kind: input, shape index: {}]   ;;  %s12667_s4 = inlined_call_operand.vmem [shape: f32[24,1], index: 4, kind: input, shape index: {}]   ;;  %s12668_s2 = inlined_call_operand.vmem [shape: f32[9,1,512], index: 2, kind: input, shape index: {}]   ;;  %s12669_s3 = inlined_call_operand.vmem [shape: f32[9,24,4], index: 3, kind: input, shape index: {}]   ;;  %s12670_s5 = inlined_call_operand.vmem [shape: f32[9,8,8], index: 5, kind: input, shape index: {}]   ;;  %s12671_s0 = inlined_call_operand.vmem [shape: f32[4,512], index: 0, kind: input, shape index: {}]   ;;  %s12672_s12 = inlined_call_operand.vmem [shape: f32[8,4], index: 12, kind: input, shape index: {}]   ;;  %s12673_s6 = inlined_call_operand.vmem [shape: f32[9,8,8], index: 6, kind: input, shape index: {}]   ;;  %s12674_s8 = inlined_call_operand.vmem [shape: f32[9,4,4], index: 8, kind: input, shape index: {}]   ;;  %s12675_s9 = inlined_call_operand.vmem [shape: f32[4,1], index: 9, kind: input, shape index: {}]   ;;  %s12676_s7 = inlined_call_operand.vmem [shape: f32[9,8,8], index: 7, kind: input, shape index: {}]   ;;  %s12677_s11 = inlined_call_operand.vmem [shape: f32[8,1], index: 11, kind: input, shape index: {}]   ;;  %s12678_s10 = inlined_call_operand.vmem [shape: f32[9,8,4], index: 10, kind: input, shape index: {}]   ;;  %s12679_s13 = inlined_call_operand.vmem [shape: f32[8,512], index: 13, kind: output, shape index: {}]  }
   0x1   :  { %v10770_v0 = vld [vmem:[%s12666_s1 + $0x8] sm:$0xff]  ;;  %v10775_v1 = vld [vmem:[%s12666_s1] sm:$0xff]  ;;  %189 = vmatprep.mubr.f32.mxu0 %v12680_v2  ;;  %272 = vmatprep.mubr.f32.mxu1 %v12680_v2  ;;  %s10689_s1 = smov 16   ;;  %s10691_s14 = smov 1   ;;  %vm102_vm3 = vcmask 31744   ;;  %v101_v45 = vld [vmem:[%s12669_s3 + $0x10] sm:$0xff] }
   0x2   :  { %62 = vrot.lane.b32.xlu1 %v10770_v0, %s10688_s29  ;;  %58 = vrot.lane.b32.xlu0 %v10775_v1, %s10688_s29  ;;  %v10785_v3 = vcombine.high %v10770_v0, %v10770_v0  ;;  %v10789_v4 = vcombine.high %v10775_v1, %v10775_v1  ;;  %s10692_s15 = smov 127   ;;  %s10693_s16 = smov 113   ;;  %v2175_v6 = vld [vmem:[%s12667_s4] sm:$0xff]  ;;  %v76_v8 = vshrl.u32 %v66_v7, 7  ;;  %v10854_v9 = vand.u32 127, %v66_v7  ;;  %v100_v38 = vld [vmem:[%s12669_s3 + $0x8] sm:$0xff] }
   0x3   :  { %s10694_s17 = smov 112   ;;  %s10695_s18 = smov 111   ;;  %10683 = vset.pattern.permute.xlu0 %v10696_v5  ;;  %10684 = vset.pattern.permute.xlu1 %v10696_v5  ;;  %v73_v14 = vld [vmem:[%s12668_s2] sm:$0xf]  ;;  %v10103_v27 = vld [vmem:[%s12668_s2 + $0x4] sm:$0xf] }
   0x4   :  { %v10856_v10 = vsub.s32 1, %v76_v8  ;;  %v10858_v11 = vsub.s32 3, %v76_v8  ;;  %v10860_v12 = vsub.s32 0, %v76_v8  ;;  %v10862_v13 = vsub.s32 2, %v76_v8  ;;  %v99_v32 = vld [vmem:[%s12669_s3] sm:$0xff]  ;;  %v10081_v63 = vld [vmem:[%s12669_s3 + $0x68] sm:$0xff] }
   0x5   :  { %vm68_vm0 = vcmp.lt.s32.totalorder %v10854_v9, 17  ;;  %vm482_vm2 = vcmp.lt.s32.totalorder %v10854_v9, 16  ;;  %v10117_v44 = vld [vmem:[%s12668_s2 + $0x8] sm:$0xf]  ;;  %vm725_vm4 = vcmp.lt.s32.totalorder %v10854_v9, 15  ;;  %v10080_v55 = vld [vmem:[%s12669_s3 + $0x60] sm:$0xff] }
   0x6   :  { %64 = vrot.lane.b32.xlu1 %v10785_v3, %s10688_s29  ;;  %60 = vrot.lane.b32.xlu0 %v10789_v4, %s10688_s29  ;;  %v10869_v17 = vrot.slane %v73_v14, %v10856_v10  ;;  %v10872_v18 = vrot.slane %v73_v14, %v10858_v11  ;;  %v10875_v19 = vrot.slane %v73_v14, %v10860_v12  ;;  %vm968_vm5 = vcmp.lt.s32.totalorder %v10854_v9, 1 }
   0x7   :  { %v10878_v20 = vrot.slane %v73_v14, %v10862_v13  ;;  %v10902_v34 = vrot.slane %v10103_v27, %v10856_v10  ;;  %v10911_v37 = vrot.slane %v10103_v27, %v10858_v11  ;;  %v10942_v46 = vrot.slane %v10103_v27, %v10860_v12 }
   0x8   :  { %v10945_v47 = vrot.slane %v10103_v27, %v10862_v13  ;;  %v10954_v52 = vrot.slane %v10117_v44, %v10856_v10  ;;  %v10961_v54 = vrot.slane %v10117_v44, %v10858_v11  ;;  %v10997_v5 = vrot.slane %v10117_v44, %v10860_v12 }
   0x9   :  { %vm1211_vm6 = vcmp.lt.s32.totalorder %v10854_v9, 127  ;;  %vm1454_vm7 = vcmp.lt.s32.totalorder %v10854_v9, 113  ;;  %vm1697_vm8 = vcmp.lt.s32.totalorder %v10854_v9, 112  ;;  %vm1940_vm9 = vcmp.lt.s32.totalorder %v10854_v9, 111  ;;  %v10402_v9 = vld [vmem:[%s12678_s10 + $0x40] sm:$0xff] }
   0xa   :  { %476 = vrot.lane.b32.xlu1 %v10789_v4, %s10689_s1  ;;  %474 = vrot.lane.b32.xlu0 %v10775_v1, %s10689_s1  ;;  %vm2237_vm10 = vcmask 64512  }
   0xe   :  { %480 = vrot.lane.b32.xlu1 %v10785_v3, %s10689_s1  ;;  %478 = vrot.lane.b32.xlu0 %v10770_v0, %s10689_s1 }
  0x12   :  { %719 = vrot.lane.b32.xlu1 %v10789_v4, %s10690_s30  ;;  %717 = vrot.lane.b32.xlu0 %v10775_v1, %s10690_s30 }
  0x16   :  { %723 = vrot.lane.b32.xlu1 %v10785_v3, %s10690_s30  ;;  %721 = vrot.lane.b32.xlu0 %v10770_v0, %s10690_s30 }
  0x1a   :  { %962 = vrot.lane.b32.xlu1 %v10789_v4, %s10691_s14  ;;  %960 = vrot.lane.b32.xlu0 %v10775_v1, %s10691_s14 }
  0x1e   :  { %966 = vrot.lane.b32.xlu1 %v10785_v3, %s10691_s14  ;;  %964 = vrot.lane.b32.xlu0 %v10770_v0, %s10691_s14 }
  0x22   :  { %1203 = vrot.lane.b32.xlu0 %v10775_v1, %s10692_s15  ;;  %1205 = vrot.lane.b32.xlu1 %v10789_v4, %s10692_s15 }
  0x26   :  { %1207 = vrot.lane.b32.xlu0 %v10770_v0, %s10692_s15  ;;  %1209 = vrot.lane.b32.xlu1 %v10785_v3, %s10692_s15 }
  0x2a   :  { %1446 = vrot.lane.b32.xlu0 %v10775_v1, %s10693_s16  ;;  %1448 = vrot.lane.b32.xlu1 %v10789_v4, %s10693_s16 }
  0x2e   :  { %1450 = vrot.lane.b32.xlu0 %v10770_v0, %s10693_s16  ;;  %1452 = vrot.lane.b32.xlu1 %v10785_v3, %s10693_s16 }
  0x32   :  { %1689 = vrot.lane.b32.xlu0 %v10775_v1, %s10694_s17  ;;  %1691 = vrot.lane.b32.xlu1 %v10789_v4, %s10694_s17 }
  0x36   :  { %1693 = vrot.lane.b32.xlu0 %v10770_v0, %s10694_s17  ;;  %1695 = vrot.lane.b32.xlu1 %v10785_v3, %s10694_s17 }
  0x3a   :  { %1932 = vrot.lane.b32.xlu0 %v10775_v1, %s10695_s18  ;;  %1934 = vrot.lane.b32.xlu1 %v10789_v4, %s10695_s18 }
  0x3e   :  { %1936 = vrot.lane.b32.xlu0 %v10770_v0, %s10695_s18  ;;  %1938 = vrot.lane.b32.xlu1 %v10785_v3, %s10695_s18 }
  0x42   :  { %2180 = vperm.xlu0 %10683, %v2175_v6   ;;  %v11000_v6 = vrot.slane %v10117_v44, %v10862_v13 }
  0x74   :  { %v63_v15 = vpop.permute.xlu1 %62  ;;  %v59_v16 = vpop.permute.xlu0 %58 }
  0x78   :  { %v65_v21 = vpop.permute.xlu1 %64  ;;  %v61_v22 = vpop.permute.xlu0 %60 }
  0x79   :  { %v72_v23 = vsel %vm68_vm0, %v65_v21, %v59_v16  ;;  %v70_v24 = vsel %vm68_vm0, %v61_v22, %v63_v15  ;;  %v71_v25 = vsel %vm68_vm0, %v59_v16, %v61_v22  ;;  %v69_v26 = vsel %vm68_vm0, %v63_v15, %v65_v21 }
  0x7a   :  { %v96_v28 = vmul.f32 %v10869_v17, %v71_v25  ;;  %v98_v29 = vmul.f32 %v10872_v18, %v69_v26  ;;  %v95_v30 = vmul.f32 %v10875_v19, %v72_v23  ;;  %v97_v31 = vmul.f32 %v10878_v20, %v70_v24  ;;  %v10104_v24 = vld [vmem:[%s12669_s3 + $0x18] sm:$0xff] }
  0x7c   :  { %10083 = vmatprep.subr.msk.mxu0 %vm112_vm1, %v96_v28  ;;  %10088 = vmatprep.subr.msk.mxu1 %vm112_vm1, %v98_v29  ;;  %v477_v33 = vpop.permute.xlu1 %476  ;;  %v475_v35 = vpop.permute.xlu0 %474 }
  0x7d   :  { %10084 = vmatpush1.msk.msra.mxu0 %vm112_vm1, %v95_v30  ;;  %10089 = vmatpush1.msk.msra.mxu1 %vm112_vm1, %v97_v31  ;;  %v485_v36 = vsel %vm482_vm2, %v475_v35, %v477_v33  ;;  %v10105_v31 = vld [vmem:[%s12669_s3 + $0x20] sm:$0xff] }
  0x7e   :  { %10085 = vmatmul.mubr.msk.f32.vlgmr.msra.gmra.mrb[0].mxu0 %vm102_vm3, %v99_v32  ;;  %10090 = vmatmul.mubr.msk.f32.vlgmr.msra.gmra.mrb[0].mxu1 %vm102_vm3, %v99_v32  ;;  %v511_v39 = vmul.f32 %v10902_v34, %v485_v36  ;;  %v10145_v32 = vld [vmem:[%s12668_s2 + $0x14] sm:$0xf] }
  0x7f   :  { %195 = vmatprep.mubr.f32.mxu0 %v12680_v2  ;;  %278 = vmatprep.mubr.f32.mxu1 %v12680_v2 }
  0x80   :  { %10093 = vmatprep.subr.msk.mxu0 %vm112_vm1, %v10789_v4  ;;  %10098 = vmatprep.subr.msk.mxu1 %vm112_vm1, %v10785_v3  ;;  %v481_v40 = vpop.permute.xlu1 %480  ;;  %v479_v41 = vpop.permute.xlu0 %478  ;;  %v10131_v3 = vld [vmem:[%s12668_s2 + $0xc] sm:$0xf]  ;;  %v10082_v4 = vld [vmem:[%s12669_s3 + $0x70] sm:$0xff] }
  0x81   :  { %10094 = vmatpush1.msk.msra.mxu0 %vm112_vm1, %v10775_v1  ;;  %10099 = vmatpush1.msk.msra.mxu1 %vm112_vm1, %v10770_v0  ;;  %v483_v42 = vsel %vm482_vm2, %v479_v41, %v481_v40  ;;  %v486_v50 = vsel %vm482_vm2, %v481_v40, %v475_v35  ;;  %v484_v51 = vsel %vm482_vm2, %v477_v33, %v479_v41  ;;  %v10106_v33 = vld [vmem:[%s12669_s3 + $0x28] sm:$0xff] }
  0x82   :  { %10086 = vmatmul.mubr.msk.f32.gmra.mrb[2].mxu0 %vm102_vm3, %v100_v38  ;;  %10091 = vmatmul.mubr.msk.f32.gmra.mrb[2].mxu1 %vm102_vm3, %v100_v38  ;;  %v513_v43 = vmul.f32 %v10911_v37, %v483_v42  ;;  %v510_v56 = vmul.f32 %v10942_v46, %v486_v50  ;;  %v512_v57 = vmul.f32 %v10945_v47, %v484_v51 }
  0x83   :  { %201 = vmatprep.mubr.f32.mxu0 %v12680_v2  ;;  %284 = vmatprep.mubr.f32.mxu1 %v12680_v2  ;;  %v11007_v16 = vrot.slane %v10131_v3, %v10856_v10  ;;  %v11010_v21 = vrot.slane %v10131_v3, %v10858_v11  ;;  %v11050_v38 = vrot.slane %v10131_v3, %v10860_v12 }
  0x84   :  { %10112 = vmatprep.subr.msk.mxu1 %vm112_vm1, %v513_v43  ;;  %10107 = vmatprep.subr.msk.mxu0 %vm112_vm1, %v511_v39  ;;  %v720_v48 = vpop.permute.xlu1 %719  ;;  %v718_v49 = vpop.permute.xlu0 %717  ;;  %v11053_v39 = vrot.slane %v10131_v3, %v10862_v13  ;;  %v11060_v42 = vrot.slane %v10145_v32, %v10856_v10  ;;  %v11063_v43 = vrot.slane %v10145_v32, %v10858_v11 }
  0x85   :  { %v728_v53 = vsel %vm725_vm4, %v718_v49, %v720_v48 }
  0x86   :  { %10087 = vmatmul.mubr.msk.f32.gmra.mrb[4].mxu0 %vm102_vm3, %v101_v45  ;;  %10092 = vmatmul.mubr.msk.f32.gmra.mrb[4].mxu1 %vm102_vm3, %v101_v45  ;;  %v754_v60 = vmul.f32 %v10954_v52, %v728_v53 }
  0x87   :  { %372 = vmatprep.mubr.f32.mxu0 %v12680_v2  ;;  %455 = vmatprep.mubr.f32.mxu1 %v12680_v2 }
  0x88   :  { %v724_v58 = vpop.permute.xlu1 %723  ;;  %v722_v59 = vpop.permute.xlu0 %721 }
  0x89   :  { %v726_v61 = vsel %vm725_vm4, %v722_v59, %v724_v58  ;;  %v729_v14 = vsel %vm725_vm4, %v724_v58, %v718_v49  ;;  %v727_v15 = vsel %vm725_vm4, %v720_v48, %v722_v59  ;;  %v10118_v48 = vld [vmem:[%s12669_s3 + $0x30] sm:$0xff]  ;;  %v10159_v58 = vld [vmem:[%s12668_s2 + $0x18] sm:$0xf]  ;;  %v10120_v59 = vld [vmem:[%s12669_s3 + $0x40] sm:$0xff] }
  0x8a   :  { %10095 = vmatmul.mubr.msk.f32.vlgmr.msra.gmra.mrb[0].mxu0 %vm102_vm3, %v10080_v55  ;;  %10100 = vmatmul.mubr.msk.f32.vlgmr.msra.gmra.mrb[0].mxu1 %vm102_vm3, %v10080_v55  ;;  %v756_v62 = vmul.f32 %v10961_v54, %v726_v61  ;;  %v753_v25 = vmul.f32 %v10997_v5, %v729_v14  ;;  %v755_v26 = vmul.f32 %v11000_v6, %v727_v15  ;;  %v10132_v14 = vld [vmem:[%s12669_s3 + $0x48] sm:$0xff] }
  0x8b   :  { %378 = vmatprep.mubr.f32.mxu0 %v12680_v2  ;;  %461 = vmatprep.mubr.f32.mxu1 %v12680_v2  ;;  %v11113_v3 = vrot.slane %v10159_v58, %v10856_v10 }
  0x8c   :  { %10113 = vmatpush1.msk.msra.mxu1 %vm112_vm1, %v512_v57  ;;  %10108 = vmatpush1.msk.msra.mxu0 %vm112_vm1, %v510_v56  ;;  %v963_v0 = vpop.permute.xlu1 %962  ;;  %v961_v1 = vpop.permute.xlu0 %960  ;;  %v10119_v57 = vld [vmem:[%s12669_s3 + $0x38] sm:$0xff] }
  0x8d   :  { %10126 = vmatprep.subr.msk.mxu1 %vm112_vm1, %v756_v62  ;;  %10121 = vmatprep.subr.msk.mxu0 %vm112_vm1, %v754_v60  ;;  %v971_v22 = vsel %vm968_vm5, %v961_v1, %v963_v0  ;;  %v11103_v62 = vrot.slane %v10145_v32, %v10860_v12 }
  0x8e   :  { %10096 = vmatmul.mubr.msk.f32.gmra.mrb[2].mxu0 %vm102_vm3, %v10081_v63  ;;  %10101 = vmatmul.mubr.msk.f32.gmra.mrb[2].mxu1 %vm102_vm3, %v10081_v63  ;;  %v997_v27 = vmul.f32 %v11007_v16, %v971_v22  ;;  %v11106_v63 = vrot.slane %v10145_v32, %v10862_v13  ;;  %v11156_v32 = vrot.slane %v10159_v58, %v10860_v12 }
  0x8f   :  { %384 = vmatprep.mubr.f32.mxu0 %v12680_v2  ;;  %467 = vmatprep.mubr.f32.mxu1 %v12680_v2 }
  0x90   :  { %v967_v7 = vpop.permute.xlu1 %966  ;;  %v965_v8 = vpop.permute.xlu0 %964 }
  0x91   :  { %v969_v23 = vsel %vm968_vm5, %v965_v8, %v967_v7  ;;  %v972_v40 = vsel %vm968_vm5, %v967_v7, %v961_v1  ;;  %v970_v41 = vsel %vm968_vm5, %v963_v0, %v965_v8 }
  0x92   :  { %10097 = vmatmul.mubr.msk.f32.gmra.mrb[4].mxu0 %vm102_vm3, %v10082_v4  ;;  %10102 = vmatmul.mubr.msk.f32.gmra.mrb[4].mxu1 %vm102_vm3, %v10082_v4  ;;  %v999_v28 = vmul.f32 %v11010_v21, %v969_v23  ;;  %v996_v49 = vmul.f32 %v11050_v38, %v972_v40  ;;  %v998_v50 = vmul.f32 %v11053_v39, %v970_v41 }
  0x93   :  { %603 = vmatprep.mubr.f32.mxu0 %v12680_v2  ;;  %686 = vmatprep.mubr.f32.mxu1 %v12680_v2  ;;  %v11116_v4 = vrot.slane %v10159_v58, %v10858_v11 }
  0x94   :  { %v1204_v29 = vpop.permute.xlu0 %1203  ;;  %v1206_v30 = vpop.permute.xlu1 %1205 }
  0x95   :  { %v1214_v0 = vsel %vm1211_vm6, %v1204_v29, %v1206_v30 }
  0x96   :  { %10109 = vmatmul.mubr.msk.f32.vlgmr.msra.gmra.mrb[0].mxu0 %vm102_vm3, %v10104_v24  ;;  %10114 = vmatmul.mubr.msk.f32.vlgmr.msra.gmra.mrb[0].mxu1 %vm102_vm3, %v10104_v24  ;;  %v1239_v15 = vmul.f32 %v11103_v62, %v1214_v0 }
  0x97   :  { %609 = vmatprep.mubr.f32.mxu0 %v12680_v2  ;;  %692 = vmatprep.mubr.f32.mxu1 %v12680_v2 }
  0x98   :  { %10127 = vmatpush1.msk.msra.mxu1 %vm112_vm1, %v755_v26  ;;  %10122 = vmatpush1.msk.msra.mxu0 %vm112_vm1, %v753_v25  ;;  %v1208_v35 = vpop.permute.xlu0 %1207  ;;  %v1210_v36 = vpop.permute.xlu1 %1209 }
  0x99   :  { %10140 = vmatprep.subr.msk.mxu1 %vm112_vm1, %v999_v28  ;;  %10135 = vmatprep.subr.msk.mxu0 %vm112_vm1, %v997_v27  ;;  %v1213_v44 = vsel %vm1211_vm6, %v1206_v30, %v1208_v35  ;;  %v1215_v45 = vsel %vm1211_vm6, %v1210_v36, %v1204_v29  ;;  %v1212_v1 = vsel %vm1211_vm6, %v1208_v35, %v1210_v36  ;;  %v10133_v27 = vld [vmem:[%s12669_s3 + $0x50] sm:$0xff]  ;;  %v10173_v28 = vld [vmem:[%s12668_s2 + $0x1c] sm:$0xf] }
  0x9a   :  { %10110 = vmatmul.mubr.msk.f32.gmra.mrb[2].mxu0 %vm102_vm3, %v10105_v31  ;;  %10115 = vmatmul.mubr.msk.f32.gmra.mrb[2].mxu1 %vm102_vm3, %v10105_v31  ;;  %v1240_v51 = vmul.f32 %v11060_v42, %v1213_v44  ;;  %v1242_v53 = vmul.f32 %v11063_v43, %v1215_v45  ;;  %v1241_v22 = vmul.f32 %v11106_v63, %v1212_v1  ;;  %v10134_v29 = vld [vmem:[%s12669_s3 + $0x58] sm:$0xff] }
  0x9b   :  { %615 = vmatprep.mubr.f32.mxu0 %v12680_v2  ;;  %698 = vmatprep.mubr.f32.mxu1 %v12680_v2  ;;  %v11166_v40 = vrot.slane %v10173_v28, %v10856_v10  ;;  %v11169_v41 = vrot.slane %v10173_v28, %v10858_v11  ;;  %v11209_v0 = vrot.slane %v10173_v28, %v10860_v12 }
  0x9c   :  { %v1447_v55 = vpop.permute.xlu0 %1446  ;;  %v1449_v56 = vpop.permute.xlu1 %1448  ;;  %v11212_v1 = vrot.slane %v10173_v28, %v10862_v13  ;;  %v10162_v28 = vld [vmem:[%s12669_s3 + $0xa0] sm:$0xff] }
  0x9d   :  { %v1457_v35 = vsel %vm1454_vm7, %v1447_v55, %v1449_v56 }
  0x9e   :  { %10111 = vmatmul.mubr.msk.f32.gmra.mrb[4].mxu0 %vm102_vm3, %v10106_v33  ;;  %10116 = vmatmul.mubr.msk.f32.gmra.mrb[4].mxu1 %vm102_vm3, %v10106_v33  ;;  %v11159_v33 = vrot.slane %v10159_v58, %v10862_v13  ;;  %v10187_v58 = vld [vmem:[%s12668_s2 + $0x20] sm:$0xf] }
  0x9f   :  { %846 = vmatprep.mubr.f32.mxu0 %v12680_v2  ;;  %929 = vmatprep.mubr.f32.mxu1 %v12680_v2 }
  0xa0   :  { %v1451_v60 = vpop.permute.xlu0 %1450  ;;  %v1453_v61 = vpop.permute.xlu1 %1452 }
  0xa1   :  { %v1456_v7 = vsel %vm1454_vm7, %v1449_v56, %v1451_v60  ;;  %v1458_v8 = vsel %vm1454_vm7, %v1453_v61, %v1447_v55  ;;  %v1455_v36 = vsel %vm1454_vm7, %v1451_v60, %v1453_v61 }
  0xa2   :  { %10123 = vmatmul.mubr.msk.f32.vlgmr.msra.gmra.mrb[0].mxu0 %vm102_vm3, %v10118_v48  ;;  %10128 = vmatmul.mubr.msk.f32.vlgmr.msra.gmra.mrb[0].mxu1 %vm102_vm3, %v10118_v48  ;;  %v1483_v23 = vmul.f32 %v11113_v3, %v1456_v7  ;;  %v1485_v24 = vmul.f32 %v11116_v4, %v1458_v8  ;;  %v10146_v48 = vld [vmem:[%s12669_s3 + $0x78] sm:$0xff] }
  0xa3   :  { %852 = vmatprep.mubr.f32.mxu0 %v12680_v2  ;;  %935 = vmatprep.mubr.f32.mxu1 %v12680_v2 }
  0xa4   :  { %10141 = vmatpush1.msk.msra.mxu1 %vm112_vm1, %v998_v50  ;;  %10136 = vmatpush1.msk.msra.mxu0 %vm112_vm1, %v996_v49  ;;  %v1690_v25 = vpop.permute.xlu0 %1689  ;;  %v1692_v26 = vpop.permute.xlu1 %1691  ;;  %v1482_v49 = vmul.f32 %v11156_v32, %v1457_v35  ;;  %v1484_v50 = vmul.f32 %v11159_v33, %v1455_v36 }
  0xa5   :  { %10149 = vmatprep.subr.msk.mxu0 %vm112_vm1, %v1240_v51  ;;  %10154 = vmatprep.subr.msk.mxu1 %vm112_vm1, %v1242_v53  ;;  %v1700_v7 = vsel %vm1697_vm8, %v1690_v25, %v1692_v26 }
  0xa6   :  { %10124 = vmatmul.mubr.msk.f32.gmra.mrb[2].mxu0 %vm102_vm3, %v10119_v57  ;;  %10129 = vmatmul.mubr.msk.f32.gmra.mrb[2].mxu1 %vm102_vm3, %v10119_v57  ;;  %v10147_v57 = vld [vmem:[%s12669_s3 + $0x80] sm:$0xff] }
  0xa7   :  { %858 = vmatprep.mubr.f32.mxu0 %v12680_v2  ;;  %941 = vmatprep.mubr.f32.mxu1 %v12680_v2 }
  0xa8   :  { %v1694_v30 = vpop.permute.xlu0 %1693  ;;  %v1696_v31 = vpop.permute.xlu1 %1695 }
  0xa9   :  { %v1699_v44 = vsel %vm1697_vm8, %v1692_v26, %v1694_v30  ;;  %v1701_v45 = vsel %vm1697_vm8, %v1696_v31, %v1690_v25  ;;  %v1698_v8 = vsel %vm1697_vm8, %v1694_v30, %v1696_v31  ;;  %v11261_v30 = vrot.slane %v10187_v58, %v10862_v13 }
  0xaa   :  { %10125 = vmatmul.mubr.msk.f32.gmra.mrb[4].mxu0 %vm102_vm3, %v10120_v59  ;;  %10130 = vmatmul.mubr.msk.f32.gmra.mrb[4].mxu1 %vm102_vm3, %v10120_v59  ;;  %v1726_v51 = vmul.f32 %v11166_v40, %v1699_v44  ;;  %v1728_v53 = vmul.f32 %v11169_v41, %v1701_v45  ;;  %v10148_v59 = vld [vmem:[%s12669_s3 + $0x88] sm:$0xff]  ;;  %v10175_v44 = vld [vmem:[%s12669_s3 + $0xb0] sm:$0xff]  ;;  %v10176_v45 = vld [vmem:[%s12669_s3 + $0xb8] sm:$0xff] }
  0xab   :  { %1089 = vmatprep.mubr.f32.mxu0 %v12680_v2  ;;  %1172 = vmatprep.mubr.f32.mxu1 %v12680_v2  ;;  %12687 = vst [vmem:[#allocation3_spill] sm:$0xff] %v11261_v30 }
  0xac   :  { %v1933_v55 = vpop.permute.xlu0 %1932  ;;  %v1935_v56 = vpop.permute.xlu1 %1934 }
  0xad   :  { %v1943_v31 = vsel %vm1940_vm9, %v1933_v55, %v1935_v56 }
  0xae   :  { %10137 = vmatmul.mubr.msk.f32.vlgmr.msra.gmra.mrb[0].mxu0 %vm102_vm3, %v10132_v14  ;;  %10142 = vmatmul.mubr.msk.f32.vlgmr.msra.gmra.mrb[0].mxu1 %vm102_vm3, %v10132_v14  ;;  %v11219_v14 = vrot.slane %v10187_v58, %v10856_v10  ;;  %v10160_v10 = vld [vmem:[%s12669_s3 + $0x90] sm:$0xff] }
  0xaf   :  { %1095 = vmatprep.mubr.f32.mxu0 %v12680_v2  ;;  %1178 = vmatprep.mubr.f32.mxu1 %v12680_v2 }
  0xb0   :  { %10150 = vmatpush1.msk.msra.mxu0 %vm112_vm1, %v1239_v15  ;;  %10155 = vmatpush1.msk.msra.mxu1 %vm112_vm1, %v1241_v22  ;;  %v1937_v60 = vpop.permute.xlu0 %1936  ;;  %v1939_v61 = vpop.permute.xlu1 %1938  ;;  %v11222_v15 = vrot.slane %v10187_v58, %v10858_v11  ;;  %v1725_v11 = vmul.f32 %v11209_v0, %v1700_v7 }
  0xb1   :  { %10163 = vmatprep.subr.msk.mxu0 %vm112_vm1, %v1483_v23  ;;  %10168 = vmatprep.subr.msk.mxu1 %vm112_vm1, %v1485_v24  ;;  %v1942_v22 = vsel %vm1940_vm9, %v1935_v56, %v1937_v60  ;;  %v1944_v23 = vsel %vm1940_vm9, %v1939_v61, %v1933_v55  ;;  %v1727_v24 = vmul.f32 %v11212_v1, %v1698_v8 }
  0xb2   :  { %10138 = vmatmul.mubr.msk.f32.gmra.mrb[2].mxu0 %vm102_vm3, %v10133_v27  ;;  %10143 = vmatmul.mubr.msk.f32.gmra.mrb[2].mxu1 %vm102_vm3, %v10133_v27  ;;  %v1969_v25 = vmul.f32 %v11219_v14, %v1942_v22  ;;  %v1971_v26 = vmul.f32 %v11222_v15, %v1944_v23  ;;  %v10161_v27 = vld [vmem:[%s12669_s3 + $0x98] sm:$0xff]  ;;  %v1941_v35 = vsel %vm1940_vm9, %v1937_v60, %v1939_v61 }
  0xb3   :  { %1101 = vmatprep.mubr.f32.mxu0 %v12680_v2  ;;  %1184 = vmatprep.mubr.f32.mxu1 %v12680_v2  ;;  %v1970_v36 = vmul.f32 %v11261_v30, %v1941_v35  ;;  %v2176_v35 = vld [vmem:[%s12667_s4 + $0x8] sm:$0xff] }
  0xb6   :  { %10139 = vmatmul.mubr.msk.f32.gmra.mrb[4].mxu0 %vm102_vm3, %v10134_v29  ;;  %10144 = vmatmul.mubr.msk.f32.gmra.mrb[4].mxu1 %vm102_vm3, %v10134_v29  ;;  %v11258_v29 = vrot.slane %v10187_v58, %v10860_v12  ;;  %v10174_v12 = vld [vmem:[%s12669_s3 + $0xa8] sm:$0xff] }
  0xb7   :  { %1332 = vmatprep.mubr.f32.mxu0 %v12680_v2  ;;  %1415 = vmatprep.mubr.f32.mxu1 %v12680_v2 }
  0xb8   :  { %12686 = vst [vmem:[#allocation2_spill] sm:$0xff] %v11258_v29  ;;  %v1968_v13 = vmul.f32 %v11258_v29, %v1943_v31 }
  0xba   :  { %10151 = vmatmul.mubr.msk.f32.vlgmr.msra.gmra.mrb[0].mxu0 %vm102_vm3, %v10146_v48  ;;  %10156 = vmatmul.mubr.msk.f32.vlgmr.msra.gmra.mrb[0].mxu1 %vm102_vm3, %v10146_v48  ;;  %v10188_v48 = vld [vmem:[%s12669_s3 + $0xc0] sm:$0xff] }
  0xbb   :  { %1338 = vmatprep.mubr.f32.mxu0 %v12680_v2  ;;  %1421 = vmatprep.mubr.f32.mxu1 %v12680_v2 }
  0xbc   :  { %10164 = vmatpush1.msk.msra.mxu0 %vm112_vm1, %v1482_v49  ;;  %10169 = vmatpush1.msk.msra.mxu1 %vm112_vm1, %v1484_v50  ;;  %v10189_v49 = vld [vmem:[%s12669_s3 + $0xc8] sm:$0xff]  ;;  %v10190_v50 = vld [vmem:[%s12669_s3 + $0xd0] sm:$0xff] }
  0xbd   :  { %10177 = vmatprep.subr.msk.mxu0 %vm112_vm1, %v1726_v51  ;;  %10182 = vmatprep.subr.msk.mxu1 %vm112_vm1, %v1728_v53 }
  0xbe   :  { %10152 = vmatmul.mubr.msk.f32.gmra.mrb[2].mxu0 %vm102_vm3, %v10147_v57  ;;  %10157 = vmatmul.mubr.msk.f32.gmra.mrb[2].mxu1 %vm102_vm3, %v10147_v57 }
  0xbf   :  { %1344 = vmatprep.mubr.f32.mxu0 %v12680_v2  ;;  %1427 = vmatprep.mubr.f32.mxu1 %v12680_v2 }
  0xc1   :  { %v2181_v51 = vpop.permute.xlu0 %2180 }
  0xc2   :  { %10153 = vmatmul.mubr.msk.f32.gmra.mrb[4].mxu0 %vm102_vm3, %v10148_v59  ;;  %10158 = vmatmul.mubr.msk.f32.gmra.mrb[4].mxu1 %vm102_vm3, %v10148_v59 }
  0xc3   :  { %1575 = vmatprep.mubr.f32.mxu0 %v12680_v2  ;;  %1658 = vmatprep.mubr.f32.mxu1 %v12680_v2 }
  0xc6   :  { %10165 = vmatmul.mubr.msk.f32.vlgmr.msra.gmra.mrb[0].mxu0 %vm102_vm3, %v10160_v10  ;;  %10170 = vmatmul.mubr.msk.f32.vlgmr.msra.gmra.mrb[0].mxu1 %vm102_vm3, %v10160_v10 }
  0xc7   :  { %1581 = vmatprep.mubr.f32.mxu0 %v12680_v2  ;;  %1664 = vmatprep.mubr.f32.mxu1 %v12680_v2 }
  0xc8   :  { %10178 = vmatpush1.msk.msra.mxu0 %vm112_vm1, %v1725_v11  ;;  %10183 = vmatpush1.msk.msra.mxu1 %vm112_vm1, %v1727_v24 }
  0xc9   :  { %10191 = vmatprep.subr.msk.mxu0 %vm112_vm1, %v1969_v25  ;;  %10196 = vmatprep.subr.msk.mxu1 %vm112_vm1, %v1971_v26 }
  0xca   :  { %10166 = vmatmul.mubr.msk.f32.gmra.mrb[2].mxu0 %vm102_vm3, %v10161_v27  ;;  %10171 = vmatmul.mubr.msk.f32.gmra.mrb[2].mxu1 %vm102_vm3, %v10161_v27 }
  0xcb   :  { %1587 = vmatprep.mubr.f32.mxu0 %v12680_v2  ;;  %1670 = vmatprep.mubr.f32.mxu1 %v12680_v2 }
  0xce   :  { %10167 = vmatmul.mubr.msk.f32.gmra.mrb[4].mxu0 %vm102_vm3, %v10162_v28  ;;  %10172 = vmatmul.mubr.msk.f32.gmra.mrb[4].mxu1 %vm102_vm3, %v10162_v28 }
  0xcf   :  { %1818 = vmatprep.mubr.f32.mxu0 %v12680_v2  ;;  %1901 = vmatprep.mubr.f32.mxu1 %v12680_v2 }
  0xd2   :  { %10179 = vmatmul.mubr.msk.f32.vlgmr.msra.gmra.mrb[0].mxu0 %vm102_vm3, %v10174_v12  ;;  %10184 = vmatmul.mubr.msk.f32.vlgmr.msra.gmra.mrb[0].mxu1 %vm102_vm3, %v10174_v12 }
  0xd3   :  { %1824 = vmatprep.mubr.f32.mxu0 %v12680_v2  ;;  %1907 = vmatprep.mubr.f32.mxu1 %v12680_v2 }
  0xd4   :  { %10192 = vmatpush1.msk.msra.mxu0 %vm112_vm1, %v1968_v13  ;;  %10197 = vmatpush1.msk.msra.mxu1 %vm112_vm1, %v1970_v36 }
  0xd6   :  { %10180 = vmatmul.mubr.msk.f32.gmra.mrb[2].mxu0 %vm102_vm3, %v10175_v44  ;;  %10185 = vmatmul.mubr.msk.f32.gmra.mrb[2].mxu1 %vm102_vm3, %v10175_v44 }
  0xd7   :  { %1830 = vmatprep.mubr.f32.mxu0 %v12680_v2  ;;  %1913 = vmatprep.mubr.f32.mxu1 %v12680_v2 }
  0xda   :  { %10181 = vmatmul.mubr.msk.f32.gmra.mrb[4].mxu0 %vm102_vm3, %v10176_v45  ;;  %10186 = vmatmul.mubr.msk.f32.gmra.mrb[4].mxu1 %vm102_vm3, %v10176_v45 }
  0xdb   :  { %2061 = vmatprep.mubr.f32.mxu0 %v12680_v2  ;;  %2144 = vmatprep.mubr.f32.mxu1 %v12680_v2 }
  0xde   :  { %10193 = vmatmul.mubr.msk.f32.vlgmr.msra.gmra.mrb[0].mxu0 %vm102_vm3, %v10188_v48  ;;  %10198 = vmatmul.mubr.msk.f32.vlgmr.msra.gmra.mrb[0].mxu1 %vm102_vm3, %v10188_v48 }
  0xdf   :  { %2067 = vmatprep.mubr.f32.mxu0 %v12680_v2  ;;  %2150 = vmatprep.mubr.f32.mxu1 %v12680_v2 }
  0xe2   :  { %10194 = vmatmul.mubr.msk.f32.gmra.mrb[2].mxu0 %vm102_vm3, %v10189_v49  ;;  %10199 = vmatmul.mubr.msk.f32.gmra.mrb[2].mxu1 %vm102_vm3, %v10189_v49 }
  0xe3   :  { %2073 = vmatprep.mubr.f32.mxu0 %v12680_v2  ;;  %2156 = vmatprep.mubr.f32.mxu1 %v12680_v2 }
  0xe6   :  { %10195 = vmatmul.mubr.msk.f32.gmra.mrb[4].mxu0 %vm102_vm3, %v10190_v50  ;;  %10200 = vmatmul.mubr.msk.f32.gmra.mrb[4].mxu1 %vm102_vm3, %v10190_v50 }
  0xe7   :  { %2305 = vmatprep.mubr.f32.mxu0 %v12680_v2  ;;  %2376 = vmatprep.mubr.f32.mxu1 %v12680_v2 }
 0x1b1   :  { %v2063_v53 = vpop.f32.mrb[0].mxu0  ;;  %v2146_v55 = vpop.f32.mrb[0].mxu1 }
 0x1b2   :  { %v2193_v56 = vadd.f32 %v2181_v51, %v2063_v53  ;;  %v2195_v57 = vadd.f32 %v2181_v51, %v2146_v55  ;;  %v2065_v58 = vpop.f32.mrb[1].mxu0  ;;  %v2148_v59 = vpop.f32.mrb[1].mxu1 }
 0x1b3   :  { %v2194_v7 = vadd.f32 %v2181_v51, %v2065_v58  ;;  %v2196_v24 = vadd.f32 %v2181_v51, %v2148_v59  ;;  %v2236_v58 = vld [vmem:[%s12670_s5] sm:$0xff] }
 0x1b4   :  { %v11317_v60 = vmax.f32 %v2193_v56, 0.0  ;;  %v11319_v61 = vmax.f32 %v2195_v57, 0.0 }
 0x1b5   :  { %v11321_v8 = vpop.f32.mrb[2].mxu0  ;;  %v11323_v22 = vpop.f32.mrb[2].mxu1  ;;  %v11333_v11 = vmax.f32 %v2194_v7, 0.0  ;;  %v2208_v31 = vmax.f32 %v2196_v24, 0.0 }
 0x1b6   :  { %v11325_v23 = vpop.f32.mrb[3].mxu0  ;;  %v11327_v10 = vpop.f32.mrb[3].mxu1  ;;  %2224 = vrot.lane.b32.xlu0 %v11319_v61, %s10688_s29  ;;  %2220 = vrot.lane.b32.xlu1 %v11317_v60, %s10688_s29 }
 0x1b9   :  { %v11335_v25 = vpop.f32.mrb[4].mxu0  ;;  %v11337_v26 = vpop.f32.mrb[4].mxu1 }
 0x1ba   :  { %12688 = vst [vmem:[#allocation4_spill] sm:$0xff] %v11335_v25  ;;  %12689 = vst [vmem:[#allocation5_spill] sm:$0xff] %v11337_v26  ;;  %v11339_v27 = vpop.f32.mrb[5].mxu0  ;;  %v11341_v28 = vpop.f32.mrb[5].mxu1  ;;  %2528 = vrot.lane.b32.xlu0 %v11317_v60, %s10689_s1  ;;  %2222 = vrot.lane.b32.xlu1 %v11333_v11, %s10688_s29 }
 0x1bb   :  { %12690 = vst [vmem:[#allocation6_spill] sm:$0xff] %v11339_v27  ;;  %12691 = vst [vmem:[#allocation7_spill] sm:$0xff] %v11341_v28 }
 0x1be   :  { %2532 = vrot.lane.b32.xlu0 %v11319_v61, %s10689_s1  ;;  %2226 = vrot.lane.b32.xlu1 %v2208_v31, %s10688_s29 }
 0x1c2   :  { %2695 = vrot.lane.b32.xlu0 %v11317_v60, %s10690_s30  ;;  %2530 = vrot.lane.b32.xlu1 %v11333_v11, %s10689_s1 }
 0x1c6   :  { %2699 = vrot.lane.b32.xlu0 %v11319_v61, %s10690_s30  ;;  %2534 = vrot.lane.b32.xlu1 %v2208_v31, %s10689_s1 }
 0x1ca   :  { %2862 = vrot.lane.b32.xlu0 %v11317_v60, %s10691_s14  ;;  %2697 = vrot.lane.b32.xlu1 %v11333_v11, %s10690_s30 }
 0x1ce   :  { %2866 = vrot.lane.b32.xlu0 %v11319_v61, %s10691_s14  ;;  %2701 = vrot.lane.b32.xlu1 %v2208_v31, %s10690_s30 }
 0x1d2   :  { %3029 = vrot.lane.b32.xlu0 %v11317_v60, %s10692_s15  ;;  %2864 = vrot.lane.b32.xlu1 %v11333_v11, %s10691_s14 }
 0x1d6   :  { %3033 = vrot.lane.b32.xlu0 %v11319_v61, %s10692_s15  ;;  %2868 = vrot.lane.b32.xlu1 %v2208_v31, %s10691_s14 }
 0x1da   :  { %3196 = vrot.lane.b32.xlu0 %v11317_v60, %s10693_s16  ;;  %3031 = vrot.lane.b32.xlu1 %v11333_v11, %s10692_s15 }
 0x1de   :  { %3200 = vrot.lane.b32.xlu0 %v11319_v61, %s10693_s16  ;;  %3035 = vrot.lane.b32.xlu1 %v2208_v31, %s10692_s15 }
 0x1e2   :  { %3363 = vrot.lane.b32.xlu0 %v11317_v60, %s10694_s17  ;;  %3198 = vrot.lane.b32.xlu1 %v11333_v11, %s10693_s16 }
 0x1e6   :  { %3367 = vrot.lane.b32.xlu0 %v11319_v61, %s10694_s17  ;;  %3202 = vrot.lane.b32.xlu1 %v2208_v31, %s10693_s16 }
 0x1ea   :  { %3530 = vrot.lane.b32.xlu0 %v11317_v60, %s10695_s18  ;;  %3365 = vrot.lane.b32.xlu1 %v11333_v11, %s10694_s17 }
 0x1ee   :  { %3534 = vrot.lane.b32.xlu0 %v11319_v61, %s10695_s18  ;;  %3369 = vrot.lane.b32.xlu1 %v2208_v31, %s10694_s17 }
 0x1f2   :  { %2185 = vperm.xlu0 %10683, %v2176_v35   ;;  %3532 = vrot.lane.b32.xlu1 %v11333_v11, %s10695_s18 }
 0x1f6   :  { %3536 = vrot.lane.b32.xlu1 %v2208_v31, %s10695_s18 }
 0x228   :  { %v2225_v12 = vpop.permute.xlu0 %2224  ;;  %v2221_v13 = vpop.permute.xlu1 %2220 }
 0x22c   :  { %v2529_v36 = vpop.permute.xlu0 %2528  ;;  %v2223_v44 = vpop.permute.xlu1 %2222 }
 0x22d   :  { %v2230_v45 = vsel %vm68_vm0, %v2221_v13, %v2223_v44  ;;  %v2229_v49 = vsel %vm68_vm0, %v2223_v44, %v2225_v12 }
 0x22e   :  { %v2233_v48 = vmul.f32 %v2230_v45, %v10869_v17  ;;  %v2234_v59 = vmul.f32 %v2229_v49, %v10878_v20 }
 0x230   :  { %v2533_v50 = vpop.permute.xlu0 %2532  ;;  %2241 = vmatprep.subr.mxu0 %v2233_v48  ;;  %v2227_v51 = vpop.permute.xlu1 %2226 }
 0x231   :  { %v2228_v53 = vsel %vm68_vm0, %v2225_v12, %v2227_v51  ;;  %v2231_v55 = vsel %vm68_vm0, %v2227_v51, %v2221_v13 }
 0x232   :  { %v2232_v56 = vmul.f32 %v2231_v55, %v10875_v19  ;;  %v2235_v57 = vmul.f32 %v2228_v53, %v10872_v18 }
 0x234   :  { %v2696_v7 = vpop.permute.xlu0 %2695  ;;  %2242 = vmatpush1.msra.mxu0 %v2232_v56  ;;  %2312 = vmatprep.subr.mxu1 %v2235_v57  ;;  %v2531_v24 = vpop.permute.xlu1 %2530 }
 0x235   :  { %v2538_v35 = vsel %vm482_vm2, %v2529_v36, %v2531_v24  ;;  %10202 = vmatmul.mubr.msk.f32.vlgmr.msra.gmra.mrb[6].mxu0 %vm2237_vm10, %v2236_v58  ;;  %2313 = vmatpush1.msra.mxu1 %v2234_v59 }
 0x236   :  { %2386 = vmatprep.subr.mxu0 %v11333_v11  ;;  %10203 = vmatmul.mubr.msk.f32.vlgmr.msra.gmra.mrb[6].mxu1 %vm2237_vm10, %v2236_v58  ;;  %v2541_v12 = vmul.f32 %v2538_v35, %v10902_v34  ;;  %v2537_v11 = vsel %vm482_vm2, %v2531_v24, %v2533_v50 }
 0x237   :  { %2387 = vmatpush1.msra.mxu0 %v11317_v60  ;;  %2457 = vmatprep.subr.mxu1 %v2208_v31  ;;  %v10201_v31 = vld [vmem:[%s12670_s5 + $0x20] sm:$0xff] }
 0x238   :  { %2458 = vmatpush1.msra.mxu1 %v11319_v61  ;;  %v2700_v13 = vpop.permute.xlu0 %2699  ;;  %2549 = vmatprep.subr.mxu0 %v2541_v12  ;;  %v2535_v44 = vpop.permute.xlu1 %2534  ;;  %v10206_v12 = vld [vmem:[%s12670_s5 + $0x8] sm:$0xff] }
 0x239   :  { %v2536_v45 = vsel %vm482_vm2, %v2533_v50, %v2535_v44  ;;  %v2539_v48 = vsel %vm482_vm2, %v2535_v44, %v2529_v36  ;;  %2450 = vmatprep.mubr.f32.mxu0 %v12680_v2  ;;  %2521 = vmatprep.mubr.f32.mxu1 %v12680_v2  ;;  %v2542_v36 = vmul.f32 %v2537_v11, %v10945_v47 }
 0x23a   :  { %v2540_v60 = vmul.f32 %v2539_v48, %v10942_v46  ;;  %v2543_v61 = vmul.f32 %v2536_v45, %v10911_v37 }
 0x23c   :  { %v2863_v49 = vpop.permute.xlu0 %2862  ;;  %2620 = vmatprep.subr.mxu1 %v2543_v61  ;;  %v2698_v51 = vpop.permute.xlu1 %2697 }
 0x23d   :  { %v2705_v53 = vsel %vm725_vm4, %v2696_v7, %v2698_v51  ;;  %10204 = vmatmul.mubr.msk.f32.vlgmr.msra.gmra.mrb[6].mxu0 %vm2237_vm10, %v10201_v31  ;;  %v2704_v59 = vsel %vm725_vm4, %v2698_v51, %v2700_v13 }
 0x23e   :  { %2550 = vmatpush1.msra.mxu0 %v2540_v60  ;;  %10205 = vmatmul.mubr.msk.f32.vlgmr.msra.gmra.mrb[6].mxu1 %vm2237_vm10, %v10201_v31  ;;  %v2708_v50 = vmul.f32 %v2705_v53, %v10954_v52  ;;  %v2709_v48 = vmul.f32 %v2704_v59, %v11000_v6 }
 0x23f   :  { %2621 = vmatpush1.msra.mxu1 %v2542_v36  ;;  %2613 = vmatprep.mubr.f32.mxu0 %v12680_v2 }
 0x240   :  { %v2867_v55 = vpop.permute.xlu0 %2866  ;;  %2716 = vmatprep.subr.mxu0 %v2708_v50  ;;  %v2702_v56 = vpop.permute.xlu1 %2701  ;;  %2684 = vmatprep.mubr.f32.mxu1 %v12680_v2  ;;  %v10209_v50 = vld [vmem:[%s12670_s5 + $0x10] sm:$0xff] }
 0x241   :  { %v2703_v57 = vsel %vm725_vm4, %v2700_v13, %v2702_v56  ;;  %v2706_v58 = vsel %vm725_vm4, %v2702_v56, %v2696_v7 }
 0x242   :  { %v2707_v24 = vmul.f32 %v2706_v58, %v10997_v5  ;;  %v2710_v35 = vmul.f32 %v2703_v57, %v10961_v54 }
 0x244   :  { %v3030_v44 = vpop.permute.xlu0 %3029  ;;  %2787 = vmatprep.subr.mxu1 %v2710_v35  ;;  %v2865_v45 = vpop.permute.xlu1 %2864 }
 0x245   :  { %v2872_v11 = vsel %vm968_vm5, %v2863_v49, %v2865_v45  ;;  %10207 = vmatmul.mubr.msk.f32.vlgmr.msra.gmra.mrb[6].mxu0 %vm2237_vm10, %v10206_v12  ;;  %v2871_v51 = vsel %vm968_vm5, %v2865_v45, %v2867_v55 }
 0x246   :  { %2717 = vmatpush1.msra.mxu0 %v2707_v24  ;;  %10208 = vmatmul.mubr.msk.f32.vlgmr.msra.gmra.mrb[6].mxu1 %vm2237_vm10, %v10206_v12  ;;  %v2875_v7 = vmul.f32 %v2872_v11, %v11007_v16  ;;  %v2876_v58 = vmul.f32 %v2871_v51, %v11053_v39  ;;  %v10212_v11 = vld [vmem:[%s12670_s5 + $0x18] sm:$0xff] }
 0x247   :  { %2788 = vmatpush1.msra.mxu1 %v2709_v48  ;;  %2780 = vmatprep.mubr.f32.mxu0 %v12680_v2 }
 0x248   :  { %v3034_v13 = vpop.permute.xlu0 %3033  ;;  %2883 = vmatprep.subr.mxu0 %v2875_v7  ;;  %v2869_v60 = vpop.permute.xlu1 %2868  ;;  %2851 = vmatprep.mubr.f32.mxu1 %v12680_v2 }
 0x249   :  { %v2870_v61 = vsel %vm968_vm5, %v2867_v55, %v2869_v60  ;;  %v2873_v31 = vsel %vm968_vm5, %v2869_v60, %v2863_v49 }
 0x24a   :  { %v2874_v36 = vmul.f32 %v2873_v31, %v11050_v38  ;;  %v2877_v53 = vmul.f32 %v2870_v61, %v11010_v21 }
 0x24c   :  { %v3197_v56 = vpop.permute.xlu0 %3196  ;;  %2954 = vmatprep.subr.mxu1 %v2877_v53  ;;  %v3032_v57 = vpop.permute.xlu1 %3031 }
 0x24d   :  { %v3038_v59 = vsel %vm1211_vm6, %v3032_v57, %v3034_v13  ;;  %10210 = vmatmul.mubr.msk.f32.vlgmr.msra.gmra.mrb[6].mxu0 %vm2237_vm10, %v10209_v50  ;;  %v3039_v35 = vsel %vm1211_vm6, %v3030_v44, %v3032_v57 }
 0x24e   :  { %2884 = vmatpush1.msra.mxu0 %v2874_v36  ;;  %10211 = vmatmul.mubr.msk.f32.vlgmr.msra.gmra.mrb[6].mxu1 %vm2237_vm10, %v10209_v50  ;;  %v3042_v49 = vmul.f32 %v3038_v59, %v11060_v42  ;;  %v3041_v7 = vmul.f32 %v3039_v35, %v11103_v62  ;;  %v10215_v59 = vld [vmem:[%s12670_s5 + $0x28] sm:$0xff] }
 0x24f   :  { %2955 = vmatpush1.msra.mxu1 %v2876_v58  ;;  %2947 = vmatprep.mubr.f32.mxu0 %v12680_v2 }
 0x250   :  { %v3201_v55 = vpop.permute.xlu0 %3200  ;;  %3050 = vmatprep.subr.mxu0 %v3042_v49  ;;  %v3036_v24 = vpop.permute.xlu1 %3035  ;;  %3018 = vmatprep.mubr.f32.mxu1 %v12680_v2 }
 0x251   :  { %v3040_v12 = vsel %vm1211_vm6, %v3036_v24, %v3030_v44  ;;  %v3037_v45 = vsel %vm1211_vm6, %v3034_v13, %v3036_v24 }
 0x252   :  { %v3044_v48 = vmul.f32 %v3040_v12, %v11063_v43  ;;  %v3043_v31 = vmul.f32 %v3037_v45, %v11106_v63 }
 0x254   :  { %v3364_v60 = vpop.permute.xlu0 %3363  ;;  %3121 = vmatprep.subr.mxu1 %v3044_v48  ;;  %v3199_v61 = vpop.permute.xlu1 %3198 }
 0x255   :  { %v3205_v51 = vsel %vm1454_vm7, %v3199_v61, %v3201_v55  ;;  %10213 = vmatmul.mubr.msk.f32.vlgmr.msra.gmra.mrb[6].mxu0 %vm2237_vm10, %v10212_v11  ;;  %v3206_v53 = vsel %vm1454_vm7, %v3197_v56, %v3199_v61 }
 0x256   :  { %3051 = vmatpush1.msra.mxu0 %v3041_v7  ;;  %10214 = vmatmul.mubr.msk.f32.vlgmr.msra.gmra.mrb[6].mxu1 %vm2237_vm10, %v10212_v11  ;;  %v3209_v44 = vmul.f32 %v3205_v51, %v11113_v3  ;;  %v3208_v49 = vmul.f32 %v3206_v53, %v11156_v32 }
 0x257   :  { %3122 = vmatpush1.msra.mxu1 %v3043_v31  ;;  %3114 = vmatprep.mubr.f32.mxu0 %v12680_v2  ;;  %v10218_v31 = vld [vmem:[%s12670_s5 + $0x30] sm:$0xff] }
 0x258   :  { %v3368_v13 = vpop.permute.xlu0 %3367  ;;  %3217 = vmatprep.subr.mxu0 %v3209_v44  ;;  %v3203_v36 = vpop.permute.xlu1 %3202  ;;  %3185 = vmatprep.mubr.f32.mxu1 %v12680_v2 }
 0x259   :  { %v3207_v50 = vsel %vm1454_vm7, %v3203_v36, %v3197_v56  ;;  %v3204_v57 = vsel %vm1454_vm7, %v3201_v55, %v3203_v36 }
 0x25a   :  { %v3211_v58 = vmul.f32 %v3207_v50, %v11116_v4  ;;  %v3210_v35 = vmul.f32 %v3204_v57, %v11159_v33 }
 0x25c   :  { %3288 = vmatprep.subr.mxu1 %v3211_v58  ;;  %v3366_v24 = vpop.permute.xlu1 %3365  ;;  %v3531_v56 = vpop.permute.xlu0 %3530 }
 0x25d   :  { %v3372_v12 = vsel %vm1697_vm8, %v3366_v24, %v3368_v13  ;;  %10216 = vmatmul.mubr.msk.f32.vlgmr.msra.gmra.mrb[6].mxu0 %vm2237_vm10, %v10215_v59  ;;  %v3373_v48 = vsel %vm1697_vm8, %v3364_v60, %v3366_v24  ;;  %v10221_v24 = vld [vmem:[%s12670_s5 + $0x38] sm:$0xff] }
 0x25e   :  { %3218 = vmatpush1.msra.mxu0 %v3208_v49  ;;  %10217 = vmatmul.mubr.msk.f32.vlgmr.msra.gmra.mrb[6].mxu1 %vm2237_vm10, %v10215_v59  ;;  %v3376_v55 = vmul.f32 %v3372_v12, %v11166_v40  ;;  %v3375_v51 = vmul.f32 %v3373_v48, %v11209_v0  ;;  %v10224_v48 = vld [vmem:[%s12670_s5 + $0x40] sm:$0xff] }
 0x25f   :  { %3289 = vmatpush1.msra.mxu1 %v3210_v35  ;;  %3281 = vmatprep.mubr.f32.mxu0 %v12680_v2 }
 0x260   :  { %3384 = vmatprep.subr.mxu0 %v3376_v55  ;;  %v3370_v45 = vpop.permute.xlu1 %3369  ;;  %3352 = vmatprep.mubr.f32.mxu1 %v12680_v2  ;;  %v3535_v44 = vpop.permute.xlu0 %3534 }
 0x261   :  { %v3374_v11 = vsel %vm1697_vm8, %v3370_v45, %v3364_v60  ;;  %v3371_v7 = vsel %vm1697_vm8, %v3368_v13, %v3370_v45 }
 0x262   :  { %v3378_v61 = vmul.f32 %v3374_v11, %v11169_v41  ;;  %v3377_v53 = vmul.f32 %v3371_v7, %v11212_v1 }
 0x264   :  { %3455 = vmatprep.subr.mxu1 %v3378_v61  ;;  %v3533_v36 = vpop.permute.xlu1 %3532 }
 0x265   :  { %v3539_v50 = vsel %vm1940_vm9, %v3533_v36, %v3535_v44  ;;  %10219 = vmatmul.mubr.msk.f32.vlgmr.msra.gmra.mrb[6].mxu0 %vm2237_vm10, %v10218_v31  ;;  %v3540_v57 = vsel %vm1940_vm9, %v3531_v56, %v3533_v36 }
 0x266   :  { %3385 = vmatpush1.msra.mxu0 %v3375_v51  ;;  %10220 = vmatmul.mubr.msk.f32.vlgmr.msra.gmra.mrb[6].mxu1 %vm2237_vm10, %v10218_v31  ;;  %v3543_v60 = vmul.f32 %v3539_v50, %v11219_v14  ;;  %v3542_v35 = vmul.f32 %v3540_v57, %v11258_v29 }
 0x267   :  { %3456 = vmatpush1.msra.mxu1 %v3377_v53  ;;  %3448 = vmatprep.mubr.f32.mxu0 %v12680_v2 }
 0x268   :  { %3551 = vmatprep.subr.mxu0 %v3543_v60  ;;  %v3537_v13 = vpop.permute.xlu1 %3536  ;;  %3519 = vmatprep.mubr.f32.mxu1 %v12680_v2 }
 0x269   :  { %v3541_v58 = vsel %vm1940_vm9, %v3537_v13, %v3531_v56  ;;  %v3538_v59 = vsel %vm1940_vm9, %v3535_v44, %v3537_v13 }
 0x26a   :  { %v3545_v49 = vmul.f32 %v3541_v58, %v11222_v15  ;;  %v3544_v12 = vmul.f32 %v3538_v59, %v11261_v30 }
 0x26c   :  { %3622 = vmatprep.subr.mxu1 %v3545_v49 }
 0x26d   :  { %10222 = vmatmul.mubr.msk.f32.vlgmr.msra.gmra.mrb[6].mxu0 %vm2237_vm10, %v10221_v24 }
 0x26e   :  { %3552 = vmatpush1.msra.mxu0 %v3542_v35  ;;  %10223 = vmatmul.mubr.msk.f32.vlgmr.msra.gmra.mrb[6].mxu1 %vm2237_vm10, %v10221_v24  ;;  %v11658_v35 = vld [vmem:[%s12671_s0] sm:$0xff] }
 0x26f   :  { %3623 = vmatpush1.msra.mxu1 %v3544_v12  ;;  %3615 = vmatprep.mubr.f32.mxu0 %v12680_v2 }
 0x270   :  { %3686 = vmatprep.mubr.f32.mxu1 %v12680_v2 }
 0x271   :  { %v2186_v56 = vpop.permute.xlu0 %2185 }
 0x272   :  { %v2197_v55 = vadd.f32 %v2186_v56, %v11321_v8  ;;  %v2198_v45 = vadd.f32 %v2186_v56, %v11325_v23  ;;  %v2199_v11 = vadd.f32 %v2186_v56, %v11323_v22  ;;  %v2200_v7 = vadd.f32 %v2186_v56, %v11327_v10  ;;  %v2177_v23 = vld [vmem:[%s12667_s4 + $0x10] sm:$0xff] }
 0x274   :  { %v11560_v61 = vmax.f32 %v2197_v55, 0.0  ;;  %v11562_v31 = vmax.f32 %v2198_v45, 0.0  ;;  %v11571_v8 = vmax.f32 %v2199_v11, 0.0  ;;  %v11573_v22 = vmax.f32 %v2200_v7, 0.0 }
 0x275   :  { %10225 = vmatmul.mubr.msk.f32.vlgmr.msra.gmra.mrb[6].mxu0 %vm2237_vm10, %v10224_v48 }
 0x276   :  { %3874 = vrot.lane.b32.xlu0 %v11562_v31, %s10688_s29  ;;  %3872 = vrot.lane.b32.xlu1 %v11560_v61, %s10688_s29 }
 0x277   :  { %10226 = vmatmul.mubr.msk.f32.vlgmr.msra.gmra.mrb[6].mxu1 %vm2237_vm10, %v10224_v48  ;;  %3792 = vmatprep.mubr.f32.mxu0 %v12680_v2  ;;  %v11663_v48 = vld [vmem:[%s12671_s0 + $0x8] sm:$0xff] }
 0x278   :  { %3863 = vmatprep.mubr.f32.mxu1 %v12680_v2 }
 0x27a   :  { %3878 = vrot.lane.b32.xlu0 %v11573_v22, %s10688_s29  ;;  %3876 = vrot.lane.b32.xlu1 %v11571_v8, %s10688_s29 }
 0x27e   :  { %4181 = vrot.lane.b32.xlu0 %v11562_v31, %s10689_s1  ;;  %4179 = vrot.lane.b32.xlu1 %v11560_v61, %s10689_s1 }
 0x282   :  { %4185 = vrot.lane.b32.xlu0 %v11573_v22, %s10689_s1  ;;  %4183 = vrot.lane.b32.xlu1 %v11571_v8, %s10689_s1 }
 0x286   :  { %4348 = vrot.lane.b32.xlu0 %v11562_v31, %s10690_s30  ;;  %4346 = vrot.lane.b32.xlu1 %v11560_v61, %s10690_s30 }
 0x28a   :  { %4352 = vrot.lane.b32.xlu0 %v11573_v22, %s10690_s30  ;;  %4350 = vrot.lane.b32.xlu1 %v11571_v8, %s10690_s30 }
 0x28e   :  { %4515 = vrot.lane.b32.xlu0 %v11562_v31, %s10691_s14  ;;  %4513 = vrot.lane.b32.xlu1 %v11560_v61, %s10691_s14 }
 0x292   :  { %4519 = vrot.lane.b32.xlu0 %v11573_v22, %s10691_s14  ;;  %4517 = vrot.lane.b32.xlu1 %v11571_v8, %s10691_s14 }
 0x296   :  { %4682 = vrot.lane.b32.xlu0 %v11562_v31, %s10692_s15  ;;  %4680 = vrot.lane.b32.xlu1 %v11560_v61, %s10692_s15 }
 0x29a   :  { %4686 = vrot.lane.b32.xlu0 %v11573_v22, %s10692_s15  ;;  %4684 = vrot.lane.b32.xlu1 %v11571_v8, %s10692_s15 }
 0x29e   :  { %4849 = vrot.lane.b32.xlu0 %v11562_v31, %s10693_s16  ;;  %4847 = vrot.lane.b32.xlu1 %v11560_v61, %s10693_s16 }
 0x2a2   :  { %4853 = vrot.lane.b32.xlu0 %v11573_v22, %s10693_s16  ;;  %4851 = vrot.lane.b32.xlu1 %v11571_v8, %s10693_s16 }
 0x2a6   :  { %5016 = vrot.lane.b32.xlu0 %v11562_v31, %s10694_s17  ;;  %5014 = vrot.lane.b32.xlu1 %v11560_v61, %s10694_s17 }
 0x2aa   :  { %5020 = vrot.lane.b32.xlu0 %v11573_v22, %s10694_s17  ;;  %5018 = vrot.lane.b32.xlu1 %v11571_v8, %s10694_s17 }
 0x2ae   :  { %5183 = vrot.lane.b32.xlu0 %v11562_v31, %s10695_s18  ;;  %5181 = vrot.lane.b32.xlu1 %v11560_v61, %s10695_s18 }
 0x2b2   :  { %5187 = vrot.lane.b32.xlu0 %v11573_v22, %s10695_s18  ;;  %5185 = vrot.lane.b32.xlu1 %v11571_v8, %s10695_s18 }
 0x2b6   :  { %2190 = vperm.xlu1 %10684, %v2177_v23  }
 0x2e8   :  { %v3873_v10 = vpop.permute.xlu1 %3872  ;;  %v3875_v51 = vpop.permute.xlu0 %3874 }
 0x2ec   :  { %v3877_v44 = vpop.permute.xlu1 %3876  ;;  %v3879_v36 = vpop.permute.xlu0 %3878 }
 0x2ed   :  { %v3883_v29 = vsel %vm68_vm0, %v3879_v36, %v3873_v10 }
 0x2f0   :  { %v11639_v53 = vpop.permute.xlu1 %4179  ;;  %v11641_v50 = vpop.permute.xlu0 %4181 }
 0x2f4   :  { %v11643_v60 = vpop.permute.xlu1 %4183  ;;  %v11645_v13 = vpop.permute.xlu0 %4185 }
 0x2f8   :  { %v11647_v57 = vpop.permute.xlu1 %4346  ;;  %v11649_v58 = vpop.permute.xlu0 %4348 }
 0x2fc   :  { %v11651_v59 = vpop.permute.xlu1 %4350  ;;  %v11653_v24 = vpop.permute.xlu0 %4352 }
 0x300   :  { %v11666_v28 = vpop.permute.xlu1 %4513  ;;  %v11669_v27 = vpop.permute.xlu0 %4515 }
 0x348   :  { %v3617_v49 = vpop.f32.mrb[6].mxu0 }
 0x349   :  { %v3619_v12 = vpop.f32.mrb[7].mxu0 }
 0x34a   :  { %v3701_v56 = vcombine.low %v3617_v49, %v3619_v12  ;;  %v3707_v55 = vcombine.high %v3617_v49, %v3619_v12  ;;  %v3688_v45 = vpop.f32.mrb[6].mxu1  ;;  %v3882_v49 = vsel %vm68_vm0, %v3873_v10, %v3875_v51  ;;  %v11690_v10 = vpop.permute.xlu0 %4519 }
 0x34b   :  { %v3690_v11 = vpop.f32.mrb[7].mxu1 }
 0x34c   :  { %v3705_v7 = vmul.f32 %v3701_v56, %v11658_v35  ;;  %v3702_v23 = vcombine.low %v3688_v45, %v3690_v11  ;;  %v3708_v2 = vcombine.high %v3688_v45, %v3690_v11  ;;  %v2217_v56 = vld [vmem:[%s12672_s12] sm:$0xff]  ;;  %v3880_v45 = vsel %vm68_vm0, %v3877_v44, %v3879_v36 }
 0x34d   :  { %v3881_v11 = vsel %vm68_vm0, %v3875_v51, %v3877_v44  ;;  %v3887_v36 = vmul.f32 %v3880_v45, %v10872_v18  ;;  %v12692_v44 = vmov 0.0  }
 0x34e   :  { %v3711_v26 = vadd.f32 %v3707_v55, %v3705_v7  ;;  %v3706_v25 = vmul.f32 %v3702_v23, %v11663_v48  ;;  %v11683_v7 = vpop.permute.xlu1 %4517  ;;  %v3886_v51 = vmul.f32 %v3881_v11, %v10878_v20 }
 0x350   :  { %v3715_v12 = vcombine.high %v3711_v26, %v3711_v26  ;;  %v3712_v30 = vadd.f32 %v3708_v2, %v3706_v25  ;;  %v3885_v2 = vmul.f32 %v3882_v49, %v10869_v17  ;;  %v3884_v25 = vmul.f32 %v3883_v29, %v10875_v19  ;;  %v3888_v29 = vld [vmem:[%s12673_s6] sm:$0xff] }
 0x352   :  { %v3716_v55 = vcombine.high %v3712_v30, %v3712_v30  ;;  %10227 = vmatprep.subr.msk.mxu0 %vm112_vm1, %v3715_v12  ;;  %v11709_v23 = vpop.permute.xlu1 %4680 }
 0x353   :  { %10228 = vmatpush1.msk.msra.mxu0 %vm112_vm1, %v3711_v26  ;;  %v4189_v26 = vsel %vm482_vm2, %v11639_v53, %v11641_v50 }
 0x354   :  { %10230 = vmatprep.subr.msk.mxu1 %vm112_vm1, %v3716_v55  ;;  %10229 = vmatmul.mubr.msk.f32.vlgmr.msra.gmra.mrb[8].mxu0 %vm102_vm3, %v2217_v56  ;;  %v4192_v49 = vmul.f32 %v4189_v26, %v10902_v34  ;;  %v4355_v26 = vsel %vm725_vm4, %v11649_v58, %v11651_v59 }
 0x355   :  { %10231 = vmatpush1.msk.msra.mxu1 %vm112_vm1, %v3712_v30  ;;  %3892 = vmatprep.subr.mxu0 %v3885_v2  ;;  %v4187_v30 = vsel %vm482_vm2, %v11643_v60, %v11645_v13 }
 0x356   :  { %10232 = vmatmul.mubr.msk.f32.vlgmr.msra.gmra.mrb[8].mxu1 %vm102_vm3, %v2217_v56  ;;  %3893 = vmatpush1.msra.mxu0 %v3884_v25  ;;  %v4194_v12 = vmul.f32 %v4187_v30, %v10911_v37  ;;  %v10233_v56 = vld [vmem:[%s12673_s6 + $0x20] sm:$0xff]  ;;  %v4685_v45 = vpop.permute.xlu1 %4684 }
 0x357   :  { %3963 = vmatprep.subr.mxu1 %v3887_v36  ;;  %4037 = vmatprep.subr.mxu0 %v11562_v31  ;;  %v11716_v31 = vpop.permute.xlu0 %4682  ;;  %v4523_v36 = vsel %vm968_vm5, %v11666_v28, %v11669_v27 }
 0x358   :  { %3964 = vmatpush1.msra.mxu1 %v3886_v51  ;;  %3956 = vmatprep.mubr.f32.mxu0 %v12692_v44  ;;  %v10238_v51 = vld [vmem:[%s12673_s6 + $0x8] sm:$0xff] }
 0x359   :  { %4108 = vmatprep.subr.mxu1 %v11573_v22  ;;  %10234 = vmatmul.mubr.msk.f32.vlgmr.msra.gmra.mrb[10].mxu0 %vm2237_vm10, %v3888_v29  ;;  %v4190_v22 = vsel %vm482_vm2, %v11645_v13, %v11639_v53  ;;  %v4354_v13 = vsel %vm725_vm4, %v11651_v59, %v11653_v24  ;;  %v4524_v59 = vsel %vm968_vm5, %v11690_v10, %v11666_v28 }
 0x35a   :  { %4027 = vmatprep.mubr.f32.mxu1 %v12692_v44  ;;  %4038 = vmatpush1.msra.mxu0 %v11560_v61  ;;  %v4356_v61 = vsel %vm725_vm4, %v11647_v57, %v11649_v58  ;;  %v4191_v53 = vmul.f32 %v4190_v22, %v10942_v46  ;;  %v4848_v25 = vpop.permute.xlu1 %4847 }
 0x35b   :  { %10235 = vmatmul.mubr.msk.f32.vlgmr.msra.gmra.mrb[10].mxu1 %vm2237_vm10, %v3888_v29  ;;  %4200 = vmatprep.subr.mxu0 %v4192_v49  ;;  %v4687_v55 = vpop.permute.xlu0 %4686  ;;  %v4359_v11 = vmul.f32 %v4356_v61, %v10954_v52  ;;  %v4360_v49 = vmul.f32 %v4355_v26, %v11000_v6  ;;  %v4689_v61 = vsel %vm1211_vm6, %v11716_v31, %v4685_v45 }
 0x35c   :  { %4109 = vmatpush1.msra.mxu1 %v11571_v8  ;;  %4101 = vmatprep.mubr.f32.mxu0 %v12692_v44  ;;  %v4188_v8 = vsel %vm482_vm2, %v11641_v50, %v11643_v60  ;;  %v4361_v50 = vmul.f32 %v4354_v13, %v10961_v54  ;;  %v4357_v60 = vsel %vm725_vm4, %v11653_v24, %v11647_v57 }
 0x35d   :  { %4271 = vmatprep.subr.mxu1 %v4194_v12  ;;  %4172 = vmatprep.mubr.f32.mxu1 %v12692_v44  ;;  %v4193_v2 = vmul.f32 %v4188_v8, %v10945_v47  ;;  %v4358_v30 = vmul.f32 %v4357_v60, %v10997_v5  ;;  %v4521_v57 = vsel %vm968_vm5, %v11683_v7, %v11690_v10  ;;  %v10244_v60 = vld [vmem:[%s12673_s6 + $0x18] sm:$0xff] }
 0x35e   :  { %v4526_v24 = vmul.f32 %v4523_v36, %v11007_v16  ;;  %v4852_v12 = vpop.permute.xlu1 %4851  ;;  %v4528_v58 = vmul.f32 %v4521_v57, %v11010_v21  ;;  %v4522_v8 = vsel %vm968_vm5, %v11669_v27, %v11683_v7  ;;  %v4691_v28 = vsel %vm1211_vm6, %v4687_v55, %v11709_v23 }
 0x35f   :  { %v4850_v29 = vpop.permute.xlu0 %4849  ;;  %v4693_v13 = vmul.f32 %v4689_v61, %v11060_v42  ;;  %v4695_v27 = vmul.f32 %v4691_v28, %v11063_v43  ;;  %v4690_v7 = vsel %vm1211_vm6, %v11709_v23, %v11716_v31  ;;  %v4688_v36 = vsel %vm1211_vm6, %v4685_v45, %v4687_v55 }
 0x360   :  { %v4692_v26 = vmul.f32 %v4690_v7, %v11103_v62  ;;  %v4694_v31 = vmul.f32 %v4688_v36, %v11106_v63  ;;  %v4857_v55 = vsel %vm1454_vm7, %v4848_v25, %v4850_v29 }
 0x361   :  { %10236 = vmatmul.mubr.msk.f32.vlgmr.msra.gmra.mrb[10].mxu0 %vm2237_vm10, %v10233_v56 }
 0x362   :  { %4201 = vmatpush1.msra.mxu0 %v4191_v53  ;;  %4264 = vmatprep.mubr.f32.mxu0 %v12692_v44  ;;  %v4525_v53 = vmul.f32 %v4524_v59, %v11050_v38  ;;  %v5015_v10 = vpop.permute.xlu1 %5014 }
 0x363   :  { %10237 = vmatmul.mubr.msk.f32.vlgmr.msra.gmra.mrb[10].mxu1 %vm2237_vm10, %v10233_v56  ;;  %4367 = vmatprep.subr.mxu0 %v4359_v11  ;;  %v4854_v22 = vpop.permute.xlu0 %4853  ;;  %v10241_v56 = vld [vmem:[%s12673_s6 + $0x10] sm:$0xff]  ;;  %v4527_v11 = vmul.f32 %v4522_v8, %v11053_v39 }
 0x364   :  { %4272 = vmatpush1.msra.mxu1 %v4193_v2  ;;  %4335 = vmatprep.mubr.f32.mxu1 %v12692_v44  ;;  %v4855_v59 = vsel %vm1454_vm7, %v4852_v12, %v4854_v22 }
 0x365   :  { %4438 = vmatprep.subr.mxu1 %v4361_v50  ;;  %v4856_v50 = vsel %vm1454_vm7, %v4850_v29, %v4852_v12  ;;  %v4861_v29 = vmul.f32 %v4855_v59, %v11159_v33 }
 0x366   :  { %v4860_v23 = vmul.f32 %v4856_v50, %v11113_v3 }
 0x367   :  { %v5017_v2 = vpop.permute.xlu0 %5016 }
 0x369   :  { %10239 = vmatmul.mubr.msk.f32.vlgmr.msra.gmra.mrb[10].mxu0 %vm2237_vm10, %v10238_v51 }
 0x36a   :  { %4368 = vmatpush1.msra.mxu0 %v4358_v30  ;;  %4431 = vmatprep.mubr.f32.mxu0 %v12692_v44  ;;  %v4858_v30 = vsel %vm1454_vm7, %v4854_v22, %v4848_v25  ;;  %v5024_v22 = vsel %vm1697_vm8, %v5015_v10, %v5017_v2 }
 0x36b   :  { %10240 = vmatmul.mubr.msk.f32.vlgmr.msra.gmra.mrb[10].mxu1 %vm2237_vm10, %v10238_v51  ;;  %4534 = vmatprep.subr.mxu0 %v4526_v24  ;;  %v5019_v51 = vpop.permute.xlu1 %5018  ;;  %v5021_v57 = vpop.permute.xlu0 %5020  ;;  %v4862_v45 = vmul.f32 %v4858_v30, %v11116_v4  ;;  %v5026_v7 = vmul.f32 %v5024_v22, %v11209_v0  ;;  %v12693_v30 = vld [vmem:[#allocation2_spill] sm:$0xff] }
 0x36c   :  { %4439 = vmatpush1.msra.mxu1 %v4360_v49  ;;  %4502 = vmatprep.mubr.f32.mxu1 %v12692_v44  ;;  %v5023_v49 = vsel %vm1697_vm8, %v5017_v2, %v5019_v51  ;;  %v5025_v8 = vsel %vm1697_vm8, %v5021_v57, %v5015_v10 }
 0x36d   :  { %4605 = vmatprep.subr.mxu1 %v4528_v58  ;;  %v10247_v58 = vld [vmem:[%s12673_s6 + $0x28] sm:$0xff]  ;;  %v5027_v25 = vmul.f32 %v5023_v49, %v11166_v40  ;;  %v5029_v12 = vmul.f32 %v5025_v8, %v11169_v41 }
 0x36f   :  { %v5182_v24 = vpop.permute.xlu1 %5181  ;;  %v5184_v61 = vpop.permute.xlu0 %5183 }
 0x370   :  { %v5191_v36 = vsel %vm1940_vm9, %v5182_v24, %v5184_v61 }
 0x371   :  { %10242 = vmatmul.mubr.msk.f32.vlgmr.msra.gmra.mrb[10].mxu0 %vm2237_vm10, %v10241_v56 }
 0x372   :  { %4535 = vmatpush1.msra.mxu0 %v4525_v53  ;;  %4598 = vmatprep.mubr.f32.mxu0 %v12692_v44 }
 0x373   :  { %10243 = vmatmul.mubr.msk.f32.vlgmr.msra.gmra.mrb[10].mxu1 %vm2237_vm10, %v10241_v56  ;;  %4701 = vmatprep.subr.mxu0 %v4693_v13  ;;  %v4859_v56 = vmul.f32 %v4857_v55, %v11156_v32  ;;  %v5186_v53 = vpop.permute.xlu1 %5185  ;;  %v5188_v28 = vpop.permute.xlu0 %5187 }
 0x374   :  { %4606 = vmatpush1.msra.mxu1 %v4527_v11  ;;  %4669 = vmatprep.mubr.f32.mxu1 %v12692_v44  ;;  %v5190_v13 = vsel %vm1940_vm9, %v5184_v61, %v5186_v53  ;;  %v10250_v11 = vld [vmem:[%s12673_s6 + $0x30] sm:$0xff]  ;;  %v5192_v50 = vsel %vm1940_vm9, %v5188_v28, %v5182_v24 }
 0x375   :  { %4772 = vmatprep.subr.mxu1 %v4695_v27  ;;  %v5022_v27 = vsel %vm1697_vm8, %v5019_v51, %v5021_v57  ;;  %v5194_v10 = vmul.f32 %v5190_v13, %v11219_v14  ;;  %v10253_v51 = vld [vmem:[%s12673_s6 + $0x38] sm:$0xff]  ;;  %v5193_v57 = vmul.f32 %v5191_v36, %v12693_v30 }
 0x376   :  { %v5028_v2 = vmul.f32 %v5022_v27, %v11212_v1  ;;  %v12697_v36 = vld [vmem:[#allocation5_spill] sm:$0xff] }
 0x379   :  { %10245 = vmatmul.mubr.msk.f32.vlgmr.msra.gmra.mrb[10].mxu0 %vm2237_vm10, %v10244_v60 }
 0x37a   :  { %4702 = vmatpush1.msra.mxu0 %v4692_v26  ;;  %4765 = vmatprep.mubr.f32.mxu0 %v12692_v44  ;;  %v5189_v26 = vsel %vm1940_vm9, %v5186_v53, %v5188_v28 }
 0x37b   :  { %10246 = vmatmul.mubr.msk.f32.vlgmr.msra.gmra.mrb[10].mxu1 %vm2237_vm10, %v10244_v60  ;;  %4868 = vmatprep.subr.mxu0 %v4860_v23  ;;  %v5196_v60 = vmul.f32 %v5192_v50, %v11222_v15  ;;  %v12694_v23 = vld [vmem:[#allocation3_spill] sm:$0xff] }
 0x37c   :  { %4773 = vmatpush1.msra.mxu1 %v4694_v31  ;;  %4836 = vmatprep.mubr.f32.mxu1 %v12692_v44  ;;  %v5195_v31 = vmul.f32 %v5189_v26, %v12694_v23 }
 0x37d   :  { %4939 = vmatprep.subr.mxu1 %v4862_v45  ;;  %v10256_v45 = vld [vmem:[%s12673_s6 + $0x40] sm:$0xff] }
 0x381   :  { %10248 = vmatmul.mubr.msk.f32.vlgmr.msra.gmra.mrb[10].mxu0 %vm2237_vm10, %v10247_v58 }
 0x382   :  { %4869 = vmatpush1.msra.mxu0 %v4859_v56  ;;  %4932 = vmatprep.mubr.f32.mxu0 %v12692_v44 }
 0x383   :  { %10249 = vmatmul.mubr.msk.f32.vlgmr.msra.gmra.mrb[10].mxu1 %vm2237_vm10, %v10247_v58  ;;  %5035 = vmatprep.subr.mxu0 %v5027_v25 }
 0x384   :  { %4940 = vmatpush1.msra.mxu1 %v4861_v29  ;;  %5003 = vmatprep.mubr.f32.mxu1 %v12692_v44 }
 0x385   :  { %5106 = vmatprep.subr.mxu1 %v5029_v12 }
 0x389   :  { %10251 = vmatmul.mubr.msk.f32.vlgmr.msra.gmra.mrb[10].mxu0 %vm2237_vm10, %v10250_v11 }
 0x38a   :  { %5036 = vmatpush1.msra.mxu0 %v5026_v7  ;;  %5099 = vmatprep.mubr.f32.mxu0 %v12692_v44  ;;  %v12695_v7 = vld [vmem:[#allocation6_spill] sm:$0xff] }
 0x38b   :  { %10252 = vmatmul.mubr.msk.f32.vlgmr.msra.gmra.mrb[10].mxu1 %vm2237_vm10, %v10250_v11  ;;  %5202 = vmatprep.subr.mxu0 %v5194_v10 }
 0x38c   :  { %5107 = vmatpush1.msra.mxu1 %v5028_v2  ;;  %5170 = vmatprep.mubr.f32.mxu1 %v12692_v44  ;;  %v12696_v2 = vld [vmem:[#allocation4_spill] sm:$0xff] }
 0x38d   :  { %5273 = vmatprep.subr.mxu1 %v5196_v60 }
 0x391   :  { %10254 = vmatmul.mubr.msk.f32.vlgmr.msra.gmra.mrb[10].mxu0 %vm2237_vm10, %v10253_v51 }
 0x392   :  { %5203 = vmatpush1.msra.mxu0 %v5193_v57  ;;  %5266 = vmatprep.mubr.f32.mxu0 %v12692_v44  ;;  %v12698_v57 = vld [vmem:[#allocation7_spill] sm:$0xff] }
 0x393   :  { %10255 = vmatmul.mubr.msk.f32.vlgmr.msra.gmra.mrb[10].mxu1 %vm2237_vm10, %v10253_v51 }
 0x394   :  { %5274 = vmatpush1.msra.mxu1 %v5195_v31  ;;  %5337 = vmatprep.mubr.f32.mxu1 %v12692_v44 }
 0x399   :  { %10257 = vmatmul.mubr.msk.f32.vlgmr.msra.gmra.mrb[10].mxu0 %vm2237_vm10, %v10256_v45 }
 0x39a   :  { %5472 = vmatprep.mubr.f32.mxu0 %v12692_v44 }
 0x39b   :  { %10258 = vmatmul.mubr.msk.f32.vlgmr.msra.gmra.mrb[10].mxu1 %vm2237_vm10, %v10256_v45 }
 0x39c   :  { %5543 = vmatprep.mubr.f32.mxu1 %v12692_v44 }
 0x46c   :  { %v5268_v55 = vpop.f32.mrb[10].mxu0 }
 0x46d   :  { %v5270_v24 = vpop.f32.mrb[11].mxu0 }
 0x46e   :  { %v5352_v49 = vcombine.low %v5268_v55, %v5270_v24  ;;  %v5358_v58 = vcombine.high %v5268_v55, %v5270_v24  ;;  %v5339_v59 = vpop.f32.mrb[10].mxu1 }
 0x46f   :  { %v5341_v61 = vpop.f32.mrb[11].mxu1 }
 0x470   :  { %v5356_v56 = vmul.f32 %v5352_v49, %v11658_v35  ;;  %v5353_v8 = vcombine.low %v5339_v59, %v5341_v61  ;;  %v5359_v25 = vcombine.high %v5339_v59, %v5341_v61  ;;  %v2191_v35 = vpop.permute.xlu1 %2190 }
 0x471   :  { %v2201_v60 = vadd.f32 %v2191_v35, %v12696_v2  ;;  %v2203_v51 = vadd.f32 %v2191_v35, %v12697_v36  ;;  %v2204_v31 = vadd.f32 %v2191_v35, %v12698_v57  ;;  %v6956_v2 = vld [vmem:[%s12675_s9] sm:$0xf] }
 0x472   :  { %v5362_v29 = vadd.f32 %v5358_v58, %v5356_v56  ;;  %v5357_v53 = vmul.f32 %v5353_v8, %v11663_v48  ;;  %v2202_v48 = vadd.f32 %v2191_v35, %v12695_v7 }
 0x473   :  { %v11962_v26 = vmax.f32 %v2201_v60, 0.0  ;;  %v11969_v45 = vmax.f32 %v2203_v51, 0.0  ;;  %v11973_v55 = vmax.f32 %v2204_v31, 0.0 }
 0x474   :  { %v5364_v12 = vmul.f32 0.2, %v5362_v29  ;;  %v5363_v22 = vadd.f32 %v5359_v25, %v5357_v53  ;;  %v11904_v10 = vmax.f32 %v2202_v48, 0.0 }
 0x476   :  { %v11883_v28 = vmax.f32 %v5362_v29, %v5364_v12  ;;  %v5365_v13 = vmul.f32 0.2, %v5363_v22 }
 0x478   :  { %v11885_v11 = vmax.f32 %v5363_v22, %v5365_v13  ;;  %5376 = vrot.lane.b32.xlu0 %v11883_v28, %s10688_s29  ;;  %v11891_v27 = vcombine.high %v11883_v28, %v11883_v28  ;;  %v5392_v13 = vld [vmem:[%s12674_s8] sm:$0xf] }
 0x47a   :  { %5378 = vrot.lane.b32.xlu1 %v11891_v27, %s10688_s29  ;;  %v11900_v50 = vcombine.high %v11885_v11, %v11885_v11 }
 0x47c   :  { %5380 = vrot.lane.b32.xlu0 %v11885_v11, %s10688_s29 }
 0x47e   :  { %5382 = vrot.lane.b32.xlu1 %v11900_v50, %s10688_s29 }
 0x480   :  { %5703 = vrot.lane.b32.xlu0 %v11883_v28, %s10689_s1 }
 0x482   :  { %6970 = vrot.lane.b32.xlu1 %v11904_v10, %s10688_s29 }
 0x484   :  { %5707 = vrot.lane.b32.xlu0 %v11885_v11, %s10689_s1 }
 0x486   :  { %5705 = vrot.lane.b32.xlu1 %v11891_v27, %s10689_s1 }
 0x488   :  { %5882 = vrot.lane.b32.xlu0 %v11883_v28, %s10690_s30 }
 0x48a   :  { %5709 = vrot.lane.b32.xlu1 %v11900_v50, %s10689_s1 }
 0x48c   :  { %5886 = vrot.lane.b32.xlu0 %v11885_v11, %s10690_s30 }
 0x48e   :  { %5884 = vrot.lane.b32.xlu1 %v11891_v27, %s10690_s30 }
 0x490   :  { %6061 = vrot.lane.b32.xlu0 %v11883_v28, %s10691_s14 }
 0x492   :  { %5888 = vrot.lane.b32.xlu1 %v11900_v50, %s10690_s30 }
 0x494   :  { %6065 = vrot.lane.b32.xlu0 %v11885_v11, %s10691_s14 }
 0x496   :  { %6063 = vrot.lane.b32.xlu1 %v11891_v27, %s10691_s14 }
 0x498   :  { %6240 = vrot.lane.b32.xlu0 %v11883_v28, %s10692_s15 }
 0x49a   :  { %6067 = vrot.lane.b32.xlu1 %v11900_v50, %s10691_s14 }
 0x49c   :  { %6244 = vrot.lane.b32.xlu0 %v11885_v11, %s10692_s15 }
 0x49e   :  { %6242 = vrot.lane.b32.xlu1 %v11891_v27, %s10692_s15 }
 0x4a0   :  { %6419 = vrot.lane.b32.xlu0 %v11883_v28, %s10693_s16 }
 0x4a2   :  { %6246 = vrot.lane.b32.xlu1 %v11900_v50, %s10692_s15 }
 0x4a4   :  { %6423 = vrot.lane.b32.xlu0 %v11885_v11, %s10693_s16 }
 0x4a6   :  { %6421 = vrot.lane.b32.xlu1 %v11891_v27, %s10693_s16 }
 0x4a8   :  { %6598 = vrot.lane.b32.xlu0 %v11883_v28, %s10694_s17 }
 0x4aa   :  { %6425 = vrot.lane.b32.xlu1 %v11900_v50, %s10693_s16 }
 0x4ac   :  { %6602 = vrot.lane.b32.xlu0 %v11885_v11, %s10694_s17 }
 0x4ae   :  { %6600 = vrot.lane.b32.xlu1 %v11891_v27, %s10694_s17 }
 0x4b0   :  { %6777 = vrot.lane.b32.xlu0 %v11883_v28, %s10695_s18 }
 0x4b2   :  { %6604 = vrot.lane.b32.xlu1 %v11900_v50, %s10694_s17 }
 0x4b4   :  { %6781 = vrot.lane.b32.xlu0 %v11885_v11, %s10695_s18 }
 0x4b6   :  { %6779 = vrot.lane.b32.xlu1 %v11891_v27, %s10695_s18 }
 0x4b8   :  { %6968 = vrot.lane.b32.xlu0 %v11962_v26, %s10688_s29 }
 0x4ba   :  { %6783 = vrot.lane.b32.xlu1 %v11900_v50, %s10695_s18 }
 0x4bc   :  { %6972 = vrot.lane.b32.xlu0 %v11969_v45, %s10688_s29 }
 0x4be   :  { %6974 = vrot.lane.b32.xlu1 %v11973_v55, %s10688_s29 }
 0x4c0   :  { %7275 = vrot.lane.b32.xlu0 %v11962_v26, %s10689_s1 }
 0x4c2   :  { %7277 = vrot.lane.b32.xlu1 %v11904_v10, %s10689_s1 }
 0x4c4   :  { %7279 = vrot.lane.b32.xlu0 %v11969_v45, %s10689_s1 }
 0x4c6   :  { %7281 = vrot.lane.b32.xlu1 %v11973_v55, %s10689_s1 }
 0x4c8   :  { %7442 = vrot.lane.b32.xlu0 %v11962_v26, %s10690_s30 }
 0x4ca   :  { %7444 = vrot.lane.b32.xlu1 %v11904_v10, %s10690_s30 }
 0x4cc   :  { %7446 = vrot.lane.b32.xlu0 %v11969_v45, %s10690_s30 }
 0x4ce   :  { %7448 = vrot.lane.b32.xlu1 %v11973_v55, %s10690_s30 }
 0x4d0   :  { %7609 = vrot.lane.b32.xlu0 %v11962_v26, %s10691_s14 }
 0x4d2   :  { %7611 = vrot.lane.b32.xlu1 %v11904_v10, %s10691_s14 }
 0x4d4   :  { %7613 = vrot.lane.b32.xlu0 %v11969_v45, %s10691_s14 }
 0x4d6   :  { %7615 = vrot.lane.b32.xlu1 %v11973_v55, %s10691_s14 }
 0x4d8   :  { %7776 = vrot.lane.b32.xlu0 %v11962_v26, %s10692_s15 }
 0x4da   :  { %7778 = vrot.lane.b32.xlu1 %v11904_v10, %s10692_s15 }
 0x4dc   :  { %7780 = vrot.lane.b32.xlu0 %v11969_v45, %s10692_s15 }
 0x4de   :  { %7782 = vrot.lane.b32.xlu1 %v11973_v55, %s10692_s15 }
 0x4e0   :  { %7943 = vrot.lane.b32.xlu0 %v11962_v26, %s10693_s16 }
 0x4e2   :  { %7945 = vrot.lane.b32.xlu1 %v11904_v10, %s10693_s16 }
 0x4e4   :  { %7947 = vrot.lane.b32.xlu0 %v11969_v45, %s10693_s16 }
 0x4e6   :  { %7949 = vrot.lane.b32.xlu1 %v11973_v55, %s10693_s16 }
 0x4e8   :  { %8110 = vrot.lane.b32.xlu0 %v11962_v26, %s10694_s17 }
 0x4ea   :  { %v5377_v24 = vpop.permute.xlu0 %5376  ;;  %8112 = vrot.lane.b32.xlu1 %v11904_v10, %s10694_s17 }
 0x4ec   :  { %8114 = vrot.lane.b32.xlu0 %v11969_v45, %s10694_s17  ;;  %v5379_v49 = vpop.permute.xlu1 %5378 }
 0x4ed   :  { %v5386_v58 = vsel %vm68_vm0, %v5377_v24, %v5379_v49 }
 0x4ee   :  { %v5389_v59 = vmul.f32 %v5386_v58, %v10869_v17  ;;  %v5381_v61 = vpop.permute.xlu0 %5380  ;;  %8116 = vrot.lane.b32.xlu1 %v11973_v55, %s10694_s17 }
 0x4ef   :  { %v5385_v8 = vsel %vm68_vm0, %v5379_v49, %v5381_v61 }
 0x4f0   :  { %8277 = vrot.lane.b32.xlu0 %v11962_v26, %s10695_s18  ;;  %10260 = vmatprep.subr.msk.mxu0 %vm112_vm1, %v5389_v59  ;;  %v5383_v56 = vpop.permute.xlu1 %5382  ;;  %v5390_v35 = vmul.f32 %v5385_v8, %v10878_v20 }
 0x4f1   :  { %v5384_v25 = vsel %vm68_vm0, %v5381_v61, %v5383_v56  ;;  %v5387_v29 = vsel %vm68_vm0, %v5383_v56, %v5377_v24 }
 0x4f2   :  { %v5388_v53 = vmul.f32 %v5387_v29, %v10875_v19  ;;  %v5391_v12 = vmul.f32 %v5384_v25, %v10872_v18  ;;  %v5704_v22 = vpop.permute.xlu0 %5703  ;;  %8279 = vrot.lane.b32.xlu1 %v11904_v10, %s10695_s18  ;;  %v10272_v29 = vld [vmem:[%s12674_s8 + $0x4] sm:$0xf] }
 0x4f4   :  { %8281 = vrot.lane.b32.xlu0 %v11969_v45, %s10695_s18  ;;  %10261 = vmatpush1.msk.msra.mxu0 %vm112_vm1, %v5388_v53  ;;  %v12050_v7 = vpop.permute.xlu1 %6970 }
 0x4f5   :  { %10263 = vmatprep.subr.msk.mxu1 %vm112_vm1, %v5391_v12  ;;  %10262 = vmatmul.mubr.msk.f32.vlgmr.msra.gmra.mrb[12].mxu0 %vm102_vm3, %v5392_v13 }
 0x4f6   :  { %10264 = vmatpush1.msk.msra.mxu1 %vm112_vm1, %v5390_v35  ;;  %10266 = vmatprep.subr.msk.mxu0 %vm112_vm1, %v11891_v27  ;;  %v5708_v48 = vpop.permute.xlu0 %5707 }
 0x4f7   :  { %8283 = vrot.lane.b32.xlu1 %v11973_v55, %s10695_s18  ;;  %10265 = vmatmul.mubr.msk.f32.vlgmr.msra.gmra.mrb[12].mxu1 %vm102_vm3, %v5392_v13 }
 0x4f8   :  { %10267 = vmatpush1.msk.msra.mxu0 %vm112_vm1, %v11883_v28  ;;  %10269 = vmatprep.subr.msk.mxu1 %vm112_vm1, %v11900_v50  ;;  %v5706_v60 = vpop.permute.xlu1 %5705  ;;  %v10259_v28 = vld [vmem:[%s12674_s8 + $0x10] sm:$0xf] }
 0x4f9   :  { %10270 = vmatpush1.msk.msra.mxu1 %vm112_vm1, %v11885_v11  ;;  %6959 = vperm.xlu0 %10683, %v6956_v2   ;;  %v5713_v27 = vsel %vm482_vm2, %v5704_v22, %v5706_v60  ;;  %v5712_v50 = vsel %vm482_vm2, %v5706_v60, %v5708_v48 }
 0x4fa   :  { %v5716_v36 = vmul.f32 %v5713_v27, %v10902_v34  ;;  %v5883_v51 = vpop.permute.xlu0 %5882  ;;  %5625 = vmatprep.mubr.f32.mxu0 %v12692_v44  ;;  %5696 = vmatprep.mubr.f32.mxu1 %v12692_v44  ;;  %v5717_v59 = vmul.f32 %v5712_v50, %v10945_v47  ;;  %v10279_v50 = vld [vmem:[%s12674_s8 + $0x8] sm:$0xf] }
 0x4fc   :  { %10273 = vmatprep.subr.msk.mxu0 %vm112_vm1, %v5716_v36  ;;  %v5710_v11 = vpop.permute.xlu1 %5709 }
 0x4fd   :  { %v5711_v57 = vsel %vm482_vm2, %v5708_v48, %v5710_v11  ;;  %v5714_v31 = vsel %vm482_vm2, %v5710_v11, %v5704_v22  ;;  %10268 = vmatmul.mubr.msk.f32.vlgmr.msra.gmra.mrb[12].mxu0 %vm102_vm3, %v10259_v28 }
 0x4fe   :  { %v5715_v24 = vmul.f32 %v5714_v31, %v10942_v46  ;;  %v5718_v49 = vmul.f32 %v5711_v57, %v10911_v37  ;;  %v5887_v58 = vpop.permute.xlu0 %5886  ;;  %5800 = vmatprep.mubr.f32.mxu0 %v12692_v44 }
 0x4ff   :  { %10271 = vmatmul.mubr.msk.f32.vlgmr.msra.gmra.mrb[12].mxu1 %vm102_vm3, %v10259_v28 }
 0x500   :  { %10274 = vmatpush1.msk.msra.mxu0 %vm112_vm1, %v5715_v24  ;;  %10276 = vmatprep.subr.msk.mxu1 %vm112_vm1, %v5718_v49  ;;  %v5885_v61 = vpop.permute.xlu1 %5884 }
 0x501   :  { %v5892_v56 = vsel %vm725_vm4, %v5883_v51, %v5885_v61  ;;  %10277 = vmatpush1.msk.msra.mxu1 %vm112_vm1, %v5717_v59  ;;  %5871 = vmatprep.mubr.f32.mxu1 %v12692_v44  ;;  %v5891_v53 = vsel %vm725_vm4, %v5885_v61, %v5887_v58 }
 0x502   :  { %v5895_v8 = vmul.f32 %v5892_v56, %v10954_v52  ;;  %v6062_v25 = vpop.permute.xlu0 %6061  ;;  %v5896_v60 = vmul.f32 %v5891_v53, %v11000_v6 }
 0x504   :  { %10280 = vmatprep.subr.msk.mxu0 %vm112_vm1, %v5895_v8  ;;  %v5889_v12 = vpop.permute.xlu1 %5888 }
 0x505   :  { %v5890_v22 = vsel %vm725_vm4, %v5887_v58, %v5889_v12  ;;  %v5893_v13 = vsel %vm725_vm4, %v5889_v12, %v5883_v51  ;;  %10275 = vmatmul.mubr.msk.f32.vlgmr.msra.gmra.mrb[12].mxu0 %vm102_vm3, %v10272_v29 }
 0x506   :  { %v5894_v35 = vmul.f32 %v5893_v13, %v10997_v5  ;;  %v5897_v48 = vmul.f32 %v5890_v22, %v10961_v54  ;;  %v6066_v2 = vpop.permute.xlu0 %6065  ;;  %5979 = vmatprep.mubr.f32.mxu0 %v12692_v44  ;;  %v10286_v22 = vld [vmem:[%s12674_s8 + $0xc] sm:$0xf] }
 0x507   :  { %10278 = vmatmul.mubr.msk.f32.vlgmr.msra.gmra.mrb[12].mxu1 %vm102_vm3, %v10272_v29 }
 0x508   :  { %10281 = vmatpush1.msk.msra.mxu0 %vm112_vm1, %v5894_v35  ;;  %10283 = vmatprep.subr.msk.mxu1 %vm112_vm1, %v5897_v48  ;;  %v6064_v27 = vpop.permute.xlu1 %6063 }
 0x509   :  { %v6071_v36 = vsel %vm968_vm5, %v6062_v25, %v6064_v27  ;;  %10284 = vmatpush1.msk.msra.mxu1 %vm112_vm1, %v5896_v60  ;;  %6050 = vmatprep.mubr.f32.mxu1 %v12692_v44  ;;  %v6070_v11 = vsel %vm968_vm5, %v6064_v27, %v6066_v2 }
 0x50a   :  { %v6074_v51 = vmul.f32 %v6071_v36, %v11007_v16  ;;  %v6241_v28 = vpop.permute.xlu0 %6240  ;;  %v6075_v61 = vmul.f32 %v6070_v11, %v11053_v39 }
 0x50c   :  { %10287 = vmatprep.subr.msk.mxu0 %vm112_vm1, %v6074_v51  ;;  %v6068_v57 = vpop.permute.xlu1 %6067 }
 0x50d   :  { %v6069_v31 = vsel %vm968_vm5, %v6066_v2, %v6068_v57  ;;  %v6072_v24 = vsel %vm968_vm5, %v6068_v57, %v6062_v25  ;;  %10282 = vmatmul.mubr.msk.f32.vlgmr.msra.gmra.mrb[12].mxu0 %vm102_vm3, %v10279_v50 }
 0x50e   :  { %v6073_v49 = vmul.f32 %v6072_v24, %v11050_v38  ;;  %v6076_v58 = vmul.f32 %v6069_v31, %v11010_v21  ;;  %v6245_v59 = vpop.permute.xlu0 %6244  ;;  %6158 = vmatprep.mubr.f32.mxu0 %v12692_v44  ;;  %v10293_v31 = vld [vmem:[%s12674_s8 + $0x14] sm:$0xf] }
 0x50f   :  { %10285 = vmatmul.mubr.msk.f32.vlgmr.msra.gmra.mrb[12].mxu1 %vm102_vm3, %v10279_v50 }
 0x510   :  { %10288 = vmatpush1.msk.msra.mxu0 %vm112_vm1, %v6073_v49  ;;  %10290 = vmatprep.subr.msk.mxu1 %vm112_vm1, %v6076_v58  ;;  %v6243_v56 = vpop.permute.xlu1 %6242 }
 0x511   :  { %v6249_v8 = vsel %vm1211_vm6, %v6243_v56, %v6245_v59  ;;  %v6250_v25 = vsel %vm1211_vm6, %v6241_v28, %v6243_v56  ;;  %10291 = vmatpush1.msk.msra.mxu1 %vm112_vm1, %v6075_v61  ;;  %6229 = vmatprep.mubr.f32.mxu1 %v12692_v44 }
 0x512   :  { %v6252_v29 = vmul.f32 %v6250_v25, %v11103_v62  ;;  %v6253_v53 = vmul.f32 %v6249_v8, %v11060_v42  ;;  %v6420_v12 = vpop.permute.xlu0 %6419 }
 0x514   :  { %10294 = vmatprep.subr.msk.mxu0 %vm112_vm1, %v6253_v53  ;;  %v6247_v13 = vpop.permute.xlu1 %6246 }
 0x515   :  { %v6248_v35 = vsel %vm1211_vm6, %v6245_v59, %v6247_v13  ;;  %v6251_v48 = vsel %vm1211_vm6, %v6247_v13, %v6241_v28  ;;  %10289 = vmatmul.mubr.msk.f32.vlgmr.msra.gmra.mrb[12].mxu0 %vm102_vm3, %v10286_v22  ;;  %v10300_v13 = vld [vmem:[%s12674_s8 + $0x18] sm:$0xf] }
 0x516   :  { %v6254_v2 = vmul.f32 %v6248_v35, %v11106_v63  ;;  %v6255_v60 = vmul.f32 %v6251_v48, %v11063_v43  ;;  %10295 = vmatpush1.msk.msra.mxu0 %vm112_vm1, %v6252_v29  ;;  %v6424_v27 = vpop.permute.xlu0 %6423  ;;  %6337 = vmatprep.mubr.f32.mxu0 %v12692_v44 }
 0x517   :  { %10292 = vmatmul.mubr.msk.f32.vlgmr.msra.gmra.mrb[12].mxu1 %vm102_vm3, %v10286_v22 }
 0x518   :  { %10297 = vmatprep.subr.msk.mxu1 %vm112_vm1, %v6255_v60  ;;  %v6422_v36 = vpop.permute.xlu1 %6421  ;;  %6408 = vmatprep.mubr.f32.mxu1 %v12692_v44 }
 0x519   :  { %v6428_v51 = vsel %vm1454_vm7, %v6422_v36, %v6424_v27  ;;  %v6429_v28 = vsel %vm1454_vm7, %v6420_v12, %v6422_v36  ;;  %10298 = vmatpush1.msk.msra.mxu1 %vm112_vm1, %v6254_v2 }
 0x51a   :  { %v6431_v50 = vmul.f32 %v6429_v28, %v11156_v32  ;;  %v6432_v11 = vmul.f32 %v6428_v51, %v11113_v3  ;;  %v6599_v57 = vpop.permute.xlu0 %6598 }
 0x51c   :  { %10301 = vmatprep.subr.msk.mxu0 %vm112_vm1, %v6432_v11  ;;  %v6426_v24 = vpop.permute.xlu1 %6425 }
 0x51d   :  { %v6427_v49 = vsel %vm1454_vm7, %v6424_v27, %v6426_v24  ;;  %v6430_v58 = vsel %vm1454_vm7, %v6426_v24, %v6420_v12  ;;  %10296 = vmatmul.mubr.msk.f32.vlgmr.msra.gmra.mrb[12].mxu0 %vm102_vm3, %v10293_v31  ;;  %v10307_v24 = vld [vmem:[%s12674_s8 + $0x1c] sm:$0xf] }
 0x51e   :  { %v6433_v59 = vmul.f32 %v6427_v49, %v11159_v33  ;;  %v6434_v61 = vmul.f32 %v6430_v58, %v11116_v4  ;;  %10302 = vmatpush1.msk.msra.mxu0 %vm112_vm1, %v6431_v50  ;;  %v6603_v56 = vpop.permute.xlu0 %6602  ;;  %6516 = vmatprep.mubr.f32.mxu0 %v12692_v44 }
 0x51f   :  { %10299 = vmatmul.mubr.msk.f32.vlgmr.msra.gmra.mrb[12].mxu1 %vm102_vm3, %v10293_v31 }
 0x520   :  { %10304 = vmatprep.subr.msk.mxu1 %vm112_vm1, %v6434_v61  ;;  %v6601_v8 = vpop.permute.xlu1 %6600  ;;  %6587 = vmatprep.mubr.f32.mxu1 %v12692_v44 }
 0x521   :  { %v6607_v25 = vsel %vm1697_vm8, %v6601_v8, %v6603_v56  ;;  %v6608_v29 = vsel %vm1697_vm8, %v6599_v57, %v6601_v8  ;;  %10305 = vmatpush1.msk.msra.mxu1 %vm112_vm1, %v6433_v59 }
 0x522   :  { %v6610_v53 = vmul.f32 %v6608_v29, %v11209_v0  ;;  %v6611_v12 = vmul.f32 %v6607_v25, %v11166_v40  ;;  %v6778_v22 = vpop.permute.xlu0 %6777 }
 0x524   :  { %10308 = vmatprep.subr.msk.mxu0 %vm112_vm1, %v6611_v12  ;;  %v6605_v35 = vpop.permute.xlu1 %6604 }
 0x525   :  { %v6606_v48 = vsel %vm1697_vm8, %v6603_v56, %v6605_v35  ;;  %v6609_v2 = vsel %vm1697_vm8, %v6605_v35, %v6599_v57  ;;  %10303 = vmatmul.mubr.msk.f32.vlgmr.msra.gmra.mrb[12].mxu0 %vm102_vm3, %v10300_v13 }
 0x526   :  { %v6612_v60 = vmul.f32 %v6606_v48, %v11212_v1  ;;  %v6613_v27 = vmul.f32 %v6609_v2, %v11169_v41  ;;  %10309 = vmatpush1.msk.msra.mxu0 %vm112_vm1, %v6610_v53  ;;  %v6782_v36 = vpop.permute.xlu0 %6781  ;;  %6695 = vmatprep.mubr.f32.mxu0 %v12692_v44  ;;  %v10314_v2 = vld [vmem:[%s12674_s8 + $0x20] sm:$0xf] }
 0x527   :  { %10306 = vmatmul.mubr.msk.f32.vlgmr.msra.gmra.mrb[12].mxu1 %vm102_vm3, %v10300_v13 }
 0x528   :  { %10311 = vmatprep.subr.msk.mxu1 %vm112_vm1, %v6613_v27  ;;  %v6780_v51 = vpop.permute.xlu1 %6779  ;;  %6766 = vmatprep.mubr.f32.mxu1 %v12692_v44 }
 0x529   :  { %v6786_v28 = vsel %vm1940_vm9, %v6780_v51, %v6782_v36  ;;  %v6787_v50 = vsel %vm1940_vm9, %v6778_v22, %v6780_v51  ;;  %10312 = vmatpush1.msk.msra.mxu1 %vm112_vm1, %v6612_v60 }
 0x52a   :  { %v6789_v11 = vmul.f32 %v6787_v50, %v12693_v30  ;;  %v6790_v57 = vmul.f32 %v6786_v28, %v11219_v14  ;;  %v6969_v31 = vpop.permute.xlu0 %6968  ;;  %v6984_v50 = vld [vmem:[%s12676_s7] sm:$0xff] }
 0x52b   :  { %v6978_v49 = vsel %vm68_vm0, %v6969_v31, %v12050_v7 }
 0x52c   :  { %v6981_v58 = vmul.f32 %v6978_v49, %v10869_v17  ;;  %10315 = vmatprep.subr.msk.mxu0 %vm112_vm1, %v6790_v57  ;;  %v6784_v59 = vpop.permute.xlu1 %6783 }
 0x52d   :  { %v6785_v61 = vsel %vm1940_vm9, %v6782_v36, %v6784_v59  ;;  %v6788_v56 = vsel %vm1940_vm9, %v6784_v59, %v6778_v22  ;;  %10310 = vmatmul.mubr.msk.f32.vlgmr.msra.gmra.mrb[12].mxu0 %vm102_vm3, %v10307_v24 }
 0x52e   :  { %v6791_v8 = vmul.f32 %v6785_v61, %v12694_v23  ;;  %v6792_v25 = vmul.f32 %v6788_v56, %v11222_v15  ;;  %10316 = vmatpush1.msk.msra.mxu0 %vm112_vm1, %v6789_v11  ;;  %v6973_v29 = vpop.permute.xlu0 %6972  ;;  %6874 = vmatprep.mubr.f32.mxu0 %v12692_v44 }
 0x52f   :  { %10313 = vmatmul.mubr.msk.f32.vlgmr.msra.gmra.mrb[12].mxu1 %vm102_vm3, %v10307_v24  ;;  %6988 = vmatprep.subr.mxu0 %v6981_v58  ;;  %v6977_v60 = vsel %vm68_vm0, %v12050_v7, %v6973_v29 }
 0x530   :  { %10318 = vmatprep.subr.msk.mxu1 %vm112_vm1, %v6792_v25  ;;  %v6975_v53 = vpop.permute.xlu1 %6974  ;;  %6945 = vmatprep.mubr.f32.mxu1 %v12692_v44  ;;  %v6982_v36 = vmul.f32 %v6977_v60, %v10878_v20 }
 0x531   :  { %v6976_v12 = vsel %vm68_vm0, %v6973_v29, %v6975_v53  ;;  %v6979_v22 = vsel %vm68_vm0, %v6975_v53, %v6969_v31  ;;  %10319 = vmatpush1.msk.msra.mxu1 %vm112_vm1, %v6791_v8 }
 0x532   :  { %v6980_v13 = vmul.f32 %v6979_v22, %v10875_v19  ;;  %v6983_v35 = vmul.f32 %v6976_v12, %v10872_v18  ;;  %v7276_v48 = vpop.permute.xlu0 %7275 }
 0x534   :  { %7059 = vmatprep.subr.mxu1 %v6983_v35  ;;  %v7278_v27 = vpop.permute.xlu1 %7277 }
 0x535   :  { %10317 = vmatmul.mubr.msk.f32.vlgmr.msra.gmra.mrb[12].mxu0 %vm102_vm3, %v10314_v2  ;;  %v7285_v51 = vsel %vm482_vm2, %v7276_v48, %v7278_v27 }
 0x536   :  { %6989 = vmatpush1.msra.mxu0 %v6980_v13  ;;  %v7280_v28 = vpop.permute.xlu0 %7279  ;;  %7052 = vmatprep.mubr.f32.mxu0 %v12692_v44  ;;  %v7288_v11 = vmul.f32 %v7285_v51, %v10902_v34 }
 0x537   :  { %10320 = vmatmul.mubr.msk.f32.vlgmr.msra.gmra.mrb[12].mxu1 %vm102_vm3, %v10314_v2  ;;  %7133 = vmatprep.subr.mxu0 %v11904_v10  ;;  %v7284_v59 = vsel %vm482_vm2, %v7278_v27, %v7280_v28 }
 0x538   :  { %7060 = vmatpush1.msra.mxu1 %v6982_v36  ;;  %v7282_v7 = vpop.permute.xlu1 %7281  ;;  %7123 = vmatprep.mubr.f32.mxu1 %v12692_v44  ;;  %v7289_v25 = vmul.f32 %v7284_v59, %v10945_v47 }
 0x539   :  { %7204 = vmatprep.subr.mxu1 %v11973_v55  ;;  %v7283_v57 = vsel %vm482_vm2, %v7280_v28, %v7282_v7  ;;  %10322 = vmatmul.mubr.msk.f32.vlgmr.msra.gmra.mrb[14].mxu0 %vm2237_vm10, %v6984_v50  ;;  %v7286_v55 = vsel %vm482_vm2, %v7282_v7, %v7276_v48  ;;  %v10326_v48 = vld [vmem:[%s12676_s7 + $0x8] sm:$0xff] }
 0x53a   :  { %v7290_v31 = vmul.f32 %v7283_v57, %v10911_v37  ;;  %7134 = vmatpush1.msra.mxu0 %v11962_v26  ;;  %v7443_v24 = vpop.permute.xlu0 %7442  ;;  %7197 = vmatprep.mubr.f32.mxu0 %v12692_v44  ;;  %v10321_v26 = vld [vmem:[%s12676_s7 + $0x20] sm:$0xff] }
 0x53b   :  { %10323 = vmatmul.mubr.msk.f32.vlgmr.msra.gmra.mrb[14].mxu1 %vm2237_vm10, %v6984_v50  ;;  %7296 = vmatprep.subr.mxu0 %v7288_v11 }
 0x53c   :  { %7205 = vmatpush1.msra.mxu1 %v11969_v45  ;;  %v7445_v10 = vpop.permute.xlu1 %7444  ;;  %7268 = vmatprep.mubr.f32.mxu1 %v12692_v44  ;;  %v7287_v45 = vmul.f32 %v7286_v55, %v10942_v46 }
 0x53d   :  { %7367 = vmatprep.subr.mxu1 %v7290_v31  ;;  %v7452_v49 = vsel %vm725_vm4, %v7443_v24, %v7445_v10 }
 0x53e   :  { %v7447_v58 = vpop.permute.xlu0 %7446  ;;  %v7455_v56 = vmul.f32 %v7452_v49, %v10954_v52 }
 0x53f   :  { %v7451_v2 = vsel %vm725_vm4, %v7445_v10, %v7447_v58 }
 0x540   :  { %v7449_v61 = vpop.permute.xlu1 %7448  ;;  %v7456_v28 = vmul.f32 %v7451_v2, %v11000_v6 }
 0x541   :  { %v7450_v8 = vsel %vm725_vm4, %v7447_v58, %v7449_v61  ;;  %10324 = vmatmul.mubr.msk.f32.vlgmr.msra.gmra.mrb[14].mxu0 %vm2237_vm10, %v10321_v26  ;;  %v7453_v22 = vsel %vm725_vm4, %v7449_v61, %v7443_v24  ;;  %v10329_v24 = vld [vmem:[%s12676_s7 + $0x10] sm:$0xff] }
 0x542   :  { %v7457_v29 = vmul.f32 %v7450_v8, %v10961_v54  ;;  %7297 = vmatpush1.msra.mxu0 %v7287_v45  ;;  %v7610_v53 = vpop.permute.xlu0 %7609  ;;  %7360 = vmatprep.mubr.f32.mxu0 %v12692_v44  ;;  %v7454_v60 = vmul.f32 %v7453_v22, %v10997_v5 }
 0x543   :  { %10325 = vmatmul.mubr.msk.f32.vlgmr.msra.gmra.mrb[14].mxu1 %vm2237_vm10, %v10321_v26  ;;  %7463 = vmatprep.subr.mxu0 %v7455_v56 }
 0x544   :  { %7368 = vmatpush1.msra.mxu1 %v7289_v25  ;;  %v7612_v12 = vpop.permute.xlu1 %7611  ;;  %7431 = vmatprep.mubr.f32.mxu1 %v12692_v44 }
 0x545   :  { %7534 = vmatprep.subr.mxu1 %v7457_v29  ;;  %v7619_v13 = vsel %vm968_vm5, %v7610_v53, %v7612_v12 }
 0x546   :  { %v7614_v35 = vpop.permute.xlu0 %7613  ;;  %v7622_v36 = vmul.f32 %v7619_v13, %v11007_v16 }
 0x547   :  { %v7618_v10 = vsel %vm968_vm5, %v7612_v12, %v7614_v35 }
 0x548   :  { %v7616_v27 = vpop.permute.xlu1 %7615  ;;  %v7623_v45 = vmul.f32 %v7618_v10, %v11053_v39 }
 0x549   :  { %v7617_v51 = vsel %vm968_vm5, %v7614_v35, %v7616_v27  ;;  %10327 = vmatmul.mubr.msk.f32.vlgmr.msra.gmra.mrb[14].mxu0 %vm2237_vm10, %v10326_v48  ;;  %v7620_v57 = vsel %vm968_vm5, %v7616_v27, %v7610_v53  ;;  %v10332_v53 = vld [vmem:[%s12676_s7 + $0x18] sm:$0xff] }
 0x54a   :  { %v7624_v50 = vmul.f32 %v7617_v51, %v11010_v21  ;;  %7464 = vmatpush1.msra.mxu0 %v7454_v60  ;;  %v7777_v7 = vpop.permute.xlu0 %7776  ;;  %7527 = vmatprep.mubr.f32.mxu0 %v12692_v44  ;;  %v7621_v49 = vmul.f32 %v7620_v57, %v11050_v38 }
 0x54b   :  { %10328 = vmatmul.mubr.msk.f32.vlgmr.msra.gmra.mrb[14].mxu1 %vm2237_vm10, %v10326_v48  ;;  %7630 = vmatprep.subr.mxu0 %v7622_v36 }
 0x54c   :  { %7535 = vmatpush1.msra.mxu1 %v7456_v28  ;;  %v7779_v11 = vpop.permute.xlu1 %7778  ;;  %7598 = vmatprep.mubr.f32.mxu1 %v12692_v44 }
 0x54d   :  { %7701 = vmatprep.subr.mxu1 %v7624_v50  ;;  %v7786_v25 = vsel %vm1211_vm6, %v7777_v7, %v7779_v11 }
 0x54e   :  { %v7781_v31 = vpop.permute.xlu0 %7780  ;;  %v7788_v13 = vmul.f32 %v7786_v25, %v11103_v62 }
 0x54f   :  { %v7785_v55 = vsel %vm1211_vm6, %v7779_v11, %v7781_v31 }
 0x550   :  { %v7789_v58 = vmul.f32 %v7785_v55, %v11060_v42  ;;  %v7783_v26 = vpop.permute.xlu1 %7782 }
 0x551   :  { %v7787_v59 = vsel %vm1211_vm6, %v7783_v26, %v7777_v7  ;;  %10330 = vmatmul.mubr.msk.f32.vlgmr.msra.gmra.mrb[14].mxu0 %vm2237_vm10, %v10329_v24  ;;  %v7784_v12 = vsel %vm1211_vm6, %v7781_v31, %v7783_v26  ;;  %v10335_v7 = vld [vmem:[%s12676_s7 + $0x28] sm:$0xff] }
 0x552   :  { %v7791_v61 = vmul.f32 %v7787_v59, %v11063_v43  ;;  %7631 = vmatpush1.msra.mxu0 %v7621_v49  ;;  %v7944_v56 = vpop.permute.xlu0 %7943  ;;  %7694 = vmatprep.mubr.f32.mxu0 %v12692_v44  ;;  %v7790_v60 = vmul.f32 %v7784_v12, %v11106_v63 }
 0x553   :  { %10331 = vmatmul.mubr.msk.f32.vlgmr.msra.gmra.mrb[14].mxu1 %vm2237_vm10, %v10329_v24  ;;  %7797 = vmatprep.subr.mxu0 %v7789_v58 }
 0x554   :  { %7702 = vmatpush1.msra.mxu1 %v7623_v45  ;;  %v7946_v8 = vpop.permute.xlu1 %7945  ;;  %7765 = vmatprep.mubr.f32.mxu1 %v12692_v44 }
 0x555   :  { %7868 = vmatprep.subr.mxu1 %v7791_v61  ;;  %v7953_v28 = vsel %vm1454_vm7, %v7944_v56, %v7946_v8 }
 0x556   :  { %v7948_v29 = vpop.permute.xlu0 %7947  ;;  %v7955_v31 = vmul.f32 %v7953_v28, %v11156_v32 }
 0x557   :  { %v7952_v22 = vsel %vm1454_vm7, %v7946_v8, %v7948_v29 }
 0x558   :  { %v7956_v35 = vmul.f32 %v7952_v22, %v11113_v3  ;;  %v7950_v48 = vpop.permute.xlu1 %7949 }
 0x559   :  { %v7954_v2 = vsel %vm1454_vm7, %v7950_v48, %v7944_v56  ;;  %10333 = vmatmul.mubr.msk.f32.vlgmr.msra.gmra.mrb[14].mxu0 %vm2237_vm10, %v10332_v53  ;;  %v7951_v11 = vsel %vm1454_vm7, %v7948_v29, %v7950_v48  ;;  %v10338_v56 = vld [vmem:[%s12676_s7 + $0x30] sm:$0xff] }
 0x55a   :  { %v7958_v27 = vmul.f32 %v7954_v2, %v11116_v4  ;;  %7798 = vmatpush1.msra.mxu0 %v7788_v13  ;;  %v8111_v36 = vpop.permute.xlu0 %8110  ;;  %7861 = vmatprep.mubr.f32.mxu0 %v12692_v44  ;;  %v7957_v49 = vmul.f32 %v7951_v11, %v11159_v33  ;;  %v10341_v2 = vld [vmem:[%s12676_s7 + $0x38] sm:$0xff] }
 0x55b   :  { %10334 = vmatmul.mubr.msk.f32.vlgmr.msra.gmra.mrb[14].mxu1 %vm2237_vm10, %v10332_v53  ;;  %7964 = vmatprep.subr.mxu0 %v7956_v35 }
 0x55c   :  { %7869 = vmatpush1.msra.mxu1 %v7790_v60  ;;  %v8113_v51 = vpop.permute.xlu1 %8112  ;;  %7932 = vmatprep.mubr.f32.mxu1 %v12692_v44 }
 0x55d   :  { %8035 = vmatprep.subr.mxu1 %v7958_v27  ;;  %v8120_v45 = vsel %vm1697_vm8, %v8111_v36, %v8113_v51 }
 0x55e   :  { %v8115_v50 = vpop.permute.xlu0 %8114  ;;  %v8122_v29 = vmul.f32 %v8120_v45, %v11209_v0 }
 0x55f   :  { %v8119_v57 = vsel %vm1697_vm8, %v8113_v51, %v8115_v50  ;;  %v10344_v51 = vld [vmem:[%s12676_s7 + $0x40] sm:$0xff] }
 0x560   :  { %v8123_v24 = vmul.f32 %v8119_v57, %v11166_v40  ;;  %v8117_v10 = vpop.permute.xlu1 %8116 }
 0x561   :  { %v8121_v55 = vsel %vm1697_vm8, %v8117_v10, %v8111_v36  ;;  %10336 = vmatmul.mubr.msk.f32.vlgmr.msra.gmra.mrb[14].mxu0 %vm2237_vm10, %v10335_v7  ;;  %v8118_v8 = vsel %vm1697_vm8, %v8115_v50, %v8117_v10 }
 0x562   :  { %v8125_v58 = vmul.f32 %v8121_v55, %v11169_v41  ;;  %7965 = vmatpush1.msra.mxu0 %v7955_v31  ;;  %v8278_v26 = vpop.permute.xlu0 %8277  ;;  %8028 = vmatprep.mubr.f32.mxu0 %v12692_v44  ;;  %v8124_v22 = vmul.f32 %v8118_v8, %v11212_v1 }
 0x563   :  { %10337 = vmatmul.mubr.msk.f32.vlgmr.msra.gmra.mrb[14].mxu1 %vm2237_vm10, %v10335_v7  ;;  %8131 = vmatprep.subr.mxu0 %v8123_v24 }
 0x564   :  { %8036 = vmatpush1.msra.mxu1 %v7957_v49  ;;  %v8280_v59 = vpop.permute.xlu1 %8279  ;;  %8099 = vmatprep.mubr.f32.mxu1 %v12692_v44 }
 0x565   :  { %8202 = vmatprep.subr.mxu1 %v8125_v58  ;;  %v8287_v48 = vsel %vm1940_vm9, %v8278_v26, %v8280_v59 }
 0x566   :  { %v8282_v61 = vpop.permute.xlu0 %8281  ;;  %v8289_v27 = vmul.f32 %v8287_v48, %v12693_v30 }
 0x567   :  { %v8286_v25 = vsel %vm1940_vm9, %v8280_v59, %v8282_v61 }
 0x568   :  { %v8290_v53 = vmul.f32 %v8286_v25, %v11219_v14 }
 0x569   :  { %v8284_v12 = vpop.permute.xlu1 %8283  ;;  %10339 = vmatmul.mubr.msk.f32.vlgmr.msra.gmra.mrb[14].mxu0 %vm2237_vm10, %v10338_v56 }
 0x56a   :  { %v8288_v13 = vsel %vm1940_vm9, %v8284_v12, %v8278_v26  ;;  %8132 = vmatpush1.msra.mxu0 %v8122_v29  ;;  %8195 = vmatprep.mubr.f32.mxu0 %v12692_v44  ;;  %v8285_v60 = vsel %vm1940_vm9, %v8282_v61, %v8284_v12 }
 0x56b   :  { %v8292_v35 = vmul.f32 %v8288_v13, %v11222_v15  ;;  %10340 = vmatmul.mubr.msk.f32.vlgmr.msra.gmra.mrb[14].mxu1 %vm2237_vm10, %v10338_v56  ;;  %8298 = vmatprep.subr.mxu0 %v8290_v53  ;;  %v8291_v36 = vmul.f32 %v8285_v60, %v12694_v23 }
 0x56c   :  { %8203 = vmatpush1.msra.mxu1 %v8124_v22  ;;  %8266 = vmatprep.mubr.f32.mxu1 %v12692_v44 }
 0x56d   :  { %8369 = vmatprep.subr.mxu1 %v8292_v35 }
 0x571   :  { %10342 = vmatmul.mubr.msk.f32.vlgmr.msra.gmra.mrb[14].mxu0 %vm2237_vm10, %v10341_v2 }
 0x572   :  { %8299 = vmatpush1.msra.mxu0 %v8289_v27  ;;  %8362 = vmatprep.mubr.f32.mxu0 %v12692_v44 }
 0x573   :  { %10343 = vmatmul.mubr.msk.f32.vlgmr.msra.gmra.mrb[14].mxu1 %vm2237_vm10, %v10341_v2 }
 0x574   :  { %8370 = vmatpush1.msra.mxu1 %v8291_v36  ;;  %8433 = vmatprep.mubr.f32.mxu1 %v12692_v44 }
 0x578   :  { %v6960_v57 = vpop.permute.xlu0 %6959 }
 0x579   :  { %10345 = vmatmul.mubr.msk.f32.vlgmr.msra.gmra.mrb[14].mxu0 %vm2237_vm10, %v10344_v51 }
 0x57a   :  { %8570 = vmatprep.mubr.f32.mxu0 %v12692_v44 }
 0x57b   :  { %10346 = vmatmul.mubr.msk.f32.vlgmr.msra.gmra.mrb[14].mxu1 %vm2237_vm10, %v10344_v51 }
 0x57c   :  { %8641 = vmatprep.mubr.f32.mxu1 %v12692_v44 }
 0x608   :  { %v6876_v28 = vpop.f32.mrb[12].mxu0 }
 0x609   :  { %v6878_v50 = vpop.f32.mrb[13].mxu0  ;;  %v6962_v31 = vadd.f32 %v6960_v57, %v6876_v28 }
 0x60a   :  { %v6947_v7 = vpop.f32.mrb[12].mxu1  ;;  %v6963_v24 = vadd.f32 %v6960_v57, %v6878_v50 }
 0x60b   :  { %v6949_v11 = vpop.f32.mrb[13].mxu1  ;;  %v6964_v55 = vadd.f32 %v6960_v57, %v6947_v7 }
 0x60c   :  { %v6965_v59 = vadd.f32 %v6960_v57, %v6949_v11  ;;  %v10058_v11 = vld [vmem:[%s12677_s11] sm:$0xff] }
 0x64c   :  { %v8364_v10 = vpop.f32.mrb[14].mxu0 }
 0x64d   :  { %v8444_v49 = vmul.f32 %v8364_v10, %v6962_v31  ;;  %v8452_v58 = vrot.slane %v8364_v10, 4  ;;  %v8366_v26 = vpop.f32.mrb[15].mxu0 }
 0x64e   :  { %v8445_v45 = vmul.f32 %v8366_v26, %v6963_v24  ;;  %v8453_v61 = vrot.slane %v8366_v26, 4  ;;  %v8435_v56 = vpop.f32.mrb[14].mxu1 }
 0x64f   :  { %v8460_v8 = vadd.f32 %v8452_v58, %v8444_v49  ;;  %v8446_v25 = vmul.f32 %v8435_v56, %v6964_v55  ;;  %v8454_v29 = vrot.slane %v8435_v56, 4  ;;  %v8437_v53 = vpop.f32.mrb[15].mxu1 }
 0x650   :  { %v8461_v12 = vadd.f32 %v8453_v61, %v8445_v45  ;;  %v8447_v22 = vmul.f32 %v8437_v53, %v6965_v59  ;;  %v8455_v13 = vrot.slane %v8437_v53, 4 }
 0x651   :  { %v8464_v35 = vmul.f32 0.2, %v8460_v8  ;;  %v8462_v48 = vadd.f32 %v8454_v29, %v8446_v25 }
 0x652   :  { %v8465_v2 = vmul.f32 0.2, %v8461_v12  ;;  %v8463_v60 = vadd.f32 %v8455_v13, %v8447_v22 }
 0x653   :  { %v12404_v27 = vmax.f32 %v8460_v8, %v8464_v35  ;;  %v8466_v36 = vmul.f32 0.2, %v8462_v48  ;;  %v10347_v35 = vld [vmem:[%s12678_s10 + $0x20] sm:$0xff] }
 0x654   :  { %v8469_v51 = vmax.f32 %v8461_v12, %v8465_v2  ;;  %v8467_v28 = vmul.f32 0.2, %v8463_v60 }
 0x655   :  { %8474 = vrot.lane.b32.xlu1 %v12404_v27, %s10688_s29  ;;  %v12409_v50 = vmax.f32 %v8462_v48, %v8466_v36 }
 0x656   :  { %8476 = vrot.lane.b32.xlu0 %v8469_v51, %s10688_s29  ;;  %v8471_v7 = vmax.f32 %v8463_v60, %v8467_v28 }
 0x659   :  { %8478 = vrot.lane.b32.xlu1 %v12409_v50, %s10688_s29 }
 0x65a   :  { %8480 = vrot.lane.b32.xlu0 %v8471_v7, %s10688_s29 }
 0x65d   :  { %8805 = vrot.lane.b32.xlu1 %v12404_v27, %s10689_s1 }
 0x65e   :  { %8807 = vrot.lane.b32.xlu0 %v8469_v51, %s10689_s1 }
 0x661   :  { %8809 = vrot.lane.b32.xlu1 %v12409_v50, %s10689_s1 }
 0x662   :  { %8811 = vrot.lane.b32.xlu0 %v8471_v7, %s10689_s1 }
 0x665   :  { %8984 = vrot.lane.b32.xlu1 %v12404_v27, %s10690_s30 }
 0x666   :  { %8986 = vrot.lane.b32.xlu0 %v8469_v51, %s10690_s30 }
 0x669   :  { %8988 = vrot.lane.b32.xlu1 %v12409_v50, %s10690_s30 }
 0x66a   :  { %8990 = vrot.lane.b32.xlu0 %v8471_v7, %s10690_s30 }
 0x66d   :  { %9163 = vrot.lane.b32.xlu1 %v12404_v27, %s10691_s14 }
 0x66e   :  { %9165 = vrot.lane.b32.xlu0 %v8469_v51, %s10691_s14 }
 0x671   :  { %9167 = vrot.lane.b32.xlu1 %v12409_v50, %s10691_s14 }
 0x672   :  { %9169 = vrot.lane.b32.xlu0 %v8471_v7, %s10691_s14 }
 0x675   :  { %9342 = vrot.lane.b32.xlu1 %v12404_v27, %s10692_s15 }
 0x676   :  { %9344 = vrot.lane.b32.xlu0 %v8469_v51, %s10692_s15 }
 0x679   :  { %9346 = vrot.lane.b32.xlu1 %v12409_v50, %s10692_s15 }
 0x67a   :  { %9348 = vrot.lane.b32.xlu0 %v8471_v7, %s10692_s15 }
 0x67d   :  { %9521 = vrot.lane.b32.xlu1 %v12404_v27, %s10693_s16 }
 0x67e   :  { %9523 = vrot.lane.b32.xlu0 %v8469_v51, %s10693_s16 }
 0x681   :  { %9525 = vrot.lane.b32.xlu1 %v12409_v50, %s10693_s16 }
 0x682   :  { %9527 = vrot.lane.b32.xlu0 %v8471_v7, %s10693_s16 }
 0x685   :  { %9700 = vrot.lane.b32.xlu1 %v12404_v27, %s10694_s17 }
 0x686   :  { %9702 = vrot.lane.b32.xlu0 %v8469_v51, %s10694_s17 }
 0x689   :  { %9704 = vrot.lane.b32.xlu1 %v12409_v50, %s10694_s17 }
 0x68a   :  { %9706 = vrot.lane.b32.xlu0 %v8471_v7, %s10694_s17 }
 0x68d   :  { %9879 = vrot.lane.b32.xlu1 %v12404_v27, %s10695_s18 }
 0x68e   :  { %9881 = vrot.lane.b32.xlu0 %v8469_v51, %s10695_s18 }
 0x691   :  { %9883 = vrot.lane.b32.xlu1 %v12409_v50, %s10695_s18 }
 0x692   :  { %9885 = vrot.lane.b32.xlu0 %v8471_v7, %s10695_s18 }
 0x695   :  { %10061 = vperm.xlu1 %10684, %v10058_v11  }
 0x6c7   :  { %v8475_v57 = vpop.permute.xlu1 %8474 }
 0x6c8   :  { %v8477_v31 = vpop.permute.xlu0 %8476 }
 0x6c9   :  { %v8484_v24 = vsel %vm68_vm0, %v8475_v57, %v8477_v31 }
 0x6ca   :  { %v8487_v10 = vmul.f32 %v8484_v24, %v10869_v17  ;;  %v8490_v17 = vld [vmem:[%s12678_s10] sm:$0xff] }
 0x6cb   :  { %v8479_v55 = vpop.permute.xlu1 %8478 }
 0x6cc   :  { %v8483_v49 = vsel %vm68_vm0, %v8477_v31, %v8479_v55  ;;  %v8481_v58 = vpop.permute.xlu0 %8480  ;;  %10348 = vmatprep.subr.msk.mxu0 %vm112_vm1, %v8487_v10 }
 0x6cd   :  { %v8482_v26 = vsel %vm68_vm0, %v8479_v55, %v8481_v58  ;;  %v8485_v59 = vsel %vm68_vm0, %v8481_v58, %v8475_v57  ;;  %v8488_v56 = vmul.f32 %v8483_v49, %v10878_v20 }
 0x6ce   :  { %v8486_v45 = vmul.f32 %v8485_v59, %v10875_v19  ;;  %v8489_v61 = vmul.f32 %v8482_v26, %v10872_v18  ;;  %v10367_v26 = vld [vmem:[%s12678_s10 + $0x10] sm:$0xff] }
 0x6cf   :  { %v8806_v8 = vpop.permute.xlu1 %8805 }
 0x6d0   :  { %v8808_v25 = vpop.permute.xlu0 %8807  ;;  %10349 = vmatpush1.msk.msra.mxu0 %vm112_vm1, %v8486_v45  ;;  %10351 = vmatprep.subr.msk.mxu1 %vm112_vm1, %v8489_v61 }
 0x6d1   :  { %v8815_v29 = vsel %vm482_vm2, %v8806_v8, %v8808_v25  ;;  %10350 = vmatmul.mubr.msk.f32.vlgmr.msra.gmra.mrb[8].mxu0 %vm102_vm3, %v8490_v17  ;;  %10352 = vmatpush1.msk.msra.mxu1 %vm112_vm1, %v8488_v56 }
 0x6d2   :  { %v8818_v18 = vmul.f32 %v8815_v29, %v10902_v34  ;;  %10354 = vmatprep.subr.msk.mxu0 %vm112_vm1, %v8469_v51  ;;  %10353 = vmatmul.mubr.msk.f32.vlgmr.msra.gmra.mrb[8].mxu1 %vm102_vm3, %v8490_v17 }
 0x6d3   :  { %10355 = vmatpush1.msk.msra.mxu0 %vm112_vm1, %v12404_v27  ;;  %10357 = vmatprep.subr.msk.mxu1 %vm112_vm1, %v8471_v7  ;;  %v8810_v19 = vpop.permute.xlu1 %8809  ;;  %v10360_v7 = vld [vmem:[%s12678_s10 + $0x8] sm:$0xff] }
 0x6d4   :  { %10358 = vmatpush1.msk.msra.mxu1 %vm112_vm1, %v12409_v50  ;;  %v8812_v20 = vpop.permute.xlu0 %8811  ;;  %10361 = vmatprep.subr.msk.mxu0 %vm112_vm1, %v8818_v18  ;;  %v8814_v12 = vsel %vm482_vm2, %v8808_v25, %v8810_v19  ;;  %v10374_v18 = vld [vmem:[%s12678_s10 + $0x18] sm:$0xff] }
 0x6d5   :  { %v8813_v53 = vsel %vm482_vm2, %v8810_v19, %v8812_v20  ;;  %v8816_v34 = vsel %vm482_vm2, %v8812_v20, %v8806_v8  ;;  %8727 = vmatprep.mubr.f32.mxu0 %v12692_v44  ;;  %8798 = vmatprep.mubr.f32.mxu1 %v12692_v44  ;;  %v8819_v60 = vmul.f32 %v8814_v12, %v10945_v47 }
 0x6d6   :  { %v8817_v22 = vmul.f32 %v8816_v34, %v10942_v46  ;;  %v8820_v13 = vmul.f32 %v8813_v53, %v10911_v37 }
 0x6d7   :  { %v8985_v48 = vpop.permute.xlu1 %8984 }
 0x6d8   :  { %v8987_v2 = vpop.permute.xlu0 %8986  ;;  %10364 = vmatprep.subr.msk.mxu1 %vm112_vm1, %v8820_v13 }
 0x6d9   :  { %v8994_v27 = vsel %vm725_vm4, %v8985_v48, %v8987_v2  ;;  %10356 = vmatmul.mubr.msk.f32.vlgmr.msra.gmra.mrb[8].mxu0 %vm102_vm3, %v10347_v35 }
 0x6da   :  { %v8997_v36 = vmul.f32 %v8994_v27, %v10954_v52  ;;  %10362 = vmatpush1.msk.msra.mxu0 %vm112_vm1, %v8817_v22  ;;  %10359 = vmatmul.mubr.msk.f32.vlgmr.msra.gmra.mrb[8].mxu1 %vm102_vm3, %v10347_v35 }
 0x6db   :  { %10365 = vmatpush1.msk.msra.mxu1 %vm112_vm1, %v8819_v60  ;;  %v8989_v37 = vpop.permute.xlu1 %8988  ;;  %8902 = vmatprep.mubr.f32.mxu0 %v12692_v44 }
 0x6dc   :  { %v8991_v46 = vpop.permute.xlu0 %8990  ;;  %10368 = vmatprep.subr.msk.mxu0 %vm112_vm1, %v8997_v36  ;;  %8973 = vmatprep.mubr.f32.mxu1 %v12692_v44  ;;  %v8993_v51 = vsel %vm725_vm4, %v8987_v2, %v8989_v37 }
 0x6dd   :  { %v8992_v47 = vsel %vm725_vm4, %v8989_v37, %v8991_v46  ;;  %v8995_v52 = vsel %vm725_vm4, %v8991_v46, %v8985_v48  ;;  %v8998_v31 = vmul.f32 %v8993_v51, %v11000_v6  ;;  %v10381_v48 = vld [vmem:[%s12678_s10 + $0x28] sm:$0xff]  ;;  %v10388_v51 = vld [vmem:[%s12678_s10 + $0x30] sm:$0xff] }
 0x6de   :  { %v8996_v28 = vmul.f32 %v8995_v52, %v10997_v5  ;;  %v8999_v50 = vmul.f32 %v8992_v47, %v10961_v54 }
 0x6df   :  { %v9164_v11 = vpop.permute.xlu1 %9163 }
 0x6e0   :  { %v9166_v57 = vpop.permute.xlu0 %9165  ;;  %10371 = vmatprep.subr.msk.mxu1 %vm112_vm1, %v8999_v50 }
 0x6e1   :  { %v9173_v24 = vsel %vm968_vm5, %v9164_v11, %v9166_v57  ;;  %10363 = vmatmul.mubr.msk.f32.vlgmr.msra.gmra.mrb[8].mxu0 %vm102_vm3, %v10360_v7 }
 0x6e2   :  { %v9176_v10 = vmul.f32 %v9173_v24, %v11007_v16  ;;  %10369 = vmatpush1.msk.msra.mxu0 %vm112_vm1, %v8996_v28  ;;  %10366 = vmatmul.mubr.msk.f32.vlgmr.msra.gmra.mrb[8].mxu1 %vm102_vm3, %v10360_v7 }
 0x6e3   :  { %10372 = vmatpush1.msk.msra.mxu1 %vm112_vm1, %v8998_v31  ;;  %v9168_v54 = vpop.permute.xlu1 %9167  ;;  %9081 = vmatprep.mubr.f32.mxu0 %v12692_v44 }
 0x6e4   :  { %v9170_v5 = vpop.permute.xlu0 %9169  ;;  %10375 = vmatprep.subr.msk.mxu0 %vm112_vm1, %v9176_v10  ;;  %9152 = vmatprep.mubr.f32.mxu1 %v12692_v44  ;;  %v9172_v55 = vsel %vm968_vm5, %v9166_v57, %v9168_v54 }
 0x6e5   :  { %v9171_v6 = vsel %vm968_vm5, %v9168_v54, %v9170_v5  ;;  %v9174_v16 = vsel %vm968_vm5, %v9170_v5, %v9164_v11  ;;  %v9177_v61 = vmul.f32 %v9172_v55, %v11053_v39  ;;  %v10395_v54 = vld [vmem:[%s12678_s10 + $0x38] sm:$0xff] }
 0x6e6   :  { %v9175_v49 = vmul.f32 %v9174_v16, %v11050_v38  ;;  %v9178_v58 = vmul.f32 %v9171_v6, %v11010_v21 }
 0x6e7   :  { %v9343_v59 = vpop.permute.xlu1 %9342 }
 0x6e8   :  { %v9345_v45 = vpop.permute.xlu0 %9344  ;;  %10378 = vmatprep.subr.msk.mxu1 %vm112_vm1, %v9178_v58 }
 0x6e9   :  { %10370 = vmatmul.mubr.msk.f32.vlgmr.msra.gmra.mrb[8].mxu0 %vm102_vm3, %v10367_v26  ;;  %v9352_v39 = vsel %vm1211_vm6, %v9343_v59, %v9345_v45 }
 0x6ea   :  { %10376 = vmatpush1.msk.msra.mxu0 %vm112_vm1, %v9175_v49  ;;  %10373 = vmatmul.mubr.msk.f32.vlgmr.msra.gmra.mrb[8].mxu1 %vm102_vm3, %v10367_v26  ;;  %v9354_v20 = vmul.f32 %v9352_v39, %v11103_v62 }
 0x6eb   :  { %10379 = vmatpush1.msk.msra.mxu1 %vm112_vm1, %v9177_v61  ;;  %v9347_v38 = vpop.permute.xlu1 %9346  ;;  %9260 = vmatprep.mubr.f32.mxu0 %v12692_v44 }
 0x6ec   :  { %v9351_v21 = vsel %vm1211_vm6, %v9345_v45, %v9347_v38  ;;  %v9349_v17 = vpop.permute.xlu0 %9348  ;;  %9331 = vmatprep.mubr.f32.mxu1 %v12692_v44 }
 0x6ed   :  { %v9355_v56 = vmul.f32 %v9351_v21, %v11060_v42  ;;  %v9353_v8 = vsel %vm1211_vm6, %v9349_v17, %v9343_v59  ;;  %v9350_v25 = vsel %vm1211_vm6, %v9347_v38, %v9349_v17 }
 0x6ee   :  { %v9357_v29 = vmul.f32 %v9353_v8, %v11063_v43  ;;  %v9356_v42 = vmul.f32 %v9350_v25, %v11106_v63 }
 0x6ef   :  { %10382 = vmatprep.subr.msk.mxu0 %vm112_vm1, %v9355_v56  ;;  %v9522_v19 = vpop.permute.xlu1 %9521 }
 0x6f0   :  { %v9524_v53 = vpop.permute.xlu0 %9523  ;;  %10385 = vmatprep.subr.msk.mxu1 %vm112_vm1, %v9357_v29 }
 0x6f1   :  { %10377 = vmatmul.mubr.msk.f32.vlgmr.msra.gmra.mrb[8].mxu0 %vm102_vm3, %v10374_v18  ;;  %v9531_v63 = vsel %vm1454_vm7, %v9522_v19, %v9524_v53 }
 0x6f2   :  { %10383 = vmatpush1.msk.msra.mxu0 %vm112_vm1, %v9354_v20  ;;  %10380 = vmatmul.mubr.msk.f32.vlgmr.msra.gmra.mrb[8].mxu1 %vm102_vm3, %v10374_v18  ;;  %v9533_v60 = vmul.f32 %v9531_v63, %v11156_v32 }
 0x6f3   :  { %10386 = vmatpush1.msk.msra.mxu1 %vm112_vm1, %v9356_v42  ;;  %v9526_v43 = vpop.permute.xlu1 %9525  ;;  %9439 = vmatprep.mubr.f32.mxu0 %v12692_v44 }
 0x6f4   :  { %v9530_v34 = vsel %vm1454_vm7, %v9524_v53, %v9526_v43  ;;  %v9528_v62 = vpop.permute.xlu0 %9527  ;;  %9510 = vmatprep.mubr.f32.mxu1 %v12692_v44 }
 0x6f5   :  { %v9534_v12 = vmul.f32 %v9530_v34, %v11113_v3  ;;  %v9532_v22 = vsel %vm1454_vm7, %v9528_v62, %v9522_v19  ;;  %v9529_v13 = vsel %vm1454_vm7, %v9526_v43, %v9528_v62 }
 0x6f6   :  { %v9536_v35 = vmul.f32 %v9532_v22, %v11116_v4  ;;  %v9535_v3 = vmul.f32 %v9529_v13, %v11159_v33 }
 0x6f7   :  { %10389 = vmatprep.subr.msk.mxu0 %vm112_vm1, %v9534_v12  ;;  %v9701_v2 = vpop.permute.xlu1 %9700 }
 0x6f8   :  { %v9703_v27 = vpop.permute.xlu0 %9702  ;;  %10392 = vmatprep.subr.msk.mxu1 %vm112_vm1, %v9536_v35 }
 0x6f9   :  { %10384 = vmatmul.mubr.msk.f32.vlgmr.msra.gmra.mrb[8].mxu0 %vm102_vm3, %v10381_v48  ;;  %v9710_v33 = vsel %vm1697_vm8, %v9701_v2, %v9703_v27 }
 0x6fa   :  { %10390 = vmatpush1.msk.msra.mxu0 %vm112_vm1, %v9533_v60  ;;  %10387 = vmatmul.mubr.msk.f32.vlgmr.msra.gmra.mrb[8].mxu1 %vm102_vm3, %v10381_v48  ;;  %v9712_v50 = vmul.f32 %v9710_v33, %v11209_v0 }
 0x6fb   :  { %10393 = vmatpush1.msk.msra.mxu1 %vm112_vm1, %v9535_v3  ;;  %v9705_v4 = vpop.permute.xlu1 %9704  ;;  %9618 = vmatprep.mubr.f32.mxu0 %v12692_v44 }
 0x6fc   :  { %v9709_v36 = vsel %vm1697_vm8, %v9703_v27, %v9705_v4  ;;  %v9707_v32 = vpop.permute.xlu0 %9706  ;;  %9689 = vmatprep.mubr.f32.mxu1 %v12692_v44 }
 0x6fd   :  { %v9713_v37 = vmul.f32 %v9709_v36, %v11166_v40  ;;  %v9711_v46 = vsel %vm1697_vm8, %v9707_v32, %v9701_v2  ;;  %v9708_v47 = vsel %vm1697_vm8, %v9705_v4, %v9707_v32 }
 0x6fe   :  { %v9715_v52 = vmul.f32 %v9711_v46, %v11169_v41  ;;  %v9714_v40 = vmul.f32 %v9708_v47, %v11212_v1 }
 0x6ff   :  { %10396 = vmatprep.subr.msk.mxu0 %vm112_vm1, %v9713_v37  ;;  %v9880_v28 = vpop.permute.xlu1 %9879 }
 0x700   :  { %v9882_v7 = vpop.permute.xlu0 %9881  ;;  %10399 = vmatprep.subr.msk.mxu1 %vm112_vm1, %v9715_v52 }
 0x701   :  { %10391 = vmatmul.mubr.msk.f32.vlgmr.msra.gmra.mrb[8].mxu0 %vm102_vm3, %v10388_v51  ;;  %v9889_v1 = vsel %vm1940_vm9, %v9880_v28, %v9882_v7 }
 0x702   :  { %10397 = vmatpush1.msk.msra.mxu0 %vm112_vm1, %v9712_v50  ;;  %10394 = vmatmul.mubr.msk.f32.vlgmr.msra.gmra.mrb[8].mxu1 %vm102_vm3, %v10388_v51  ;;  %v9891_v5 = vmul.f32 %v9889_v1, %v12693_v30 }
 0x703   :  { %10400 = vmatpush1.msk.msra.mxu1 %vm112_vm1, %v9714_v40  ;;  %v9884_v41 = vpop.permute.xlu1 %9883  ;;  %9797 = vmatprep.mubr.f32.mxu0 %v12692_v44 }
 0x704   :  { %v9888_v11 = vsel %vm1940_vm9, %v9882_v7, %v9884_v41  ;;  %v9886_v0 = vpop.permute.xlu0 %9885  ;;  %9868 = vmatprep.mubr.f32.mxu1 %v12692_v44 }
 0x705   :  { %v9892_v57 = vmul.f32 %v9888_v11, %v11219_v14  ;;  %v9890_v31 = vsel %vm1940_vm9, %v9886_v0, %v9880_v28  ;;  %v9887_v24 = vsel %vm1940_vm9, %v9884_v41, %v9886_v0 }
 0x706   :  { %v9894_v10 = vmul.f32 %v9890_v31, %v11222_v15  ;;  %v9893_v14 = vmul.f32 %v9887_v24, %v12694_v23 }
 0x707   :  { %10403 = vmatprep.subr.msk.mxu0 %vm112_vm1, %v9892_v57 }
 0x708   :  { %10406 = vmatprep.subr.msk.mxu1 %vm112_vm1, %v9894_v10 }
 0x709   :  { %10398 = vmatmul.mubr.msk.f32.vlgmr.msra.gmra.mrb[8].mxu0 %vm102_vm3, %v10395_v54 }
 0x70a   :  { %10404 = vmatpush1.msk.msra.mxu0 %vm112_vm1, %v9891_v5  ;;  %10401 = vmatmul.mubr.msk.f32.vlgmr.msra.gmra.mrb[8].mxu1 %vm102_vm3, %v10395_v54 }
 0x70b   :  { %10407 = vmatpush1.msk.msra.mxu1 %vm112_vm1, %v9893_v14  ;;  %9976 = vmatprep.mubr.f32.mxu0 %v12692_v44 }
 0x70c   :  { %10047 = vmatprep.mubr.f32.mxu1 %v12692_v44 }
 0x711   :  { %10405 = vmatmul.mubr.msk.f32.vlgmr.msra.gmra.mrb[8].mxu0 %vm102_vm3, %v10402_v9 }
 0x712   :  { %10408 = vmatmul.mubr.msk.f32.vlgmr.msra.gmra.mrb[8].mxu1 %vm102_vm3, %v10402_v9 }
 0x714   :  { %v10062_v15 = vpop.permute.xlu1 %10061 }
 0x7e4   :  { %v9978_v30 = vpop.f32.mrb[8].mxu0 }
 0x7e5   :  { %v10409_v23 = vadd.f32 %v10062_v15, %v9978_v30  ;;  %v9980_v6 = vpop.f32.mrb[9].mxu0  ;;  %v10049_v16 = vpop.f32.mrb[8].mxu1 }
 0x7e6   :  { %v10410_v55 = vadd.f32 %v10062_v15, %v9980_v6  ;;  %v10411_v49 = vadd.f32 %v10062_v15, %v10049_v16  ;;  %v10051_v58 = vpop.f32.mrb[9].mxu1 }
 0x7e7   :  { %10072 = vst [vmem:[%s12679_s13] sm:$0xff] %v10409_v23  ;;  %v10412_v44 = vadd.f32 %v10062_v15, %v10051_v58 }
 0x7e8   :  { %10073 = vst [vmem:[%s12679_s13 + $0x8] sm:$0xff] %v10410_v55  ;;  %10074 = vst [vmem:[%s12679_s13 + $0x10] sm:$0xff] %v10411_v49 }
 0x7e9   :  { %10075 = vst [vmem:[%s12679_s13 + $0x18] sm:$0xff] %v10412_v44 }

</bundles_post_ra>
